<compile_context>
chip_gen: v6e
topology: v6e:2x2x1
jax: 0.10.0
libtpu: 0.0.40
codegen_flags: <defaults>
</compile_context>

<pallas_src>
import functools

import jax
import jax.numpy as jnp
from jax.experimental import pallas as pl
from jax.experimental.pallas import tpu as pltpu

LANE = 128


def _round_up(x, m):
    return (x + m - 1) // m * m


def residual_block_kernel(*refs, H, W, Cin, Cinp, Cp, Cout, has_proj):
    """One batch element per grid step.

    refs (has_proj=True):  x, w1f, w2f, ws, o, x_pad, h_pad, col
    refs (has_proj=False): x, w1f, w2f,     o, x_pad, h_pad, col

    x_ref  : (1, H, W, Cin) f32     input (no host-side spatial padding)
    w1_ref : (9*Cinp, Cp)   bf16    conv1 weights, tap-major im2col layout
    w2_ref : (9*Cp,  Cp)    bf16    conv2 weights, tap-major im2col layout
    ws_ref : (Cin, Cp)      bf16    1x1 shortcut weights (projection case only)
    o_ref  : (1, H, W, Cout) f32    output at the true channel width
    x_pad  : (H+2, W+2, Cin) f32    VMEM scratch: x with 1-wide zero halo
    h_pad  : (H+2, W+2, Cp)  f32    VMEM scratch: relu(conv1) with 1-wide zero halo
    col    : (H*W, 9*col_ch) bf16   shared im2col buffer (conv1 if Cin aligned, conv2)
    """
    if has_proj:
        x_ref, w1_ref, w2_ref, ws_ref, o_ref, x_pad, h_pad, col = refs
    else:
        x_ref, w1_ref, w2_ref, o_ref, x_pad, h_pad, col = refs
        ws_ref = None

    HW = H * W
    K1 = 9 * Cinp
    K2 = 9 * Cp
    f32 = jnp.float32
    bf16 = jnp.bfloat16

    # --- Zero only the 1-wide halos (interiors are fully overwritten every step).
    # Unconditional thin-strip stores: cheap, and correct no matter how the "parallel"
    # grid axis is split across TensorCores (scratch is per-core).
    x_pad[0:1, :, :] = jnp.zeros((1, W + 2, Cin), f32)
    x_pad[H + 1:H + 2, :, :] = jnp.zeros((1, W + 2, Cin), f32)
    x_pad[1:H + 1, 0:1, :] = jnp.zeros((H, 1, Cin), f32)
    x_pad[1:H + 1, W + 1:W + 2, :] = jnp.zeros((H, 1, Cin), f32)
    h_pad[0:1, :, :] = jnp.zeros((1, W + 2, Cp), f32)
    h_pad[H + 1:H + 2, :, :] = jnp.zeros((1, W + 2, Cp), f32)
    h_pad[1:H + 1, 0:1, :] = jnp.zeros((H, 1, Cp), f32)
    h_pad[1:H + 1, W + 1:W + 2, :] = jnp.zeros((H, 1, Cp), f32)

    # Spatial zero-padding done in VMEM (no host jnp.pad of x, no extra HBM traffic).
    x_pad[1:H + 1, 1:W + 1, :] = x_ref[0].astype(f32)

    # ---- conv1: 3x3, stride 1, pad 1 ----
    if Cin == Cinp:
        # Lane-aligned Cin: build the im2col LHS once and do a single deep-K bf16 matmul.
        for dy in range(3):
            for dx in range(3):
                tap = dy * 3 + dx
                col[:, tap * Cinp:(tap + 1) * Cinp] = (
                    x_pad[dy:dy + H, dx:dx + W, :].reshape(HW, Cin).astype(bf16))
        h = jnp.dot(col[:, 0:K1], w1_ref[...], preferred_element_type=f32)
    else:
        # Unaligned (small) Cin: sum the 9 tap dots as traced values -> one store,
        # no accumulator read-modify-write, no K padding to 9*128.
        h = None
        for dy in range(3):
            for dx in range(3):
                tap = dy * 3 + dx
                patch = x_pad[dy:dy + H, dx:dx + W, :].reshape(HW, Cin).astype(bf16)
                w_tap = w1_ref[tap * Cinp:tap * Cinp + Cin, :]
                d = jnp.dot(patch, w_tap, preferred_element_type=f32)
                h = d if h is None else h + d

    # relu -> zero-haloed, lane-dense intermediate for conv2 (f32 scratch; cast to bf16
    # happens during the conv2 im2col build).
    h_pad[1:H + 1, 1:W + 1, :] = jnp.maximum(h, 0.0).reshape(H, W, Cp)

    # ---- conv2: 3x3, stride 1, pad 1 as a single im2col bf16 matmul ----
    for dy in range(3):
        for dx in range(3):
            tap = dy * 3 + dx
            col[:, tap * Cp:(tap + 1) * Cp] = (
                h_pad[dy:dy + H, dx:dx + W, :].reshape(HW, Cp).astype(bf16))
    out = jnp.dot(col[:, 0:K2], w2_ref[...], preferred_element_type=f32)   # (HW, Cp)

    # ---- shortcut + final relu ----
    x_center = x_pad[1:H + 1, 1:W + 1, :].reshape(HW, Cin)
    if has_proj:
        out = out + jnp.dot(x_center.astype(bf16), ws_ref[...],
                            preferred_element_type=f32)
        if Cout != Cp:
            out = out[:, 0:Cout]
    else:
        # identity shortcut (Cin == Cout): exact f32 add, no 1x1 matmul, no ws DMA
        if Cout != Cp:
            out = out[:, 0:Cout]
        out = out + x_center

    o_ref[...] = jnp.maximum(out, 0.0).reshape(1, H, W, Cout).astype(o_ref.dtype)


def residual_block(x, w1, w2, ws=None):
    """NHWC ResidualBlock forward.

    x  : (N, H, W, Cin)
    w1 : (3, 3, Cin, Cout)   HWIO
    w2 : (3, 3, Cout, Cout)  HWIO
    ws : (Cin, Cout) 1x1 projection weights, or None for the identity shortcut
         (requires Cin == Cout, mirroring the PyTorch module).
    """
    N, H, W, Cin = x.shape
    Cout = w1.shape[-1]
    Cp = _round_up(Cout, LANE)     # lane-padded output channels
    Cinp = _round_up(Cin, LANE)    # lane-padded input channels (weight rows only)
    x = x.astype(jnp.float32)

    # Host-side weight prep: zero-pad channels, flatten to tap-major im2col layout, bf16.
    w1_flat = jnp.pad(w1.astype(jnp.float32),
                      ((0, 0), (0, 0), (0, Cinp - Cin), (0, Cp - Cout))
                      ).reshape(9 * Cinp, Cp).astype(jnp.bfloat16)
    w2_flat = jnp.pad(w2.astype(jnp.float32),
                      ((0, 0), (0, 0), (0, Cp - Cout), (0, Cp - Cout))
                      ).reshape(9 * Cp, Cp).astype(jnp.bfloat16)

    has_proj = ws is not None
    if has_proj:
        ws_p = jnp.pad(ws.astype(jnp.float32), ((0, 0), (0, Cp - Cout))
                       ).astype(jnp.bfloat16)
        operands = (x, w1_flat, w2_flat, ws_p)
        ws_specs = [pl.BlockSpec((Cin, Cp), lambda n: (0, 0))]
    else:
        assert Cin == Cout, "identity shortcut requires in_planes == out_planes"
        operands = (x, w1_flat, w2_flat)
        ws_specs = []

    # Shared im2col scratch: conv1 uses it only when Cin is lane-aligned.
    col_ch = max(Cinp, Cp) if Cin == Cinp else Cp

    kernel = functools.partial(residual_block_kernel, H=H, W=W, Cin=Cin, Cinp=Cinp,
                               Cp=Cp, Cout=Cout, has_proj=has_proj)

    try:
        cap = int(pltpu.get_tpu_info().vmem_capacity_bytes)
    except Exception:  # pragma: no cover - conservative fallback
        cap = 128 * 1024 * 1024
    # 96 MiB on 128-MiB chips (v5e/v6e), 48 MiB on v7x's 64-MiB VMEM.
    vmem_limit = min(100 * 1024 * 1024, (3 * cap) // 4)

    HW = H * W
    k1_eff = 9 * (Cinp if Cin == Cinp else Cin)
    flops = 2 * N * HW * Cp * (k1_eff + 9 * Cp)
    bytes_accessed = (4 * N * HW * Cin + 2 * w1_flat.size + 2 * w2_flat.size
                      + 4 * N * HW * Cout)
    if has_proj:
        flops += 2 * N * HW * Cin * Cp
        bytes_accessed += 2 * ws_p.size

    return pl.pallas_call(
        kernel,
        out_shape=jax.ShapeDtypeStruct((N, H, W, Cout), jnp.float32),
        grid_spec=pltpu.PrefetchScalarGridSpec(
            num_scalar_prefetch=0,
            grid=(N,),
            in_specs=[
                pl.BlockSpec((1, H, W, Cin), lambda n: (n, 0, 0, 0)),
                pl.BlockSpec((9 * Cinp, Cp), lambda n: (0, 0)),
                pl.BlockSpec((9 * Cp, Cp), lambda n: (0, 0)),
                *ws_specs,
            ],
            out_specs=pl.BlockSpec((1, H, W, Cout), lambda n: (n, 0, 0, 0)),
            scratch_shapes=[
                pltpu.VMEM((H + 2, W + 2, Cin), jnp.float32),   # x_pad
                pltpu.VMEM((H + 2, W + 2, Cp), jnp.float32),    # h_pad
                pltpu.VMEM((HW, 9 * col_ch), jnp.bfloat16),     # shared im2col buffer
            ],
        ),
        compiler_params=pltpu.CompilerParams(
            dimension_semantics=("parallel",),
            vmem_limit_bytes=vmem_limit,
        ),
        cost_estimate=pl.CostEstimate(
            flops=flops, transcendentals=0, bytes_accessed=bytes_accessed),
    )(*operands)


def reference_residual_block(x, w1, w2, ws):
    """Pure-JAX f32 reference (NHWC / HWIO), mirrors the PyTorch forward exactly."""
    dn = ("NHWC", "HWIO", "NHWC")
    out = jax.lax.conv_general_dilated(x, w1, (1, 1), "SAME", dimension_numbers=dn)
    out = jax.nn.relu(out)
    out = jax.lax.conv_general_dilated(out, w2, (1, 1), "SAME", dimension_numbers=dn)
    sc = jnp.einsum("nhwc,cd->nhwd", x, ws)
    return jax.nn.relu(out + sc)


if __name__ == "__main__":
    key = jax.random.PRNGKey(0)
    kx, k1, k2, ks, kx2, k3, k4 = jax.random.split(key, 7)

    # --- Test 1: projection shortcut (in_planes != out_planes), unaligned channels ---
    N, H, W = 2, 16, 16
    in_planes, out_planes = 4, 8
    x = jax.random.normal(kx, (N, H, W, in_planes), dtype=jnp.float32)
    w1 = jax.random.normal(k1, (3, 3, in_planes, out_planes), dtype=jnp.float32) * 0.1
    w2 = jax.random.normal(k2, (3, 3, out_planes, out_planes), dtype=jnp.float32) * 0.1
    ws = jax.random.normal(ks, (in_planes, out_planes), dtype=jnp.float32) * 0.1

    out = jax.block_until_ready(residual_block(x, w1, w2, ws))
    ref = reference_residual_block(x, w1, w2, ws)
    assert out.shape == (N, H, W, out_planes)
    # bf16 MXU operands vs f32 reference -> tolerance ~1e-2
    assert jnp.allclose(out, ref, atol=3e-2, rtol=3e-2), "projection-shortcut mismatch"

    # --- Test 2: identity shortcut fast path (in_planes == out_planes == 128) ---
    C = 128
    x2 = jax.random.normal(kx2, (1, 8, 8, C), dtype=jnp.float32)
    w1b = jax.random.normal(k3, (3, 3, C, C), dtype=jnp.float32) * 0.03
    w2b = jax.random.normal(k4, (3, 3, C, C), dtype=jnp.float32) * 0.03
    out2 = jax.block_until_ready(residual_block(x2, w1b, w2b, ws=None))
    ref2 = reference_residual_block(x2, w1b, w2b, jnp.eye(C, dtype=jnp.float32))
    assert out2.shape == (1, 8, 8, C)
    # deeper K=1152 bf16 contractions vs f32 reference -> looser tolerance
    assert jnp.allclose(out2, ref2, atol=6e-2, rtol=5e-2), "identity-shortcut mismatch"

    print("KERNEL_OK")
</pallas_src>

<mosaic_0001>
module attributes {stable_mosaic.version = 11 : i64} {
  func.func @residual_block_kernel(%arg0: i32, %arg1: memref<1x16x16x4xf32, #tpu.memory_space<vmem>>, %arg2: memref<1152x128xbf16, #tpu.memory_space<vmem>>, %arg3: memref<1152x128xbf16, #tpu.memory_space<vmem>>, %arg4: memref<4x128xbf16, #tpu.memory_space<vmem>>, %arg5: memref<1x16x16x8xf32, #tpu.memory_space<vmem>>, %arg6: memref<18x18x4xf32, #tpu.memory_space<vmem>>, %arg7: memref<18x18x128xf32, #tpu.memory_space<vmem>>, %arg8: memref<256x1152xbf16, #tpu.memory_space<vmem>>) attributes {dimension_semantics = [#tpu.dimension_semantics<parallel>], iteration_bounds = array<i64: 2>, scalar_prefetch = 0 : i64, scratch_operands = 3 : i64, tpu.core_type = #tpu.core_type<tc>, window_params = [{transform_indices = @transform_0, window_bounds = array<i64: 1, 16, 16, 4>}, {pipeline_mode = #tpu.pipeline_mode<synchronous>, transform_indices = @transform_1, window_bounds = array<i64: 1152, 128>}, {pipeline_mode = #tpu.pipeline_mode<synchronous>, transform_indices = @transform_2, window_bounds = array<i64: 1152, 128>}, {pipeline_mode = #tpu.pipeline_mode<synchronous>, transform_indices = @transform_3, window_bounds = array<i64: 4, 128>}, {transform_indices = @transform_4, window_bounds = array<i64: 1, 16, 16, 8>}]} {
    %cst = arith.constant 0.000000e+00 : f32
    %0 = vector.broadcast %cst : f32 to vector<1x18x4xf32>
    %c0 = arith.constant 0 : index
    %c0_0 = arith.constant 0 : index
    %c0_1 = arith.constant 0 : index
    %1 = vector.load %arg6[%c0, %c0_0, %c0_1] : memref<18x18x4xf32, #tpu.memory_space<vmem>>, vector<1x18x4xf32>
    tpu.vector_store %arg6[%c0, %c0_0, %c0_1], %0 {strides = array<i32>} : memref<18x18x4xf32, #tpu.memory_space<vmem>>, vector<1x18x4xf32>,
    %cst_2 = arith.constant 0.000000e+00 : f32
    %2 = vector.broadcast %cst_2 : f32 to vector<1x18x4xf32>
    %c17 = arith.constant 17 : index
    %c0_3 = arith.constant 0 : index
    %c0_4 = arith.constant 0 : index
    %3 = vector.load %arg6[%c17, %c0_3, %c0_4] : memref<18x18x4xf32, #tpu.memory_space<vmem>>, vector<1x18x4xf32>
    tpu.vector_store %arg6[%c17, %c0_3, %c0_4], %2 {strides = array<i32>} : memref<18x18x4xf32, #tpu.memory_space<vmem>>, vector<1x18x4xf32>,
    %cst_5 = arith.constant 0.000000e+00 : f32
    %4 = vector.broadcast %cst_5 : f32 to vector<16x1x4xf32>
    %c1 = arith.constant 1 : index
    %c0_6 = arith.constant 0 : index
    %c0_7 = arith.constant 0 : index
    %5 = vector.load %arg6[%c1, %c0_6, %c0_7] : memref<18x18x4xf32, #tpu.memory_space<vmem>>, vector<16x1x4xf32>
    tpu.vector_store %arg6[%c1, %c0_6, %c0_7], %4 {strides = array<i32>} : memref<18x18x4xf32, #tpu.memory_space<vmem>>, vector<16x1x4xf32>,
    %cst_8 = arith.constant 0.000000e+00 : f32
    %6 = vector.broadcast %cst_8 : f32 to vector<16x1x4xf32>
    %c1_9 = arith.constant 1 : index
    %c17_10 = arith.constant 17 : index
    %c0_11 = arith.constant 0 : index
    %7 = vector.load %arg6[%c1_9, %c17_10, %c0_11] : memref<18x18x4xf32, #tpu.memory_space<vmem>>, vector<16x1x4xf32>
    tpu.vector_store %arg6[%c1_9, %c17_10, %c0_11], %6 {strides = array<i32>} : memref<18x18x4xf32, #tpu.memory_space<vmem>>, vector<16x1x4xf32>,
    %cst_12 = arith.constant 0.000000e+00 : f32
    %8 = vector.broadcast %cst_12 : f32 to vector<1x18x128xf32>
    %c0_13 = arith.constant 0 : index
    %c0_14 = arith.constant 0 : index
    %c0_15 = arith.constant 0 : index
    %9 = vector.load %arg7[%c0_13, %c0_14, %c0_15] : memref<18x18x128xf32, #tpu.memory_space<vmem>>, vector<1x18x128xf32>
    tpu.vector_store %arg7[%c0_13, %c0_14, %c0_15], %8 {strides = array<i32>} : memref<18x18x128xf32, #tpu.memory_space<vmem>>, vector<1x18x128xf32>,
    %cst_16 = arith.constant 0.000000e+00 : f32
    %10 = vector.broadcast %cst_16 : f32 to vector<1x18x128xf32>
    %c17_17 = arith.constant 17 : index
    %c0_18 = arith.constant 0 : index
    %c0_19 = arith.constant 0 : index
    %11 = vector.load %arg7[%c17_17, %c0_18, %c0_19] : memref<18x18x128xf32, #tpu.memory_space<vmem>>, vector<1x18x128xf32>
    tpu.vector_store %arg7[%c17_17, %c0_18, %c0_19], %10 {strides = array<i32>} : memref<18x18x128xf32, #tpu.memory_space<vmem>>, vector<1x18x128xf32>,
    %cst_20 = arith.constant 0.000000e+00 : f32
    %12 = vector.broadcast %cst_20 : f32 to vector<16x1x128xf32>
    %c1_21 = arith.constant 1 : index
    %c0_22 = arith.constant 0 : index
    %c0_23 = arith.constant 0 : index
    %13 = vector.load %arg7[%c1_21, %c0_22, %c0_23] : memref<18x18x128xf32, #tpu.memory_space<vmem>>, vector<16x1x128xf32>
    tpu.vector_store %arg7[%c1_21, %c0_22, %c0_23], %12 {strides = array<i32>} : memref<18x18x128xf32, #tpu.memory_space<vmem>>, vector<16x1x128xf32>,
    %cst_24 = arith.constant 0.000000e+00 : f32
    %14 = vector.broadcast %cst_24 : f32 to vector<16x1x128xf32>
    %c1_25 = arith.constant 1 : index
    %c17_26 = arith.constant 17 : index
    %c0_27 = arith.constant 0 : index
    %15 = vector.load %arg7[%c1_25, %c17_26, %c0_27] : memref<18x18x128xf32, #tpu.memory_space<vmem>>, vector<16x1x128xf32>
    tpu.vector_store %arg7[%c1_25, %c17_26, %c0_27], %14 {strides = array<i32>} : memref<18x18x128xf32, #tpu.memory_space<vmem>>, vector<16x1x128xf32>,
    %c0_28 = arith.constant 0 : index
    %c0_29 = arith.constant 0 : index
    %c0_30 = arith.constant 0 : index
    %c0_31 = arith.constant 0 : index
    %16 = vector.load %arg1[%c0_28, %c0_29, %c0_30, %c0_31] : memref<1x16x16x4xf32, #tpu.memory_space<vmem>>, vector<1x16x16x4xf32>
    %17 = vector.shape_cast %16 : vector<1x16x16x4xf32> to vector<16x16x4xf32>
    %c1_32 = arith.constant 1 : index
    %c1_33 = arith.constant 1 : index
    %c0_34 = arith.constant 0 : index
    %18 = vector.load %arg6[%c1_32, %c1_33, %c0_34] : memref<18x18x4xf32, #tpu.memory_space<vmem>>, vector<16x16x4xf32>
    tpu.vector_store %arg6[%c1_32, %c1_33, %c0_34], %17 {strides = array<i32>} : memref<18x18x4xf32, #tpu.memory_space<vmem>>, vector<16x16x4xf32>,
    %c0_35 = arith.constant 0 : index
    %c0_36 = arith.constant 0 : index
    %c0_37 = arith.constant 0 : index
    %19 = vector.load %arg6[%c0_35, %c0_36, %c0_37] : memref<18x18x4xf32, #tpu.memory_space<vmem>>, vector<16x16x4xf32>
    %20 = vector.shape_cast %19 : vector<16x16x4xf32> to vector<256x4xf32>
    %21 = arith.truncf %20 : vector<256x4xf32> to vector<256x4xbf16>
    %c0_38 = arith.constant 0 : index
    %c0_39 = arith.constant 0 : index
    %22 = vector.load %arg2[%c0_38, %c0_39] : memref<1152x128xbf16, #tpu.memory_space<vmem>>, vector<4x128xbf16>
    %cst_40 = arith.constant dense<0.000000e+00> : vector<256x128xf32>
    %23 = tpu.matmul %21, %22, %cst_40 {dimension_numbers = #tpu.dot_dimension_numbers<[1], [0], [0], [1], [0, 0, 1, 1], [], []>} : vector<256x4xbf16>, vector<4x128xbf16>, vector<256x128xf32> -> vector<256x128xf32>
    %c0_41 = arith.constant 0 : index
    %c1_42 = arith.constant 1 : index
    %c0_43 = arith.constant 0 : index
    %24 = vector.load %arg6[%c0_41, %c1_42, %c0_43] : memref<18x18x4xf32, #tpu.memory_space<vmem>>, vector<16x16x4xf32>
    %25 = vector.shape_cast %24 : vector<16x16x4xf32> to vector<256x4xf32>
    %26 = arith.truncf %25 : vector<256x4xf32> to vector<256x4xbf16>
    %c128 = arith.constant 128 : index
    %c0_44 = arith.constant 0 : index
    %27 = vector.load %arg2[%c128, %c0_44] : memref<1152x128xbf16, #tpu.memory_space<vmem>>, vector<4x128xbf16>
    %cst_45 = arith.constant dense<0.000000e+00> : vector<256x128xf32>
    %28 = tpu.matmul %26, %27, %cst_45 {dimension_numbers = #tpu.dot_dimension_numbers<[1], [0], [0], [1], [0, 0, 1, 1], [], []>} : vector<256x4xbf16>, vector<4x128xbf16>, vector<256x128xf32> -> vector<256x128xf32>
    %29 = arith.addf %23, %28 : vector<256x128xf32>
    %c0_46 = arith.constant 0 : index
    %c2 = arith.constant 2 : index
    %c0_47 = arith.constant 0 : index
    %30 = vector.load %arg6[%c0_46, %c2, %c0_47] : memref<18x18x4xf32, #tpu.memory_space<vmem>>, vector<16x16x4xf32>
    %31 = vector.shape_cast %30 : vector<16x16x4xf32> to vector<256x4xf32>
    %32 = arith.truncf %31 : vector<256x4xf32> to vector<256x4xbf16>
    %c256 = arith.constant 256 : index
    %c0_48 = arith.constant 0 : index
    %33 = vector.load %arg2[%c256, %c0_48] : memref<1152x128xbf16, #tpu.memory_space<vmem>>, vector<4x128xbf16>
    %cst_49 = arith.constant dense<0.000000e+00> : vector<256x128xf32>
    %34 = tpu.matmul %32, %33, %cst_49 {dimension_numbers = #tpu.dot_dimension_numbers<[1], [0], [0], [1], [0, 0, 1, 1], [], []>} : vector<256x4xbf16>, vector<4x128xbf16>, vector<256x128xf32> -> vector<256x128xf32>
    %35 = arith.addf %29, %34 : vector<256x128xf32>
    %c1_50 = arith.constant 1 : index
    %c0_51 = arith.constant 0 : index
    %c0_52 = arith.constant 0 : index
    %36 = vector.load %arg6[%c1_50, %c0_51, %c0_52] : memref<18x18x4xf32, #tpu.memory_space<vmem>>, vector<16x16x4xf32>
    %37 = vector.shape_cast %36 : vector<16x16x4xf32> to vector<256x4xf32>
    %38 = arith.truncf %37 : vector<256x4xf32> to vector<256x4xbf16>
    %c384 = arith.constant 384 : index
    %c0_53 = arith.constant 0 : index
    %39 = vector.load %arg2[%c384, %c0_53] : memref<1152x128xbf16, #tpu.memory_space<vmem>>, vector<4x128xbf16>
    %cst_54 = arith.constant dense<0.000000e+00> : vector<256x128xf32>
    %40 = tpu.matmul %38, %39, %cst_54 {dimension_numbers = #tpu.dot_dimension_numbers<[1], [0], [0], [1], [0, 0, 1, 1], [], []>} : vector<256x4xbf16>, vector<4x128xbf16>, vector<256x128xf32> -> vector<256x128xf32>
    %41 = arith.addf %35, %40 : vector<256x128xf32>
    %c1_55 = arith.constant 1 : index
    %c1_56 = arith.constant 1 : index
    %c0_57 = arith.constant 0 : index
    %42 = vector.load %arg6[%c1_55, %c1_56, %c0_57] : memref<18x18x4xf32, #tpu.memory_space<vmem>>, vector<16x16x4xf32>
    %43 = vector.shape_cast %42 : vector<16x16x4xf32> to vector<256x4xf32>
    %44 = arith.truncf %43 : vector<256x4xf32> to vector<256x4xbf16>
    %c512 = arith.constant 512 : index
    %c0_58 = arith.constant 0 : index
    %45 = vector.load %arg2[%c512, %c0_58] : memref<1152x128xbf16, #tpu.memory_space<vmem>>, vector<4x128xbf16>
    %cst_59 = arith.constant dense<0.000000e+00> : vector<256x128xf32>
    %46 = tpu.matmul %44, %45, %cst_59 {dimension_numbers = #tpu.dot_dimension_numbers<[1], [0], [0], [1], [0, 0, 1, 1], [], []>} : vector<256x4xbf16>, vector<4x128xbf16>, vector<256x128xf32> -> vector<256x128xf32>
    %47 = arith.addf %41, %46 : vector<256x128xf32>
    %c1_60 = arith.constant 1 : index
    %c2_61 = arith.constant 2 : index
    %c0_62 = arith.constant 0 : index
    %48 = vector.load %arg6[%c1_60, %c2_61, %c0_62] : memref<18x18x4xf32, #tpu.memory_space<vmem>>, vector<16x16x4xf32>
    %49 = vector.shape_cast %48 : vector<16x16x4xf32> to vector<256x4xf32>
    %50 = arith.truncf %49 : vector<256x4xf32> to vector<256x4xbf16>
    %c640 = arith.constant 640 : index
    %c0_63 = arith.constant 0 : index
    %51 = vector.load %arg2[%c640, %c0_63] : memref<1152x128xbf16, #tpu.memory_space<vmem>>, vector<4x128xbf16>
    %cst_64 = arith.constant dense<0.000000e+00> : vector<256x128xf32>
    %52 = tpu.matmul %50, %51, %cst_64 {dimension_numbers = #tpu.dot_dimension_numbers<[1], [0], [0], [1], [0, 0, 1, 1], [], []>} : vector<256x4xbf16>, vector<4x128xbf16>, vector<256x128xf32> -> vector<256x128xf32>
    %53 = arith.addf %47, %52 : vector<256x128xf32>
    %c2_65 = arith.constant 2 : index
    %c0_66 = arith.constant 0 : index
    %c0_67 = arith.constant 0 : index
    %54 = vector.load %arg6[%c2_65, %c0_66, %c0_67] : memref<18x18x4xf32, #tpu.memory_space<vmem>>, vector<16x16x4xf32>
    %55 = vector.shape_cast %54 : vector<16x16x4xf32> to vector<256x4xf32>
    %56 = arith.truncf %55 : vector<256x4xf32> to vector<256x4xbf16>
    %c768 = arith.constant 768 : index
    %c0_68 = arith.constant 0 : index
    %57 = vector.load %arg2[%c768, %c0_68] : memref<1152x128xbf16, #tpu.memory_space<vmem>>, vector<4x128xbf16>
    %cst_69 = arith.constant dense<0.000000e+00> : vector<256x128xf32>
    %58 = tpu.matmul %56, %57, %cst_69 {dimension_numbers = #tpu.dot_dimension_numbers<[1], [0], [0], [1], [0, 0, 1, 1], [], []>} : vector<256x4xbf16>, vector<4x128xbf16>, vector<256x128xf32> -> vector<256x128xf32>
    %59 = arith.addf %53, %58 : vector<256x128xf32>
    %c2_70 = arith.constant 2 : index
    %c1_71 = arith.constant 1 : index
    %c0_72 = arith.constant 0 : index
    %60 = vector.load %arg6[%c2_70, %c1_71, %c0_72] : memref<18x18x4xf32, #tpu.memory_space<vmem>>, vector<16x16x4xf32>
    %61 = vector.shape_cast %60 : vector<16x16x4xf32> to vector<256x4xf32>
    %62 = arith.truncf %61 : vector<256x4xf32> to vector<256x4xbf16>
    %c896 = arith.constant 896 : index
    %c0_73 = arith.constant 0 : index
    %63 = vector.load %arg2[%c896, %c0_73] : memref<1152x128xbf16, #tpu.memory_space<vmem>>, vector<4x128xbf16>
    %cst_74 = arith.constant dense<0.000000e+00> : vector<256x128xf32>
    %64 = tpu.matmul %62, %63, %cst_74 {dimension_numbers = #tpu.dot_dimension_numbers<[1], [0], [0], [1], [0, 0, 1, 1], [], []>} : vector<256x4xbf16>, vector<4x128xbf16>, vector<256x128xf32> -> vector<256x128xf32>
    %65 = arith.addf %59, %64 : vector<256x128xf32>
    %c2_75 = arith.constant 2 : index
    %c2_76 = arith.constant 2 : index
    %c0_77 = arith.constant 0 : index
    %66 = vector.load %arg6[%c2_75, %c2_76, %c0_77] : memref<18x18x4xf32, #tpu.memory_space<vmem>>, vector<16x16x4xf32>
    %67 = vector.shape_cast %66 : vector<16x16x4xf32> to vector<256x4xf32>
    %68 = arith.truncf %67 : vector<256x4xf32> to vector<256x4xbf16>
    %c1024 = arith.constant 1024 : index
    %c0_78 = arith.constant 0 : index
    %69 = vector.load %arg2[%c1024, %c0_78] : memref<1152x128xbf16, #tpu.memory_space<vmem>>, vector<4x128xbf16>
    %cst_79 = arith.constant dense<0.000000e+00> : vector<256x128xf32>
    %70 = tpu.matmul %68, %69, %cst_79 {dimension_numbers = #tpu.dot_dimension_numbers<[1], [0], [0], [1], [0, 0, 1, 1], [], []>} : vector<256x4xbf16>, vector<4x128xbf16>, vector<256x128xf32> -> vector<256x128xf32>
    %71 = arith.addf %65, %70 : vector<256x128xf32>
    %cst_80 = arith.constant 0.000000e+00 : f32
    %72 = vector.broadcast %cst_80 : f32 to vector<256x128xf32>
    %73 = arith.maximumf %71, %72 : vector<256x128xf32>
    %74 = vector.shape_cast %73 : vector<256x128xf32> to vector<16x16x128xf32>
    %c1_81 = arith.constant 1 : index
    %c1_82 = arith.constant 1 : index
    %c0_83 = arith.constant 0 : index
    %75 = vector.load %arg7[%c1_81, %c1_82, %c0_83] : memref<18x18x128xf32, #tpu.memory_space<vmem>>, vector<16x16x128xf32>
    tpu.vector_store %arg7[%c1_81, %c1_82, %c0_83], %74 {strides = array<i32>} : memref<18x18x128xf32, #tpu.memory_space<vmem>>, vector<16x16x128xf32>,
    %c0_84 = arith.constant 0 : index
    %c0_85 = arith.constant 0 : index
    %c0_86 = arith.constant 0 : index
    %76 = vector.load %arg7[%c0_84, %c0_85, %c0_86] : memref<18x18x128xf32, #tpu.memory_space<vmem>>, vector<16x16x128xf32>
    %77 = vector.shape_cast %76 : vector<16x16x128xf32> to vector<256x128xf32>
    %78 = arith.truncf %77 : vector<256x128xf32> to vector<256x128xbf16>
    %c0_87 = arith.constant 0 : index
    %c0_88 = arith.constant 0 : index
    %79 = vector.load %arg8[%c0_87, %c0_88] : memref<256x1152xbf16, #tpu.memory_space<vmem>>, vector<256x128xbf16>
    tpu.vector_store %arg8[%c0_87, %c0_88], %78 {strides = array<i32>} : memref<256x1152xbf16, #tpu.memory_space<vmem>>, vector<256x128xbf16>,
    %c0_89 = arith.constant 0 : index
    %c1_90 = arith.constant 1 : index
    %c0_91 = arith.constant 0 : index
    %80 = vector.load %arg7[%c0_89, %c1_90, %c0_91] : memref<18x18x128xf32, #tpu.memory_space<vmem>>, vector<16x16x128xf32>
    %81 = vector.shape_cast %80 : vector<16x16x128xf32> to vector<256x128xf32>
    %82 = arith.truncf %81 : vector<256x128xf32> to vector<256x128xbf16>
    %c0_92 = arith.constant 0 : index
    %c128_93 = arith.constant 128 : index
    %83 = vector.load %arg8[%c0_92, %c128_93] : memref<256x1152xbf16, #tpu.memory_space<vmem>>, vector<256x128xbf16>
    tpu.vector_store %arg8[%c0_92, %c128_93], %82 {strides = array<i32>} : memref<256x1152xbf16, #tpu.memory_space<vmem>>, vector<256x128xbf16>,
    %c0_94 = arith.constant 0 : index
    %c2_95 = arith.constant 2 : index
    %c0_96 = arith.constant 0 : index
    %84 = vector.load %arg7[%c0_94, %c2_95, %c0_96] : memref<18x18x128xf32, #tpu.memory_space<vmem>>, vector<16x16x128xf32>
    %85 = vector.shape_cast %84 : vector<16x16x128xf32> to vector<256x128xf32>
    %86 = arith.truncf %85 : vector<256x128xf32> to vector<256x128xbf16>
    %c0_97 = arith.constant 0 : index
    %c256_98 = arith.constant 256 : index
    %87 = vector.load %arg8[%c0_97, %c256_98] : memref<256x1152xbf16, #tpu.memory_space<vmem>>, vector<256x128xbf16>
    tpu.vector_store %arg8[%c0_97, %c256_98], %86 {strides = array<i32>} : memref<256x1152xbf16, #tpu.memory_space<vmem>>, vector<256x128xbf16>,
    %c1_99 = arith.constant 1 : index
    %c0_100 = arith.constant 0 : index
    %c0_101 = arith.constant 0 : index
    %88 = vector.load %arg7[%c1_99, %c0_100, %c0_101] : memref<18x18x128xf32, #tpu.memory_space<vmem>>, vector<16x16x128xf32>
    %89 = vector.shape_cast %88 : vector<16x16x128xf32> to vector<256x128xf32>
    %90 = arith.truncf %89 : vector<256x128xf32> to vector<256x128xbf16>
    %c0_102 = arith.constant 0 : index
    %c384_103 = arith.constant 384 : index
    %91 = vector.load %arg8[%c0_102, %c384_103] : memref<256x1152xbf16, #tpu.memory_space<vmem>>, vector<256x128xbf16>
    tpu.vector_store %arg8[%c0_102, %c384_103], %90 {strides = array<i32>} : memref<256x1152xbf16, #tpu.memory_space<vmem>>, vector<256x128xbf16>,
    %c1_104 = arith.constant 1 : index
    %c1_105 = arith.constant 1 : index
    %c0_106 = arith.constant 0 : index
    %92 = vector.load %arg7[%c1_104, %c1_105, %c0_106] : memref<18x18x128xf32, #tpu.memory_space<vmem>>, vector<16x16x128xf32>
    %93 = vector.shape_cast %92 : vector<16x16x128xf32> to vector<256x128xf32>
    %94 = arith.truncf %93 : vector<256x128xf32> to vector<256x128xbf16>
    %c0_107 = arith.constant 0 : index
    %c512_108 = arith.constant 512 : index
    %95 = vector.load %arg8[%c0_107, %c512_108] : memref<256x1152xbf16, #tpu.memory_space<vmem>>, vector<256x128xbf16>
    tpu.vector_store %arg8[%c0_107, %c512_108], %94 {strides = array<i32>} : memref<256x1152xbf16, #tpu.memory_space<vmem>>, vector<256x128xbf16>,
    %c1_109 = arith.constant 1 : index
    %c2_110 = arith.constant 2 : index
    %c0_111 = arith.constant 0 : index
    %96 = vector.load %arg7[%c1_109, %c2_110, %c0_111] : memref<18x18x128xf32, #tpu.memory_space<vmem>>, vector<16x16x128xf32>
    %97 = vector.shape_cast %96 : vector<16x16x128xf32> to vector<256x128xf32>
    %98 = arith.truncf %97 : vector<256x128xf32> to vector<256x128xbf16>
    %c0_112 = arith.constant 0 : index
    %c640_113 = arith.constant 640 : index
    %99 = vector.load %arg8[%c0_112, %c640_113] : memref<256x1152xbf16, #tpu.memory_space<vmem>>, vector<256x128xbf16>
    tpu.vector_store %arg8[%c0_112, %c640_113], %98 {strides = array<i32>} : memref<256x1152xbf16, #tpu.memory_space<vmem>>, vector<256x128xbf16>,
    %c2_114 = arith.constant 2 : index
    %c0_115 = arith.constant 0 : index
    %c0_116 = arith.constant 0 : index
    %100 = vector.load %arg7[%c2_114, %c0_115, %c0_116] : memref<18x18x128xf32, #tpu.memory_space<vmem>>, vector<16x16x128xf32>
    %101 = vector.shape_cast %100 : vector<16x16x128xf32> to vector<256x128xf32>
    %102 = arith.truncf %101 : vector<256x128xf32> to vector<256x128xbf16>
    %c0_117 = arith.constant 0 : index
    %c768_118 = arith.constant 768 : index
    %103 = vector.load %arg8[%c0_117, %c768_118] : memref<256x1152xbf16, #tpu.memory_space<vmem>>, vector<256x128xbf16>
    tpu.vector_store %arg8[%c0_117, %c768_118], %102 {strides = array<i32>} : memref<256x1152xbf16, #tpu.memory_space<vmem>>, vector<256x128xbf16>,
    %c2_119 = arith.constant 2 : index
    %c1_120 = arith.constant 1 : index
    %c0_121 = arith.constant 0 : index
    %104 = vector.load %arg7[%c2_119, %c1_120, %c0_121] : memref<18x18x128xf32, #tpu.memory_space<vmem>>, vector<16x16x128xf32>
    %105 = vector.shape_cast %104 : vector<16x16x128xf32> to vector<256x128xf32>
    %106 = arith.truncf %105 : vector<256x128xf32> to vector<256x128xbf16>
    %c0_122 = arith.constant 0 : index
    %c896_123 = arith.constant 896 : index
    %107 = vector.load %arg8[%c0_122, %c896_123] : memref<256x1152xbf16, #tpu.memory_space<vmem>>, vector<256x128xbf16>
    tpu.vector_store %arg8[%c0_122, %c896_123], %106 {strides = array<i32>} : memref<256x1152xbf16, #tpu.memory_space<vmem>>, vector<256x128xbf16>,
    %c2_124 = arith.constant 2 : index
    %c2_125 = arith.constant 2 : index
    %c0_126 = arith.constant 0 : index
    %108 = vector.load %arg7[%c2_124, %c2_125, %c0_126] : memref<18x18x128xf32, #tpu.memory_space<vmem>>, vector<16x16x128xf32>
    %109 = vector.shape_cast %108 : vector<16x16x128xf32> to vector<256x128xf32>
    %110 = arith.truncf %109 : vector<256x128xf32> to vector<256x128xbf16>
    %c0_127 = arith.constant 0 : index
    %c1024_128 = arith.constant 1024 : index
    %111 = vector.load %arg8[%c0_127, %c1024_128] : memref<256x1152xbf16, #tpu.memory_space<vmem>>, vector<256x128xbf16>
    tpu.vector_store %arg8[%c0_127, %c1024_128], %110 {strides = array<i32>} : memref<256x1152xbf16, #tpu.memory_space<vmem>>, vector<256x128xbf16>,
    %c0_129 = arith.constant 0 : index
    %c0_130 = arith.constant 0 : index
    %112 = vector.load %arg8[%c0_129, %c0_130] : memref<256x1152xbf16, #tpu.memory_space<vmem>>, vector<256x1152xbf16>
    %c0_131 = arith.constant 0 : index
    %c0_132 = arith.constant 0 : index
    %113 = vector.load %arg3[%c0_131, %c0_132] : memref<1152x128xbf16, #tpu.memory_space<vmem>>, vector<1152x128xbf16>
    %cst_133 = arith.constant dense<0.000000e+00> : vector<256x128xf32>
    %114 = tpu.matmul %112, %113, %cst_133 {dimension_numbers = #tpu.dot_dimension_numbers<[1], [0], [0], [1], [0, 0, 1, 1], [], []>} : vector<256x1152xbf16>, vector<1152x128xbf16>, vector<256x128xf32> -> vector<256x128xf32>
    %c1_134 = arith.constant 1 : index
    %c1_135 = arith.constant 1 : index
    %c0_136 = arith.constant 0 : index
    %115 = vector.load %arg6[%c1_134, %c1_135, %c0_136] : memref<18x18x4xf32, #tpu.memory_space<vmem>>, vector<16x16x4xf32>
    %116 = vector.shape_cast %115 : vector<16x16x4xf32> to vector<256x4xf32>
    %117 = arith.truncf %116 : vector<256x4xf32> to vector<256x4xbf16>
    %c0_137 = arith.constant 0 : index
    %c0_138 = arith.constant 0 : index
    %118 = vector.load %arg4[%c0_137, %c0_138] : memref<4x128xbf16, #tpu.memory_space<vmem>>, vector<4x128xbf16>
    %cst_139 = arith.constant dense<0.000000e+00> : vector<256x128xf32>
    %119 = tpu.matmul %117, %118, %cst_139 {dimension_numbers = #tpu.dot_dimension_numbers<[1], [0], [0], [1], [0, 0, 1, 1], [], []>} : vector<256x4xbf16>, vector<4x128xbf16>, vector<256x128xf32> -> vector<256x128xf32>
    %120 = arith.addf %114, %119 : vector<256x128xf32>
    %121 = vector.extract_strided_slice %120 {offsets = [0, 0], sizes = [256, 8], strides = [1, 1]} : vector<256x128xf32> to vector<256x8xf32>
    %cst_140 = arith.constant 0.000000e+00 : f32
    %122 = vector.broadcast %cst_140 : f32 to vector<256x8xf32>
    %123 = arith.maximumf %121, %122 : vector<256x8xf32>
    %124 = vector.shape_cast %123 : vector<256x8xf32> to vector<1x16x16x8xf32>
    %c0_141 = arith.constant 0 : index
    %c0_142 = arith.constant 0 : index
    %c0_143 = arith.constant 0 : index
    %c0_144 = arith.constant 0 : index
    %125 = vector.load %arg5[%c0_141, %c0_142, %c0_143, %c0_144] : memref<1x16x16x8xf32, #tpu.memory_space<vmem>>, vector<1x16x16x8xf32>
    tpu.vector_store %arg5[%c0_141, %c0_142, %c0_143, %c0_144], %124 {strides = array<i32>} : memref<1x16x16x8xf32, #tpu.memory_space<vmem>>, vector<1x16x16x8xf32>,
    return
  }
  func.func @transform_0(%arg0: i32) -> (i32, i32, i32, i32) {
    %c0_i32 = arith.constant 0 : i32
    %c0_i32_0 = arith.constant 0 : i32
    %c0_i32_1 = arith.constant 0 : i32
    %c0_i32_2 = arith.constant 0 : i32
    return %arg0, %c0_i32, %c0_i32_0, %c0_i32_1 : i32, i32, i32, i32
  }
  func.func @transform_1(%arg0: i32) -> (i32, i32) {
    %c0_i32 = arith.constant 0 : i32
    %c0_i32_0 = arith.constant 0 : i32
    %c0_i32_1 = arith.constant 0 : i32
    return %c0_i32, %c0_i32_0 : i32, i32
  }
  func.func @transform_2(%arg0: i32) -> (i32, i32) {
    %c0_i32 = arith.constant 0 : i32
    %c0_i32_0 = arith.constant 0 : i32
    %c0_i32_1 = arith.constant 0 : i32
    return %c0_i32, %c0_i32_0 : i32, i32
  }
  func.func @transform_3(%arg0: i32) -> (i32, i32) {
    %c0_i32 = arith.constant 0 : i32
    %c0_i32_0 = arith.constant 0 : i32
    %c0_i32_1 = arith.constant 0 : i32
    return %c0_i32, %c0_i32_0 : i32, i32
  }
  func.func @transform_4(%arg0: i32) -> (i32, i32, i32, i32) {
    %c0_i32 = arith.constant 0 : i32
    %c0_i32_0 = arith.constant 0 : i32
    %c0_i32_1 = arith.constant 0 : i32
    %c0_i32_2 = arith.constant 0 : i32
    return %arg0, %c0_i32, %c0_i32_0, %c0_i32_1 : i32, i32, i32, i32
  }
}

</mosaic_0001>

<bundles_post_ra>
// kernel: tpu_custom_call.1
= control target key start
LH: loop header
LB: loop body
LE: loop exit
PB: predicated region body
PF: predicated region fallthrough
CT: control target
= control target key end

     0   :  { %9 = vsyncpa [#allocation6], 0  ;;  %s9781_s15 = smov 0   ;;  %s11687_s0 = inlined_call_operand.vmem [shape: f32[2,16,16,4], index: 0, kind: input, shape index: {}]   ;;  %s11688_s1 = inlined_call_operand.vmem [shape: bf16[1152,128], index: 1, kind: input, shape index: {}]   ;;  %s11689_s2 = inlined_call_operand.hbm [shape: bf16[1152,128], index: 2, kind: input, shape index: {}]   ;;  %s11690_s3 = inlined_call_operand.vmem [shape: bf16[4,128], index: 3, kind: input, shape index: {}]   ;;  %s11691_s4 = inlined_call_operand.vmem [shape: f32[2,16,16,8], index: 4, kind: output, shape index: {}]  }
   0x1 LB: > { %s9787_s16 = sadd.s32 4294967295, %s9750_s15   ;;  %p7401_p0 = scmp.ge.s32.totalorder %s9750_s15, 1  ;;  %s9750_s15 = sphi %s9781_s15, %s15_s15  }
   0x2   : > { %p135_p1 = scmp.lt.s32.totalorder %s9750_s15, 3  ;;  %s9752_s17 = smov [#allocation5]  }
   0x3   : > { %s150_s18 = sshll.u32 %s9752_s17, 4  ;;  %p9417_p3 = scmp.eq.s32.totalorder %s9787_s16, 0  ;;  %s151_s18 = int_to_ptr.vmem [resolvable:$true] %s150_s18 }
   0x4   : > { %p9791_p2 = pnand %p7401_p0, %p135_p1  ;;  %s9725_s20 = scalar_lea.vmem %s151_s18, 9216 }
   0x5   : > { %p9726_p7 = scmp.ne.s32.totalorder %s151_s18, %s9725_s20  ;;  %p9733_p10 = scmp.lt.s32.totalorder %s151_s18, %s151_s18 }
   0x6   : > { %p9413_p4 = pneg %p9791_p2  ;;  %p9734_p11 = scmp.lt.s32.totalorder %s9725_s20, %s9725_s20 }
   0x8   : > { %p9414_p5 = pnand %p9417_p3, %p9413_p4  ;;  %p9735_p12 = por %p9734_p11, %p9733_p10 }
   0xa   : > { %p9716_p6 = pneg %p9414_p5 }
   0xc   : > { %p9728_p8 = pnand %p9726_p7, %p9716_p6 }
   0xe   : > { %p9729_p9 = pneg %p9728_p8 }
  0x10   : > { %p9736_p13 = pnand %p9735_p12, %p9729_p9 }
  0x12   : > { %9739 = shalt.err (!%p9736_p13)
}
  0x13   : > { %s9753_s21 = smov 64   ;;  %s9754_s22 = smov 4  }
  0x14   : > { %9416 = dma.hbm_to_vmem [thread:$0]  (!%p9414_p5), %s11689_s2, 9216, %s151_s18, [#allocation6], %s9753_s21, %s9753_s21, %s9754_s22  }
  0x15   : > { %177 = sbr.rel (%p9791_p2) target bundleno = 1083 (0x43b), region = 36 }
  0x1a   : > { %9745 = dma.done.wait (%p9417_p3), [#allocation6], 9216  }
  0x1b   : > { %9747 = vsyncadd (%p9417_p3), [#allocation6], 4294958080  ;;  %vm214_vm0 = vcmask 31744   ;;  %vm217_vm1 = vcmask 25600   ;;  %v9755_v0 = vmov 0.0   ;;  %p203_p0 = scmp.lt.s32.totalorder %s9787_s16, 1 }
  0x1c   : > { %215 = vst.msk [vmem:[#allocation2] sm:$0xff] %vm214_vm0, %v9755_v0  ;;  %216 = vst.msk [vmem:[#allocation2 + $0x8] sm:$0xff] %vm214_vm0, %v9755_v0  ;;  %vm224_vm2 = vcmask 24576   ;;  %vm507_vm3 = vcmask 1041408   ;;  %v458_v1 = vld [vmem:[%s11688_s1 + $0x40] sm:$0x3] }
  0x1d   : > { %218 = vst.msk [vmem:[#allocation2 + $0x10] sm:$0x3] %vm217_vm1, %v9755_v0  ;;  %222 = vst.msk [vmem:[#allocation2 + $0x1a8] sm:$0x3] %vm217_vm1, %v9755_v0  ;;  %s11874_s16 = smov (!%p203_p0, %s9787_s16), 1  ;;  %9398 = vmatprep.subr.msk.bf16.mxu0 %vm507_vm3, %v458_v1  ;;  %9399 = vmatprep.subr.msk.bf16.mxu1 %vm507_vm3, %v458_v1  ;;  %v509_v4 = vsel %vm507_vm3, %v458_v1, 0 }
  0x1e   : > { %220 = vst.msk [vmem:[#allocation2 + $0x198] sm:$0xff] %vm214_vm0, %v9755_v0  ;;  %221 = vst.msk [vmem:[#allocation2 + $0x1a0] sm:$0xff] %vm214_vm0, %v9755_v0  ;;  %s8076_s25 = sshll.u32 %s11874_s16, 8  ;;  %9009 = vmatpush3.bf16.msra.mxu0 %v509_v4  ;;  %9397 = vmatpush3.bf16.msra.mxu1 %v509_v4  ;;  %v409_v10 = vld [vmem:[%s11688_s1] sm:$0x3]  ;;  %vm7299_vm4 = vcmask 64512  }
  0x1f   : > { %257 = vst [vmem:[#allocation3] sm:$0xff] %v9755_v0  ;;  %258 = vst [vmem:[#allocation3 + $0x8] sm:$0xff] %v9755_v0  ;;  %s9933_s28 = scalar_lea.vmem %s11687_s0, %s8076_s25  ;;  %9400 = vmatprep.subr.msk.bf16.mxu1 %vm507_vm3, %v409_v10  ;;  %v932_v13 = vld [vmem:[%s11688_s1 + $0x80] sm:$0x3]  ;;  %v721_v43 = vsel %vm507_vm3, %v409_v10, 0 }
  0x20   : > { %259 = vst [vmem:[#allocation3 + $0x10] sm:$0x3] %v9755_v0  ;;  %261 = vst [vmem:[#allocation3 + $0x198] sm:$0xff] %v9755_v0  ;;  %v297_v2 = vld [vmem:[%s9933_s28] sm:$0xff]  ;;  %v298_v3 = vld [vmem:[%s9933_s28 + $0x8] sm:$0xff]  ;;  %9401 = vmatprep.subr.msk.bf16.mxu0 %vm507_vm3, %v932_v13  ;;  %v982_v32 = vsel %vm507_vm3, %v932_v13, 0 }
  0x21   : > { %262 = vst [vmem:[#allocation3 + $0x1a0] sm:$0xff] %v9755_v0  ;;  %263 = vst [vmem:[#allocation3 + $0x1a8] sm:$0x3] %v9755_v0  ;;  %v311_v7 = vld [vmem:[%s9933_s28 + $0x70] sm:$0xff]  ;;  %v312_v9 = vld [vmem:[%s9933_s28 + $0x78] sm:$0xff] }
  0x22   : > { %265 = vst [vmem:[#allocation3 + $0x18] sm:$0x1] %v9755_v0  ;;  %266 = vst [vmem:[#allocation3 + $0x30] sm:$0x1] %v9755_v0  ;;  %v313_v11 = vld [vmem:[%s9933_s28 + $0x80] sm:$0xff]  ;;  %v314_v12 = vld [vmem:[%s9933_s28 + $0x88] sm:$0xff] }
  0x23   : > { %267 = vst [vmem:[#allocation3 + $0x48] sm:$0x1] %v9755_v0  ;;  %268 = vst [vmem:[#allocation3 + $0x60] sm:$0x1] %v9755_v0  ;;  %v410_v5 = vld [vmem:[#allocation2 + $0x1] sm:$0xff]  ;;  %v299_v14 = vld [vmem:[%s9933_s28 + $0x10] sm:$0xff] }
  0x24   : > { %269 = vst [vmem:[#allocation3 + $0x78] sm:$0x1] %v9755_v0  ;;  %270 = vst [vmem:[#allocation3 + $0x90] sm:$0x1] %v9755_v0  ;;  %v411_v6 = vld [vmem:[#allocation2 + $0x9] sm:$0xff]  ;;  %v300_v15 = vld [vmem:[%s9933_s28 + $0x18] sm:$0xff] }
  0x25   : > { %271 = vst [vmem:[#allocation3 + $0xa8] sm:$0x1] %v9755_v0  ;;  %272 = vst [vmem:[#allocation3 + $0xc0] sm:$0x1] %v9755_v0  ;;  %v442_v8 = vpack.c.bf16 %v411_v6, %v410_v5  ;;  %v301_v16 = vld [vmem:[%s9933_s28 + $0x20] sm:$0xff]  ;;  %v302_v17 = vld [vmem:[%s9933_s28 + $0x28] sm:$0xff] }
  0x26   : > { %273 = vst [vmem:[#allocation3 + $0xd8] sm:$0x1] %v9755_v0  ;;  %274 = vst [vmem:[#allocation3 + $0xf0] sm:$0x1] %v9755_v0  ;;  %v315_v18 = vld [vmem:[%s9933_s28 + $0x90] sm:$0xff]  ;;  %v316_v19 = vld [vmem:[%s9933_s28 + $0x98] sm:$0xff] }
  0x27   : > { %275 = vst [vmem:[#allocation3 + $0x108] sm:$0x1] %v9755_v0  ;;  %276 = vst [vmem:[#allocation3 + $0x120] sm:$0x1] %v9755_v0  ;;  %9010 = vmatprep.mubr.msk.bf16.mxu0 %vm214_vm0, %v442_v8  ;;  %v317_v20 = vld [vmem:[%s9933_s28 + $0xa0] sm:$0xff]  ;;  %v318_v21 = vld [vmem:[%s9933_s28 + $0xa8] sm:$0xff] }
  0x28   : > { %277 = vst [vmem:[#allocation3 + $0x138] sm:$0x1] %v9755_v0  ;;  %278 = vst [vmem:[#allocation3 + $0x150] sm:$0x1] %v9755_v0  ;;  %v303_v22 = vld [vmem:[%s9933_s28 + $0x30] sm:$0xff]  ;;  %v304_v23 = vld [vmem:[%s9933_s28 + $0x38] sm:$0xff] }
  0x29   : > { %279 = vst [vmem:[#allocation3 + $0x168] sm:$0x1] %v9755_v0  ;;  %280 = vst [vmem:[#allocation3 + $0x180] sm:$0x1] %v9755_v0  ;;  %v305_v24 = vld [vmem:[%s9933_s28 + $0x40] sm:$0xff]  ;;  %v306_v25 = vld [vmem:[%s9933_s28 + $0x48] sm:$0xff] }
  0x2a   : > { %281 = vst [vmem:[#allocation3 + $0x29] sm:$0x1] %v9755_v0  ;;  %282 = vst [vmem:[#allocation3 + $0x41] sm:$0x1] %v9755_v0  ;;  %v319_v26 = vld [vmem:[%s9933_s28 + $0xb0] sm:$0xff]  ;;  %v320_v29 = vld [vmem:[%s9933_s28 + $0xb8] sm:$0xff] }
  0x2b   : > { %283 = vst [vmem:[#allocation3 + $0x59] sm:$0x1] %v9755_v0  ;;  %284 = vst [vmem:[#allocation3 + $0x71] sm:$0x1] %v9755_v0  ;;  %v321_v33 = vld [vmem:[%s9933_s28 + $0xc0] sm:$0xff]  ;;  %v322_v34 = vld [vmem:[%s9933_s28 + $0xc8] sm:$0xff] }
  0x2c   : > { %285 = vst [vmem:[#allocation3 + $0x89] sm:$0x1] %v9755_v0  ;;  %286 = vst [vmem:[#allocation3 + $0xa1] sm:$0x1] %v9755_v0  ;;  %v307_v37 = vld [vmem:[%s9933_s28 + $0x50] sm:$0xff]  ;;  %v308_v41 = vld [vmem:[%s9933_s28 + $0x58] sm:$0xff] }
  0x2d   : > { %287 = vst [vmem:[#allocation3 + $0xb9] sm:$0x1] %v9755_v0  ;;  %288 = vst [vmem:[#allocation3 + $0xd1] sm:$0x1] %v9755_v0  ;;  %v309_v59 = vld [vmem:[%s9933_s28 + $0x60] sm:$0xff]  ;;  %v310_v60 = vld [vmem:[%s9933_s28 + $0x68] sm:$0xff] }
  0x2e   : > { %289 = vst [vmem:[#allocation3 + $0xe9] sm:$0x1] %v9755_v0  ;;  %290 = vst [vmem:[#allocation3 + $0x101] sm:$0x1] %v9755_v0  ;;  %v323_v61 = vld [vmem:[%s9933_s28 + $0xd0] sm:$0xff]  ;;  %v324_v63 = vld [vmem:[%s9933_s28 + $0xd8] sm:$0xff] }
  0x2f   : > { %291 = vst [vmem:[#allocation3 + $0x119] sm:$0x1] %v9755_v0  ;;  %292 = vst [vmem:[#allocation3 + $0x131] sm:$0x1] %v9755_v0  ;;  %v1518_v8 = vld [vmem:[%s11688_s1 + $0x100] sm:$0x3] }
  0x30   : > { %293 = vst [vmem:[#allocation3 + $0x149] sm:$0x1] %v9755_v0  ;;  %294 = vst [vmem:[#allocation3 + $0x161] sm:$0x1] %v9755_v0 }
  0x31   : > { %295 = vst [vmem:[#allocation3 + $0x179] sm:$0x1] %v9755_v0  ;;  %296 = vst [vmem:[#allocation3 + $0x191] sm:$0x1] %v9755_v0 }
  0x32   : > { %241 = vst.msk [vmem:[#allocation2 + $0x29] sm:$0x1] %vm224_vm2, %v9755_v0  ;;  %225 = vst.msk [vmem:[#allocation2 + $0x18] sm:$0x1] %vm224_vm2, %v9755_v0 }
  0x33   : > { %226 = vst.msk [vmem:[#allocation2 + $0x30] sm:$0x1] %vm224_vm2, %v9755_v0  ;;  %227 = vst.msk [vmem:[#allocation2 + $0x48] sm:$0x1] %vm224_vm2, %v9755_v0 }
  0x34   : > { %228 = vst.msk [vmem:[#allocation2 + $0x60] sm:$0x1] %vm224_vm2, %v9755_v0  ;;  %229 = vst.msk [vmem:[#allocation2 + $0x78] sm:$0x1] %vm224_vm2, %v9755_v0 }
  0x35   : > { %230 = vst.msk [vmem:[#allocation2 + $0x90] sm:$0x1] %vm224_vm2, %v9755_v0  ;;  %231 = vst.msk [vmem:[#allocation2 + $0xa8] sm:$0x1] %vm224_vm2, %v9755_v0 }
  0x36   : > { %232 = vst.msk [vmem:[#allocation2 + $0xc0] sm:$0x1] %vm224_vm2, %v9755_v0  ;;  %233 = vst.msk [vmem:[#allocation2 + $0xd8] sm:$0x1] %vm224_vm2, %v9755_v0 }
  0x37   : > { %234 = vst.msk [vmem:[#allocation2 + $0xf0] sm:$0x1] %vm224_vm2, %v9755_v0  ;;  %235 = vst.msk [vmem:[#allocation2 + $0x108] sm:$0x1] %vm224_vm2, %v9755_v0 }
  0x38   : > { %236 = vst.msk [vmem:[#allocation2 + $0x120] sm:$0x1] %vm224_vm2, %v9755_v0  ;;  %237 = vst.msk [vmem:[#allocation2 + $0x138] sm:$0x1] %vm224_vm2, %v9755_v0 }
  0x39   : > { %238 = vst.msk [vmem:[#allocation2 + $0x150] sm:$0x1] %vm224_vm2, %v9755_v0  ;;  %239 = vst.msk [vmem:[#allocation2 + $0x168] sm:$0x1] %vm224_vm2, %v9755_v0 }
  0x3a   : > { %240 = vst.msk [vmem:[#allocation2 + $0x180] sm:$0x1] %vm224_vm2, %v9755_v0  ;;  %242 = vst.msk [vmem:[#allocation2 + $0x41] sm:$0x1] %vm224_vm2, %v9755_v0 }
  0x3b   : > { %243 = vst.msk [vmem:[#allocation2 + $0x59] sm:$0x1] %vm224_vm2, %v9755_v0  ;;  %244 = vst.msk [vmem:[#allocation2 + $0x71] sm:$0x1] %vm224_vm2, %v9755_v0 }
  0x3c   : > { %245 = vst.msk [vmem:[#allocation2 + $0x89] sm:$0x1] %vm224_vm2, %v9755_v0  ;;  %246 = vst.msk [vmem:[#allocation2 + $0xa1] sm:$0x1] %vm224_vm2, %v9755_v0 }
  0x3d   : > { %247 = vst.msk [vmem:[#allocation2 + $0xb9] sm:$0x1] %vm224_vm2, %v9755_v0  ;;  %248 = vst.msk [vmem:[#allocation2 + $0xd1] sm:$0x1] %vm224_vm2, %v9755_v0 }
  0x3e   : > { %249 = vst.msk [vmem:[#allocation2 + $0xe9] sm:$0x1] %vm224_vm2, %v9755_v0  ;;  %250 = vst.msk [vmem:[#allocation2 + $0x101] sm:$0x1] %vm224_vm2, %v9755_v0 }
  0x3f   : > { %251 = vst.msk [vmem:[#allocation2 + $0x119] sm:$0x1] %vm224_vm2, %v9755_v0  ;;  %252 = vst.msk [vmem:[#allocation2 + $0x131] sm:$0x1] %vm224_vm2, %v9755_v0 }
  0x40   : > { %253 = vst.msk [vmem:[#allocation2 + $0x149] sm:$0x1] %vm224_vm2, %v9755_v0  ;;  %254 = vst.msk [vmem:[#allocation2 + $0x161] sm:$0x1] %vm224_vm2, %v9755_v0 }
  0x41   : > { %255 = vst.msk [vmem:[#allocation2 + $0x179] sm:$0x1] %vm224_vm2, %v9755_v0  ;;  %256 = vst.msk [vmem:[#allocation2 + $0x191] sm:$0x1] %vm224_vm2, %v9755_v0  ;;  %v325_v0 = vld [vmem:[%s9933_s28 + $0xe0] sm:$0xff] }
  0x42   : > { %329 = vst.msk [vmem:[#allocation2 + $0x19] sm:$0xff] %vm214_vm0, %v297_v2  ;;  %330 = vst.msk [vmem:[#allocation2 + $0x21] sm:$0xff] %vm214_vm0, %v298_v3  ;;  %v326_v2 = vld [vmem:[%s9933_s28 + $0xe8] sm:$0xff] }
  0x43   : > { %343 = vst.msk [vmem:[#allocation2 + $0xc1] sm:$0xff] %vm214_vm0, %v311_v7  ;;  %344 = vst.msk [vmem:[#allocation2 + $0xc9] sm:$0xff] %vm214_vm0, %v312_v9  ;;  %v1225_v7 = vld [vmem:[%s11688_s1 + $0xc0] sm:$0x3] }
  0x44   : > { %345 = vst.msk [vmem:[#allocation2 + $0xd9] sm:$0xff] %vm214_vm0, %v313_v11  ;;  %346 = vst.msk [vmem:[#allocation2 + $0xe1] sm:$0xff] %vm214_vm0, %v314_v12 }
  0x45   : > { %331 = vst.msk [vmem:[#allocation2 + $0x31] sm:$0xff] %vm214_vm0, %v299_v14  ;;  %332 = vst.msk [vmem:[#allocation2 + $0x39] sm:$0xff] %vm214_vm0, %v300_v15 }
  0x46   : > { %333 = vst.msk [vmem:[#allocation2 + $0x49] sm:$0xff] %vm214_vm0, %v301_v16  ;;  %334 = vst.msk [vmem:[#allocation2 + $0x51] sm:$0xff] %vm214_vm0, %v302_v17 }
  0x47   : > { %347 = vst.msk [vmem:[#allocation2 + $0xf1] sm:$0xff] %vm214_vm0, %v315_v18  ;;  %348 = vst.msk [vmem:[#allocation2 + $0xf9] sm:$0xff] %vm214_vm0, %v316_v19  ;;  %v884_v19 = vld [vmem:[#allocation2 + $0x2] sm:$0xff] }
  0x48   : > { %349 = vst.msk [vmem:[#allocation2 + $0x109] sm:$0xff] %vm214_vm0, %v317_v20  ;;  %350 = vst.msk [vmem:[#allocation2 + $0x111] sm:$0xff] %vm214_vm0, %v318_v21  ;;  %v885_v20 = vld [vmem:[#allocation2 + $0xa] sm:$0xff] }
  0x49   : > { %335 = vst.msk [vmem:[#allocation2 + $0x61] sm:$0xff] %vm214_vm0, %v303_v22  ;;  %336 = vst.msk [vmem:[#allocation2 + $0x69] sm:$0xff] %vm214_vm0, %v304_v23  ;;  %v412_v27 = vld [vmem:[#allocation2 + $0x19] sm:$0xff]  ;;  %v413_v28 = vld [vmem:[#allocation2 + $0x21] sm:$0xff] }
  0x4a   : > { %337 = vst.msk [vmem:[#allocation2 + $0x79] sm:$0xff] %vm214_vm0, %v305_v24  ;;  %338 = vst.msk [vmem:[#allocation2 + $0x81] sm:$0xff] %vm214_vm0, %v306_v25  ;;  %v9989_v30 = vpack.c.bf16 %v413_v28, %v412_v27  ;;  %v426_v31 = vld [vmem:[#allocation2 + $0xc1] sm:$0xff]  ;;  %v427_v35 = vld [vmem:[#allocation2 + $0xc9] sm:$0xff]  ;;  %v916_v24 = vpack.c.bf16 %v885_v20, %v884_v19 }
  0x4b   : > { %351 = vst.msk [vmem:[#allocation2 + $0x121] sm:$0xff] %vm214_vm0, %v319_v26  ;;  %352 = vst.msk [vmem:[#allocation2 + $0x129] sm:$0xff] %vm214_vm0, %v320_v29  ;;  %v428_v36 = vld [vmem:[#allocation2 + $0xd9] sm:$0xff]  ;;  %v10000_v38 = vpack.c.bf16 %v427_v35, %v426_v31  ;;  %v429_v39 = vld [vmem:[#allocation2 + $0xe1] sm:$0xff] }
  0x4c   : > { %353 = vst.msk [vmem:[#allocation2 + $0x139] sm:$0xff] %vm214_vm0, %v321_v33  ;;  %354 = vst.msk [vmem:[#allocation2 + $0x141] sm:$0xff] %vm214_vm0, %v322_v34  ;;  %9011 = vmatmul.mubr.msk.bf16.vlgmr.msra.gmra.mxu0 %vm214_vm0, %v9989_v30  ;;  %v414_v40 = vld [vmem:[#allocation2 + $0x31] sm:$0xff]  ;;  %v10004_v42 = vpack.c.bf16 %v429_v39, %v428_v36  ;;  %v415_v44 = vld [vmem:[#allocation2 + $0x39] sm:$0xff] }
  0x4d   : > { %339 = vst.msk [vmem:[#allocation2 + $0x91] sm:$0xff] %vm214_vm0, %v307_v37  ;;  %9077 = vmatpush3.bf16.msra.mxu0 %v982_v32  ;;  %v416_v45 = vld [vmem:[#allocation2 + $0x49] sm:$0xff]  ;;  %v417_v46 = vld [vmem:[#allocation2 + $0x51] sm:$0xff]  ;;  %340 = vst.msk [vmem:[#allocation2 + $0x99] sm:$0xff] %vm214_vm0, %v308_v41  ;;  %9026 = vmatprep.mubr.msk.bf16.mxu1 %vm214_vm0, %v10000_v38  ;;  %v10010_v47 = vpack.c.bf16 %v415_v44, %v414_v40  ;;  %v1568_v41 = vsel %vm507_vm3, %v1518_v8, 0 }
  0x4e   : > { %v430_v48 = vld [vmem:[#allocation2 + $0xf1] sm:$0xff]  ;;  %v431_v49 = vld [vmem:[#allocation2 + $0xf9] sm:$0xff]  ;;  %9027 = vmatmul.mubr.msk.bf16.vlgmr.msra.gmra.mxu1 %vm214_vm0, %v10004_v42  ;;  %v10018_v53 = vpack.c.bf16 %v417_v46, %v416_v45  ;;  %341 = vst.msk [vmem:[#allocation2 + $0xa9] sm:$0xff] %vm214_vm0, %v309_v59  ;;  %342 = vst.msk [vmem:[#allocation2 + $0xb1] sm:$0xff] %vm214_vm0, %v310_v60  ;;  %9403 = vmatprep.subr.msk.bf16.mxu0 %vm507_vm3, %v1518_v8 }
  0x4f   : > { %v10014_v50 = vpack.c.bf16 %v431_v49, %v430_v48  ;;  %9043 = vmatpush3.bf16.msra.mxu1 %v721_v43  ;;  %9014 = vmatprep.mubr.msk.bf16.mxu0 %vm214_vm0, %v10010_v47  ;;  %v432_v54 = vld [vmem:[#allocation2 + $0x109] sm:$0xff]  ;;  %v433_v55 = vld [vmem:[#allocation2 + $0x111] sm:$0xff]  ;;  %355 = vst.msk [vmem:[#allocation2 + $0x151] sm:$0xff] %vm214_vm0, %v323_v61  ;;  %356 = vst.msk [vmem:[#allocation2 + $0x159] sm:$0xff] %vm214_vm0, %v324_v63  ;;  %v1275_v49 = vsel %vm507_vm3, %v1225_v7, 0 }
  0x50   : > { %v418_v51 = vld [vmem:[#allocation2 + $0x61] sm:$0xff]  ;;  %v419_v52 = vld [vmem:[#allocation2 + $0x69] sm:$0xff]  ;;  %v10029_v62 = vpack.c.bf16 %v433_v55, %v432_v54  ;;  %357 = vst.msk [vmem:[#allocation2 + $0x169] sm:$0xff] %vm214_vm0, %v325_v0  ;;  %358 = vst.msk [vmem:[#allocation2 + $0x171] sm:$0xff] %vm214_vm0, %v326_v2  ;;  %9402 = vmatprep.subr.msk.bf16.mxu1 %vm507_vm3, %v1225_v7 }
  0x51   : > { %9030 = vmatprep.mubr.msk.bf16.mxu1 %vm214_vm0, %v10014_v50  ;;  %v10022_v57 = vpack.c.bf16 %v419_v52, %v418_v51  ;;  %v420_v3 = vld [vmem:[#allocation2 + $0x79] sm:$0xff]  ;;  %v421_v4 = vld [vmem:[#allocation2 + $0x81] sm:$0xff]  ;;  %v365_v39 = vld [vmem:[#allocation2 + $0x30] sm:$0xff] }
  0x52   : > { %v434_v56 = vld [vmem:[#allocation2 + $0x121] sm:$0xff]  ;;  %v435_v58 = vld [vmem:[#allocation2 + $0x129] sm:$0xff]  ;;  %v10053_v9 = vpack.c.bf16 %v421_v4, %v420_v3  ;;  %v888_v32 = vld [vmem:[#allocation2 + $0x32] sm:$0xff] }
  0x53   : > { %v10036_v1 = vpack.c.bf16 %v435_v58, %v434_v56  ;;  %v436_v10 = vld [vmem:[#allocation2 + $0x139] sm:$0xff]  ;;  %v437_v11 = vld [vmem:[#allocation2 + $0x141] sm:$0xff]  ;;  %v890_v45 = vld [vmem:[#allocation2 + $0x4a] sm:$0xff] }
  0x54   : > { %9015 = vmatmul.mubr.msk.bf16.gmra.mxu0 %vm214_vm0, %v10018_v53  ;;  %v422_v5 = vld [vmem:[#allocation2 + $0x91] sm:$0xff]  ;;  %v423_v6 = vld [vmem:[#allocation2 + $0x99] sm:$0xff]  ;;  %v10060_v14 = vpack.c.bf16 %v437_v11, %v436_v10  ;;  %v362_v26 = vld [vmem:[#allocation2 + $0x8] sm:$0xff] }
  0x55   : > { %9018 = vmatprep.mubr.msk.bf16.mxu0 %vm214_vm0, %v10022_v57  ;;  %v10058_v12 = vpack.c.bf16 %v423_v6, %v422_v5  ;;  %v424_v17 = vld [vmem:[#allocation2 + $0xa9] sm:$0xff]  ;;  %v425_v18 = vld [vmem:[#allocation2 + $0xb1] sm:$0xff]  ;;  %v361_v25 = vld [vmem:[#allocation2] sm:$0xff] }
  0x56   : > { %9031 = vmatmul.mubr.msk.bf16.gmra.mxu1 %vm214_vm0, %v10029_v62  ;;  %v438_v13 = vld [vmem:[#allocation2 + $0x151] sm:$0xff]  ;;  %v439_v15 = vld [vmem:[#allocation2 + $0x159] sm:$0xff]  ;;  %v10070_v21 = vpack.c.bf16 %v425_v18, %v424_v17  ;;  %v393_v28 = vpack.c.bf16 %v362_v26, %v361_v25  ;;  %v887_v31 = vld [vmem:[#allocation2 + $0x22] sm:$0xff] }
  0x57   : > { %9034 = vmatprep.mubr.msk.bf16.mxu1 %vm214_vm0, %v10036_v1  ;;  %v10064_v16 = vpack.c.bf16 %v439_v15, %v438_v13  ;;  %v440_v22 = vld [vmem:[#allocation2 + $0x169] sm:$0xff]  ;;  %v441_v23 = vld [vmem:[#allocation2 + $0x171] sm:$0xff]  ;;  %v886_v29 = vld [vmem:[#allocation2 + $0x1a] sm:$0xff] }
  0x58   : > { %v10074_v27 = vpack.c.bf16 %v441_v23, %v440_v22  ;;  %v889_v33 = vld [vmem:[#allocation2 + $0x3a] sm:$0xff]  ;;  %v10082_v34 = vpack.c.bf16 %v887_v31, %v886_v29  ;;  %v891_v46 = vld [vmem:[#allocation2 + $0x52] sm:$0xff]  ;;  %v892_v48 = vld [vmem:[#allocation2 + $0x62] sm:$0xff] }
  0x59   : > { %v363_v35 = vld [vmem:[#allocation2 + $0x18] sm:$0xff]  ;;  %v364_v36 = vld [vmem:[#allocation2 + $0x20] sm:$0xff]  ;;  %v10084_v37 = vpack.c.bf16 %v889_v33, %v888_v32  ;;  %v327_v52 = vld [vmem:[%s9933_s28 + $0xf0] sm:$0xff]  ;;  %v10116_v60 = vpack.c.bf16 %v891_v46, %v890_v45 }
  0x5a   : > { %v366_v40 = vld [vmem:[#allocation2 + $0x38] sm:$0xff]  ;;  %v10087_v43 = vpack.c.bf16 %v364_v36, %v363_v35  ;;  %v10099_v51 = vld [vmem:[%s11688_s1 + $0x180] sm:$0x3]  ;;  %v367_v55 = vld [vmem:[#allocation2 + $0x48] sm:$0xff]  ;;  %359 = vst.msk [vmem:[#allocation2 + $0x181] sm:$0xff] %vm214_vm0, %v327_v52 }
  0x5b   : > { %v10091_v44 = vpack.c.bf16 %v366_v40, %v365_v39  ;;  %v328_v54 = vld [vmem:[%s9933_s28 + $0xf8] sm:$0xff]  ;;  %v893_v56 = vld [vmem:[#allocation2 + $0x6a] sm:$0xff]  ;;  %v10106_v58 = vld [vmem:[%s11688_s1 + $0x140] sm:$0x3]  ;;  %s11513_s28 = scalar_lea.vmem %s11691_s4, %s8076_s25 }
  0x5c   : > { %9019 = vmatmul.mubr.msk.bf16.gmra.mxu0 %vm214_vm0, %v10053_v9  ;;  %360 = vst.msk [vmem:[#allocation2 + $0x189] sm:$0xff] %vm214_vm0, %v328_v54  ;;  %v368_v59 = vld [vmem:[#allocation2 + $0x50] sm:$0xff]  ;;  %v369_v61 = vld [vmem:[#allocation2 + $0x60] sm:$0xff]  ;;  %v10118_v63 = vpack.c.bf16 %v893_v56, %v892_v48  ;;  %v370_v0 = vld [vmem:[#allocation2 + $0x68] sm:$0xff] }
  0x5d   : > { %9022 = vmatprep.mubr.msk.bf16.mxu0 %vm214_vm0, %v10058_v12  ;;  %v10122_v2 = vpack.c.bf16 %v368_v59, %v367_v55  ;;  %v10126_v3 = vpack.c.bf16 %v370_v0, %v369_v61  ;;  %v894_v4 = vld [vmem:[#allocation2 + $0x7a] sm:$0xff]  ;;  %v895_v5 = vld [vmem:[#allocation2 + $0x82] sm:$0xff]  ;;  %v896_v6 = vld [vmem:[#allocation2 + $0x92] sm:$0xff] }
  0x5e   : > { %9035 = vmatmul.mubr.msk.bf16.gmra.mxu1 %vm214_vm0, %v10060_v14  ;;  %v371_v7 = vld [vmem:[#allocation2 + $0x78] sm:$0xff]  ;;  %v372_v8 = vld [vmem:[#allocation2 + $0x80] sm:$0xff]  ;;  %v373_v11 = vld [vmem:[#allocation2 + $0x90] sm:$0xff]  ;;  %v10134_v15 = vpack.c.bf16 %v895_v5, %v894_v4 }
  0x5f   : > { %9038 = vmatprep.mubr.msk.bf16.mxu1 %vm214_vm0, %v10064_v16  ;;  %v897_v10 = vld [vmem:[#allocation2 + $0x9a] sm:$0xff]  ;;  %v10138_v18 = vpack.c.bf16 %v372_v8, %v371_v7  ;;  %v898_v19 = vld [vmem:[#allocation2 + $0xaa] sm:$0xff]  ;;  %v899_v20 = vld [vmem:[#allocation2 + $0xb2] sm:$0xff] }
  0x60   : > { %v374_v13 = vld [vmem:[#allocation2 + $0x98] sm:$0xff]  ;;  %v10136_v17 = vpack.c.bf16 %v897_v10, %v896_v6  ;;  %v900_v23 = vld [vmem:[#allocation2 + $0xc2] sm:$0xff]  ;;  %v376_v26 = vld [vmem:[#allocation2 + $0xb0] sm:$0xff]  ;;  %v10150_v31 = vpack.c.bf16 %v899_v20, %v898_v19 }
  0x61   : > { %v10142_v22 = vpack.c.bf16 %v374_v13, %v373_v11  ;;  %v375_v25 = vld [vmem:[#allocation2 + $0xa8] sm:$0xff]  ;;  %v902_v35 = vld [vmem:[#allocation2 + $0xda] sm:$0xff]  ;;  %v904_v40 = vld [vmem:[#allocation2 + $0xf2] sm:$0xff] }
  0x62   : > { %v378_v29 = vld [vmem:[#allocation2 + $0xc8] sm:$0xff]  ;;  %v10154_v33 = vpack.c.bf16 %v376_v26, %v375_v25  ;;  %v379_v45 = vld [vmem:[#allocation2 + $0xd8] sm:$0xff]  ;;  %v380_v46 = vld [vmem:[#allocation2 + $0xe0] sm:$0xff] }
  0x63   : > { %v903_v36 = vld [vmem:[#allocation2 + $0xe2] sm:$0xff]  ;;  %v381_v48 = vld [vmem:[#allocation2 + $0xf0] sm:$0xff]  ;;  %v10170_v55 = vpack.c.bf16 %v380_v46, %v379_v45  ;;  %v910_v19 = vld [vmem:[#allocation2 + $0x13a] sm:$0xff] }
  0x64   : > { %9023 = vmatmul.mubr.msk.bf16.gmra.mxu0 %vm214_vm0, %v10070_v21  ;;  %v10166_v52 = vpack.c.bf16 %v903_v36, %v902_v35  ;;  %v906_v56 = vld [vmem:[#allocation2 + $0x10a] sm:$0xff]  ;;  %v907_v59 = vld [vmem:[#allocation2 + $0x112] sm:$0xff]  ;;  %v908_v0 = vld [vmem:[#allocation2 + $0x122] sm:$0xff] }
  0x65   : > { %9078 = vmatprep.mubr.msk.bf16.mxu0 %vm214_vm0, %v916_v24  ;;  %v901_v24 = vld [vmem:[#allocation2 + $0xca] sm:$0xff]  ;;  %v385_v7 = vld [vmem:[#allocation2 + $0x120] sm:$0xff]  ;;  %v10182_v10 = vpack.c.bf16 %v907_v59, %v906_v56  ;;  %v387_v26 = vld [vmem:[#allocation2 + $0x138] sm:$0xff] }
  0x66   : > { %9039 = vmatmul.mubr.msk.bf16.gmra.mxu1 %vm214_vm0, %v10074_v27  ;;  %v10152_v32 = vpack.c.bf16 %v901_v24, %v900_v23  ;;  %v909_v4 = vld [vmem:[#allocation2 + $0x12a] sm:$0xff]  ;;  %v911_v20 = vld [vmem:[#allocation2 + $0x142] sm:$0xff]  ;;  %v912_v24 = vld [vmem:[#allocation2 + $0x152] sm:$0xff] }
  0x67   : > { %9044 = vmatprep.mubr.msk.bf16.mxu1 %vm214_vm0, %v393_v28  ;;  %v377_v28 = vld [vmem:[#allocation2 + $0xc0] sm:$0xff]  ;;  %v383_v5 = vld [vmem:[#allocation2 + $0x108] sm:$0xff]  ;;  %v384_v6 = vld [vmem:[#allocation2 + $0x110] sm:$0xff]  ;;  %v10184_v11 = vpack.c.bf16 %v909_v4, %v908_v0  ;;  %v10198_v36 = vpack.c.bf16 %v911_v20, %v910_v19  ;;  %v2155_v4 = vsel %vm507_vm3, %v10099_v51, 0 }
  0x68   : > { %v10158_v39 = vpack.c.bf16 %v378_v29, %v377_v28  ;;  %v386_v8 = vld [vmem:[#allocation2 + $0x128] sm:$0xff]  ;;  %v10186_v13 = vpack.c.bf16 %v384_v6, %v383_v5  ;;  %v913_v25 = vld [vmem:[#allocation2 + $0x15a] sm:$0xff]  ;;  %v389_v29 = vld [vmem:[#allocation2 + $0x150] sm:$0xff]  ;;  %v1861_v6 = vsel %vm507_vm3, %v10106_v58, 0 }
  0x69   : > { %v10190_v23 = vpack.c.bf16 %v386_v8, %v385_v7  ;;  %v388_v28 = vld [vmem:[#allocation2 + $0x140] sm:$0xff]  ;;  %v390_v35 = vld [vmem:[#allocation2 + $0x158] sm:$0xff]  ;;  %v914_v45 = vld [vmem:[#allocation2 + $0x16a] sm:$0xff] }
  0x6a   : > { %v915_v46 = vld [vmem:[#allocation2 + $0x172] sm:$0xff]  ;;  %v2691_v5 = vld [vmem:[%s11688_s1 + $0x200] sm:$0x3]  ;;  %v1793_v20 = vld [vmem:[#allocation2 + $0x182] sm:$0xff] }
  0x6b   : > { %v392_v56 = vld [vmem:[#allocation2 + $0x170] sm:$0xff]  ;;  %v10214_v59 = vpack.c.bf16 %v915_v46, %v914_v45 }
  0x6c   : > { %9079 = vmatmul.mubr.msk.bf16.vlgmr.msra.gmra.mxu0 %vm214_vm0, %v10082_v34 }
  0x6d   : > { %9145 = vmatpush3.bf16.msra.mxu0 %v1568_v41  ;;  %9082 = vmatprep.mubr.msk.bf16.mxu0 %vm214_vm0, %v10084_v37  ;;  %v905_v41 = vld [vmem:[#allocation2 + $0xfa] sm:$0xff] }
  0x6e   : > { %9405 = vmatprep.subr.msk.bf16.mxu0 %vm507_vm3, %v10099_v51  ;;  %9045 = vmatmul.mubr.msk.bf16.vlgmr.msra.gmra.mxu1 %vm214_vm0, %v10087_v43  ;;  %v10168_v54 = vpack.c.bf16 %v905_v41, %v904_v40  ;;  %v10200_v40 = vpack.c.bf16 %v913_v25, %v912_v24  ;;  %v10202_v41 = vpack.c.bf16 %v388_v28, %v387_v26  ;;  %v2350_v25 = vld [vmem:[#allocation2 + $0x31] sm:$0xff]  ;;  %v2351_v26 = vld [vmem:[#allocation2 + $0x39] sm:$0xff] }
  0x6f   : > { %9111 = vmatpush3.bf16.msra.mxu1 %v1275_v49  ;;  %9048 = vmatprep.mubr.msk.bf16.mxu1 %vm214_vm0, %v10091_v44  ;;  %v382_v49 = vld [vmem:[#allocation2 + $0xf8] sm:$0xff]  ;;  %v10411_v45 = vpack.c.bf16 %v2351_v26, %v2350_v25 }
  0x70   : > { %9404 = vmatprep.subr.msk.bf16.mxu1 %vm507_vm3, %v10106_v58  ;;  %v10174_v61 = vpack.c.bf16 %v382_v49, %v381_v48  ;;  %v10206_v48 = vpack.c.bf16 %v390_v35, %v389_v29  ;;  %v391_v49 = vld [vmem:[#allocation2 + $0x168] sm:$0xff]  ;;  %v2359_v25 = vld [vmem:[#allocation2 + $0x99] sm:$0xff] }
  0x71   : > { %v10216_v0 = vpack.c.bf16 %v392_v56, %v391_v49 }
  0x74   : > { %9083 = vmatmul.mubr.msk.bf16.gmra.mxu0 %vm214_vm0, %v10116_v60 }
  0x75   : > { %9086 = vmatprep.mubr.msk.bf16.mxu0 %vm214_vm0, %v10118_v63 }
  0x76   : > { %9049 = vmatmul.mubr.msk.bf16.gmra.mxu1 %vm214_vm0, %v10122_v2 }
  0x77   : > { %9052 = vmatprep.mubr.msk.bf16.mxu1 %vm214_vm0, %v10126_v3 }
  0x7c   : > { %9087 = vmatmul.mubr.msk.bf16.gmra.mxu0 %vm214_vm0, %v10134_v15 }
  0x7d   : > { %9090 = vmatprep.mubr.msk.bf16.mxu0 %vm214_vm0, %v10136_v17 }
  0x7e   : > { %9053 = vmatmul.mubr.msk.bf16.gmra.mxu1 %vm214_vm0, %v10138_v18 }
  0x7f   : > { %9056 = vmatprep.mubr.msk.bf16.mxu1 %vm214_vm0, %v10142_v22 }
  0x84   : > { %9091 = vmatmul.mubr.msk.bf16.gmra.mxu0 %vm214_vm0, %v10150_v31 }
  0x85   : > { %9094 = vmatprep.mubr.msk.bf16.mxu0 %vm214_vm0, %v10152_v32 }
  0x86   : > { %9057 = vmatmul.mubr.msk.bf16.gmra.mxu1 %vm214_vm0, %v10154_v33 }
  0x87   : > { %9060 = vmatprep.mubr.msk.bf16.mxu1 %vm214_vm0, %v10158_v39 }
  0x8c   : > { %9095 = vmatmul.mubr.msk.bf16.gmra.mxu0 %vm214_vm0, %v10166_v52 }
  0x8d   : > { %9098 = vmatprep.mubr.msk.bf16.mxu0 %vm214_vm0, %v10168_v54 }
  0x8e   : > { %9061 = vmatmul.mubr.msk.bf16.gmra.mxu1 %vm214_vm0, %v10170_v55 }
  0x8f   : > { %9064 = vmatprep.mubr.msk.bf16.mxu1 %vm214_vm0, %v10174_v61 }
  0x94   : > { %9099 = vmatmul.mubr.msk.bf16.gmra.mxu0 %vm214_vm0, %v10182_v10 }
  0x95   : > { %9102 = vmatprep.mubr.msk.bf16.mxu0 %vm214_vm0, %v10184_v11 }
  0x96   : > { %9065 = vmatmul.mubr.msk.bf16.gmra.mxu1 %vm214_vm0, %v10186_v13 }
  0x97   : > { %9068 = vmatprep.mubr.msk.bf16.mxu1 %vm214_vm0, %v10190_v23 }
  0x9c   : > { %9103 = vmatmul.mubr.msk.bf16.gmra.mxu0 %vm214_vm0, %v10198_v36 }
  0x9d   : > { %9106 = vmatprep.mubr.msk.bf16.mxu0 %vm214_vm0, %v10200_v40 }
  0x9e   : > { %9069 = vmatmul.mubr.msk.bf16.gmra.mxu1 %vm214_vm0, %v10202_v41 }
  0x9f   : > { %9072 = vmatprep.mubr.msk.bf16.mxu1 %vm214_vm0, %v10206_v48 }
  0xa4   : > { %9107 = vmatmul.mubr.msk.bf16.gmra.mxu0 %vm214_vm0, %v10214_v59 }
  0xa5   : > { %9146 = vmatprep.mubr.msk.bf16.mxu0 %vm214_vm0, %v9989_v30  ;;  %v2398_v30 = vld [vmem:[%s11688_s1 + $0x1c0] sm:$0x3] }
  0xa6   : > { %9073 = vmatmul.mubr.msk.bf16.gmra.mxu1 %vm214_vm0, %v10216_v0 }
  0xa7   : > { %9112 = vmatprep.mubr.msk.bf16.mxu1 %vm214_vm0, %v10087_v43 }
  0xac   : > { %9147 = vmatmul.mubr.msk.bf16.vlgmr.msra.gmra.mxu0 %vm214_vm0, %v10010_v47 }
  0xad   : > { %9213 = vmatpush3.bf16.msra.mxu0 %v2155_v4  ;;  %9150 = vmatprep.mubr.msk.bf16.mxu0 %vm214_vm0, %v10018_v53  ;;  %v1208_v53 = vld [vmem:[#allocation2 + $0x188] sm:$0xff]  ;;  %v2353_v4 = vld [vmem:[#allocation2 + $0x51] sm:$0xff] }
  0xae   : > { %9407 = vmatprep.subr.msk.bf16.mxu0 %vm507_vm3, %v2691_v5  ;;  %9113 = vmatmul.mubr.msk.bf16.vlgmr.msra.gmra.mxu1 %vm214_vm0, %v10091_v44 }
  0xaf   : > { %9179 = vmatpush3.bf16.msra.mxu1 %v1861_v6  ;;  %9116 = vmatprep.mubr.msk.bf16.mxu1 %vm214_vm0, %v10122_v2  ;;  %v2354_v6 = vld [vmem:[#allocation2 + $0x61] sm:$0xff] }
  0xb0   : > { %9406 = vmatprep.subr.msk.bf16.mxu1 %vm507_vm3, %v2398_v30 }
  0xb4   : > { %9151 = vmatmul.mubr.msk.bf16.gmra.mxu0 %vm214_vm0, %v10022_v57 }
  0xb5   : > { %9154 = vmatprep.mubr.msk.bf16.mxu0 %vm214_vm0, %v10053_v9 }
  0xb6   : > { %9117 = vmatmul.mubr.msk.bf16.gmra.mxu1 %vm214_vm0, %v10126_v3 }
  0xb7   : > { %9120 = vmatprep.mubr.msk.bf16.mxu1 %vm214_vm0, %v10138_v18 }
  0xbc   : > { %9155 = vmatmul.mubr.msk.bf16.gmra.mxu0 %vm214_vm0, %v10058_v12 }
  0xbd   : > { %9158 = vmatprep.mubr.msk.bf16.mxu0 %vm214_vm0, %v10070_v21 }
  0xbe   : > { %9121 = vmatmul.mubr.msk.bf16.gmra.mxu1 %vm214_vm0, %v10142_v22 }
  0xbf   : > { %9124 = vmatprep.mubr.msk.bf16.mxu1 %vm214_vm0, %v10154_v33 }
  0xc4   : > { %9159 = vmatmul.mubr.msk.bf16.gmra.mxu0 %vm214_vm0, %v10000_v38  ;;  %v1500_v38 = vld [vmem:[#allocation2 + $0x181] sm:$0xff] }
  0xc5   : > { %9162 = vmatprep.mubr.msk.bf16.mxu0 %vm214_vm0, %v10004_v42  ;;  %v1501_v42 = vld [vmem:[#allocation2 + $0x189] sm:$0xff] }
  0xc6   : > { %9125 = vmatmul.mubr.msk.bf16.gmra.mxu1 %vm214_vm0, %v10158_v39  ;;  %v10294_v47 = vpack.c.bf16 %v1501_v42, %v1500_v38 }
  0xc7   : > { %9128 = vmatprep.mubr.msk.bf16.mxu1 %vm214_vm0, %v10170_v55 }
  0xcc   : > { %9163 = vmatmul.mubr.msk.bf16.gmra.mxu0 %vm214_vm0, %v10014_v50  ;;  %v1207_v50 = vld [vmem:[#allocation2 + $0x180] sm:$0xff] }
  0xcd   : > { %9166 = vmatprep.mubr.msk.bf16.mxu0 %vm214_vm0, %v10029_v62  ;;  %v1224_v57 = vpack.c.bf16 %v1208_v53, %v1207_v50  ;;  %v2741_v62 = vsel %vm507_vm3, %v2691_v5, 0 }
  0xce   : > { %9129 = vmatmul.mubr.msk.bf16.gmra.mxu1 %vm214_vm0, %v10174_v61 }
  0xcf   : > { %9132 = vmatprep.mubr.msk.bf16.mxu1 %vm214_vm0, %v10186_v13 }
  0xd4   : > { %9167 = vmatmul.mubr.msk.bf16.gmra.mxu0 %vm214_vm0, %v10036_v1  ;;  %v2448_v1 = vsel %vm507_vm3, %v2398_v30, 0  ;;  %v2355_v30 = vld [vmem:[#allocation2 + $0x69] sm:$0xff] }
  0xd5   : > { %9170 = vmatprep.mubr.msk.bf16.mxu0 %vm214_vm0, %v10060_v14  ;;  %v10437_v53 = vpack.c.bf16 %v2355_v30, %v2354_v6 }
  0xd6   : > { %9133 = vmatmul.mubr.msk.bf16.gmra.mxu1 %vm214_vm0, %v10190_v23 }
  0xd7   : > { %9136 = vmatprep.mubr.msk.bf16.mxu1 %vm214_vm0, %v10202_v41  ;;  %11698 = vst [vmem:[#allocation9_spill] sm:$0xff] %v10437_v53 }
  0xdc   : > { %9171 = vmatmul.mubr.msk.bf16.gmra.mxu0 %vm214_vm0, %v10064_v16 }
  0xdd   : > { %9174 = vmatprep.mubr.msk.bf16.mxu0 %vm214_vm0, %v10074_v27 }
  0xde   : > { %9137 = vmatmul.mubr.msk.bf16.gmra.mxu1 %vm214_vm0, %v10206_v48 }
  0xdf   : > { %9140 = vmatprep.mubr.msk.bf16.mxu1 %vm214_vm0, %v10216_v0 }
  0xe4   : > { %9175 = vmatmul.mubr.msk.bf16.gmra.mxu0 %vm214_vm0, %v10294_v47 }
  0xe5   : > { %9214 = vmatprep.mubr.msk.bf16.mxu0 %vm214_vm0, %v10091_v44 }
  0xe6   : > { %9141 = vmatmul.mubr.msk.bf16.gmra.mxu1 %vm214_vm0, %v1224_v57 }
  0xe7   : > { %9180 = vmatprep.mubr.msk.bf16.mxu1 %vm214_vm0, %v10082_v34 }
  0xec   : > { %9215 = vmatmul.mubr.msk.bf16.vlgmr.msra.gmra.mxu0 %vm214_vm0, %v10122_v2 }
  0xed   : > { %9281 = vmatpush3.bf16.msra.mxu0 %v2741_v62  ;;  %9218 = vmatprep.mubr.msk.bf16.mxu0 %vm214_vm0, %v10126_v3 }
  0xee   : > { %9181 = vmatmul.mubr.msk.bf16.vlgmr.msra.gmra.mxu1 %vm214_vm0, %v10084_v37 }
  0xef   : > { %9247 = vmatpush3.bf16.msra.mxu1 %v2448_v1  ;;  %9184 = vmatprep.mubr.msk.bf16.mxu1 %vm214_vm0, %v10116_v60 }
  0xf4   : > { %9219 = vmatmul.mubr.msk.bf16.gmra.mxu0 %vm214_vm0, %v10138_v18 }
  0xf5   : > { %9222 = vmatprep.mubr.msk.bf16.mxu0 %vm214_vm0, %v10142_v22 }
  0xf6   : > { %9185 = vmatmul.mubr.msk.bf16.gmra.mxu1 %vm214_vm0, %v10118_v63 }
  0xf7   : > { %9188 = vmatprep.mubr.msk.bf16.mxu1 %vm214_vm0, %v10134_v15 }
  0xfc   : > { %9223 = vmatmul.mubr.msk.bf16.gmra.mxu0 %vm214_vm0, %v10154_v33 }
  0xfd   : > { %9226 = vmatprep.mubr.msk.bf16.mxu0 %vm214_vm0, %v10158_v39 }
  0xfe   : > { %9189 = vmatmul.mubr.msk.bf16.gmra.mxu1 %vm214_vm0, %v10136_v17 }
  0xff   : > { %9192 = vmatprep.mubr.msk.bf16.mxu1 %vm214_vm0, %v10150_v31 }
 0x104   : > { %9227 = vmatmul.mubr.msk.bf16.gmra.mxu0 %vm214_vm0, %v10170_v55  ;;  %v2087_v55 = vld [vmem:[#allocation2 + $0x198] sm:$0xff] }
 0x105   : > { %9230 = vmatprep.mubr.msk.bf16.mxu0 %vm214_vm0, %v10174_v61  ;;  %v2088_v61 = vld [vmem:[#allocation2 + $0x1a0] sm:$0xff] }
 0x106   : > { %9193 = vmatmul.mubr.msk.bf16.gmra.mxu1 %vm214_vm0, %v10152_v32  ;;  %v2104_v19 = vpack.c.bf16 %v2088_v61, %v2087_v55 }
 0x107   : > { %9196 = vmatprep.mubr.msk.bf16.mxu1 %vm214_vm0, %v10166_v52 }
 0x10c   : > { %v10337_v9 = vpop.f32.mrf.mxu0  ;;  %9231 = vmatmul.mubr.msk.bf16.gmra.mxu0 %vm214_vm0, %v10186_v13 }
 0x10d   : > { %9234 = vmatprep.mubr.msk.bf16.mxu0 %vm214_vm0, %v10190_v23  ;;  %v1794_v23 = vld [vmem:[#allocation2 + $0x18a] sm:$0xff] }
 0x10e   : > { %v10343_v12 = vpop.f32.mrf.mxu0  ;;  %v10345_v14 = vpop.f32.mrf.mxu1  ;;  %9197 = vmatmul.mubr.msk.bf16.gmra.mxu1 %vm214_vm0, %v10168_v54  ;;  %v10406_v35 = vpack.c.bf16 %v1794_v23, %v1793_v20  ;;  %v2358_v23 = vld [vmem:[#allocation2 + $0x91] sm:$0xff] }
 0x10f   : > { %9200 = vmatprep.mubr.msk.bf16.mxu1 %vm214_vm0, %v10182_v10 }
 0x110   : > { %v10349_v16 = vpop.f32.mrf.mxu0  ;;  %v10353_v21 = vpop.f32.mrf.mxu1 }
 0x112   : > { %v10355_v27 = vpop.f32.mrf.mxu0  ;;  %v10357_v34 = vpop.f32.mrf.mxu1 }
 0x114   : > { %v10359_v43 = vpop.f32.mrf.mxu0  ;;  %9235 = vmatmul.mubr.msk.bf16.gmra.mxu0 %vm214_vm0, %v10202_v41  ;;  %v10363_v44 = vpop.f32.mrf.mxu1 }
 0x115   : > { %9238 = vmatprep.mubr.msk.bf16.mxu0 %vm214_vm0, %v10206_v48 }
 0x116   : > { %v10367_v51 = vpop.f32.mrf.mxu0  ;;  %v10369_v58 = vpop.f32.mrf.mxu1  ;;  %9201 = vmatmul.mubr.msk.bf16.gmra.mxu1 %vm214_vm0, %v10184_v11 }
 0x117   : > { %9204 = vmatprep.mubr.msk.bf16.mxu1 %vm214_vm0, %v10198_v36 }
 0x118   : > { %v10373_v2 = vpop.f32.mrf.mxu0  ;;  %v10377_v3 = vpop.f32.mrf.mxu1 }
 0x11a   : > { %v10379_v18 = vpop.f32.mrf.mxu0  ;;  %v10381_v22 = vpop.f32.mrf.mxu1 }
 0x11c   : > { %v10383_v33 = vpop.f32.mrf.mxu0  ;;  %9239 = vmatmul.mubr.msk.bf16.gmra.mxu0 %vm214_vm0, %v10216_v0  ;;  %v10387_v39 = vpop.f32.mrf.mxu1  ;;  %v2352_v0 = vld [vmem:[#allocation2 + $0x49] sm:$0xff] }
 0x11d   : > { %9242 = vmatprep.mubr.msk.bf16.mxu0 %vm214_vm0, %v1224_v57  ;;  %v10433_v42 = vpack.c.bf16 %v2353_v4, %v2352_v0 }
 0x11e   : > { %v10390_v7 = vpop.f32.mrf.mxu0  ;;  %v10392_v8 = vpop.f32.mrf.mxu1  ;;  %9205 = vmatmul.mubr.msk.bf16.gmra.mxu1 %vm214_vm0, %v10200_v40 }
 0x11f   : > { %9208 = vmatprep.mubr.msk.bf16.mxu1 %vm214_vm0, %v10214_v59  ;;  %11697 = vst [vmem:[#allocation8_spill] sm:$0xff] %v10433_v42 }
 0x120   : > { %v10396_v13 = vpop.f32.mrf.mxu0  ;;  %v10400_v24 = vpop.f32.mrf.mxu1 }
 0x122   : > { %v10402_v28 = vpop.f32.mrf.mxu0  ;;  %v10404_v29 = vpop.f32.mrf.mxu1 }
 0x124   : > { %v10408_v41 = vpop.f32.mrf.mxu0  ;;  %9243 = vmatmul.mubr.msk.bf16.gmra.mxu0 %vm214_vm0, %v2104_v19  ;;  %v10413_v46 = vpop.f32.mrf.mxu1  ;;  %v2356_v19 = vld [vmem:[#allocation2 + $0x79] sm:$0xff] }
 0x125   : > { %9282 = vmatprep.mubr.msk.bf16.mxu0 %vm214_vm0, %v10084_v37 }
 0x126   : > { %v10417_v48 = vpop.f32.mrf.mxu0  ;;  %v10419_v49 = vpop.f32.mrf.mxu1  ;;  %9209 = vmatmul.mubr.msk.bf16.gmra.mxu1 %vm214_vm0, %v10406_v35 }
 0x127   : > { %9248 = vmatprep.mubr.msk.bf16.mxu1 %vm214_vm0, %v10411_v45 }
 0x128   : > { %v10423_v56 = vpop.f32.mrf.mxu0  ;;  %v10427_v5 = vpop.f32.mrf.mxu1 }
 0x12a   : > { %v10429_v38 = vpop.f32.mrf.mxu0  ;;  %v10431_v37 = vpop.f32.mrf.mxu1 }
 0x12c   : > { %v9080_v50 = vpop.f32.mrf.mxu0  ;;  %9283 = vmatmul.mubr.msk.bf16.vlgmr.msra.gmra.mxu0 %vm214_vm0, %v10116_v60  ;;  %v10439_v57 = vpop.f32.mrf.mxu1  ;;  %v2357_v60 = vld [vmem:[#allocation2 + $0x81] sm:$0xff] }
 0x12d   : > { %9286 = vmatprep.mubr.msk.bf16.mxu0 %vm214_vm0, %v10118_v63  ;;  %v10451_v6 = vpack.c.bf16 %v2357_v60, %v2356_v19  ;;  %v2361_v60 = vld [vmem:[#allocation2 + $0xb1] sm:$0xff] }
 0x12e   : > { %v1018_v62 = vpop.f32.mrf.mxu0  ;;  %v9046_v1 = vpop.f32.mrf.mxu1  ;;  %9249 = vmatmul.mubr.msk.bf16.vlgmr.msra.gmra.mxu1 %vm214_vm0, %v10433_v42 }
 0x12f   : > { %v766_v55 = vadd.f32 %v9046_v1, %v10337_v9  ;;  %9252 = vmatprep.mubr.msk.bf16.mxu1 %vm214_vm0, %v10437_v53  ;;  %v10456_v1 = vpack.c.bf16 %v2359_v25, %v2358_v23  ;;  %v2362_v23 = vld [vmem:[#allocation2 + $0xc1] sm:$0xff] }
 0x130   : > { %v9081_v61 = vpop.f32.mrf.mxu0  ;;  %v757_v20 = vpop.f32.mrf.mxu1 }
 0x131   : > { %v758_v26 = vadd.f32 %v757_v20, %v10343_v12  ;;  %v10449_v63 = vadd.f32 %v9080_v50, %v766_v55 }
 0x132   : > { %v1021_v0 = vpop.f32.mrf.mxu0  ;;  %v9047_v4 = vpop.f32.mrf.mxu1 }
 0x133   : > { %v769_v30 = vadd.f32 %v9047_v4, %v10349_v16  ;;  %v10458_v53 = vadd.f32 %v1018_v62, %v758_v26  ;;  %v2360_v62 = vld [vmem:[#allocation2 + $0xa9] sm:$0xff] }
 0x134   : > { %v9084_v9 = vpop.f32.mrf.mxu0  ;;  %9287 = vmatmul.mubr.msk.bf16.gmra.mxu0 %vm214_vm0, %v10134_v15  ;;  %v760_v42 = vpop.f32.mrf.mxu1  ;;  %v10475_v4 = vpack.c.bf16 %v2361_v60, %v2360_v62  ;;  %v2365_v60 = vld [vmem:[#allocation2 + $0xe1] sm:$0xff] }
 0x135   : > { %9290 = vmatprep.mubr.msk.bf16.mxu0 %vm214_vm0, %v10136_v17  ;;  %v761_v12 = vadd.f32 %v760_v42, %v10355_v27  ;;  %v10463_v55 = vadd.f32 %v9081_v61, %v769_v30  ;;  %v2363_v27 = vld [vmem:[#allocation2 + $0xc9] sm:$0xff] }
 0x136   : > { %v1034_v50 = vpop.f32.mrf.mxu0  ;;  %v9050_v19 = vpop.f32.mrf.mxu1  ;;  %9253 = vmatmul.mubr.msk.bf16.gmra.mxu1 %vm214_vm0, %v10451_v6 }
 0x137   : > { %v782_v16 = vadd.f32 %v9050_v19, %v10359_v43  ;;  %9256 = vmatprep.mubr.msk.bf16.mxu1 %vm214_vm0, %v10456_v1  ;;  %v10470_v20 = vadd.f32 %v1021_v0, %v761_v12  ;;  %v10480_v19 = vpack.c.bf16 %v2363_v27, %v2362_v23  ;;  %v2366_v23 = vld [vmem:[#allocation2 + $0xf1] sm:$0xff] }
 0x138   : > { %v9085_v15 = vpop.f32.mrf.mxu0  ;;  %v773_v17 = vpop.f32.mrf.mxu1 }
 0x139   : > { %v774_v42 = vadd.f32 %v773_v17, %v10367_v51  ;;  %v10473_v25 = vadd.f32 %v9084_v9, %v782_v16 }
 0x13a   : > { %v1037_v61 = vpop.f32.mrf.mxu0  ;;  %v9051_v26 = vpop.f32.mrf.mxu1 }
 0x13b   : > { %v785_v43 = vadd.f32 %v9051_v26, %v10373_v2  ;;  %v10482_v0 = vadd.f32 %v1034_v50, %v774_v42  ;;  %v2364_v50 = vld [vmem:[#allocation2 + $0xd9] sm:$0xff] }
 0x13c   : > { %v9088_v30 = vpop.f32.mrf.mxu0  ;;  %9291 = vmatmul.mubr.msk.bf16.gmra.mxu0 %vm214_vm0, %v10150_v31  ;;  %v776_v12 = vpop.f32.mrf.mxu1 }
 0x13d   : > { %9294 = vmatprep.mubr.msk.bf16.mxu0 %vm214_vm0, %v10152_v32  ;;  %v777_v51 = vadd.f32 %v776_v12, %v10379_v18  ;;  %v10487_v16 = vadd.f32 %v9085_v15, %v785_v43  ;;  %v2367_v18 = vld [vmem:[#allocation2 + $0xf9] sm:$0xff]  ;;  %v10499_v43 = vpack.c.bf16 %v2365_v60, %v2364_v50 }
 0x13e   : > { %v1050_v9 = vpop.f32.mrf.mxu0  ;;  %v9054_v62 = vpop.f32.mrf.mxu1  ;;  %9257 = vmatmul.mubr.msk.bf16.gmra.mxu1 %vm214_vm0, %v10475_v4 }
 0x13f   : > { %v798_v2 = vadd.f32 %v9054_v62, %v10383_v33  ;;  %9260 = vmatprep.mubr.msk.bf16.mxu1 %vm214_vm0, %v10480_v19  ;;  %v10494_v17 = vadd.f32 %v1037_v61, %v777_v51  ;;  %11699 = vst [vmem:[#allocation10_spill] sm:$0xff] %v10499_v43  ;;  %v10504_v62 = vpack.c.bf16 %v2367_v18, %v2366_v23  ;;  %v2370_v18 = vld [vmem:[#allocation2 + $0x121] sm:$0xff] }
 0x140   : > { %v9089_v31 = vpop.f32.mrf.mxu0  ;;  %v789_v32 = vpop.f32.mrf.mxu1 }
 0x141   : > { %v790_v15 = vadd.f32 %v789_v32, %v10390_v7  ;;  %v10497_v42 = vadd.f32 %v9088_v30, %v798_v2  ;;  %11700 = vst [vmem:[#allocation11_spill] sm:$0xff] %v10504_v62  ;;  %v5081_v7 = vld [vmem:[%s11690_s3] sm:$0x3]  ;;  %v2369_v32 = vld [vmem:[#allocation2 + $0x111] sm:$0xff] }
 0x142   : > { %v1053_v27 = vpop.f32.mrf.mxu0  ;;  %v9055_v26 = vpop.f32.mrf.mxu1  ;;  %9408 = vmatprep.subr.msk.bf16.mxu1 %vm507_vm3, %v5081_v7 }
 0x143   : > { %v801_v33 = vadd.f32 %v9055_v26, %v10396_v13  ;;  %v10506_v61 = vadd.f32 %v1050_v9, %v790_v15  ;;  %v2371_v15 = vld [vmem:[#allocation2 + $0x129] sm:$0xff] }
 0x144   : > { %v9092_v12 = vpop.f32.mrf.mxu0  ;;  %9295 = vmatmul.mubr.msk.bf16.gmra.mxu0 %vm214_vm0, %v10166_v52  ;;  %v792_v51 = vpop.f32.mrf.mxu1  ;;  %v5131_v52 = vsel %vm507_vm3, %v5081_v7, 0 }
 0x145   : > { %9298 = vmatprep.mubr.msk.bf16.mxu0 %vm214_vm0, %v10168_v54  ;;  %v793_v13 = vadd.f32 %v792_v51, %v10402_v28  ;;  %v10515_v2 = vadd.f32 %v9089_v31, %v801_v33  ;;  %v2368_v54 = vld [vmem:[#allocation2 + $0x109] sm:$0xff]  ;;  %9315 = vmatpush3.bf16.msra.mxu1 %v5131_v52  ;;  %v9431_v28 = vld [vmem:[#allocation5 + $0x78] sm:$0xff]  }
 0x146   : > { %v1066_v30 = vpop.f32.mrf.mxu0  ;;  %v9058_v50 = vpop.f32.mrf.mxu1  ;;  %9261 = vmatmul.mubr.msk.bf16.gmra.mxu1 %vm214_vm0, %v10499_v43  ;;  %8536 = vmatprep.subr.bf16.mxu0 %v9431_v28 }
 0x147   : > { %v814_v9 = vadd.f32 %v9058_v50, %v10408_v41  ;;  %9264 = vmatprep.mubr.msk.bf16.mxu1 %vm214_vm0, %v10504_v62  ;;  %v10523_v23 = vadd.f32 %v1053_v27, %v793_v13  ;;  %v9432_v41 = vld [vmem:[#allocation5 + $0x38] sm:$0xff]   ;;  %v2391_v50 = vpack.c.bf16 %v2369_v32, %v2368_v54  ;;  %v2392_v27 = vpack.c.bf16 %v2371_v15, %v2370_v18 }
 0x148   : > { %v9093_v60 = vpop.f32.mrf.mxu0  ;;  %v805_v31 = vpop.f32.mrf.mxu1  ;;  %8537 = vmatpush3.bf16.msra.mxu0 %v9432_v41  ;;  %v2374_v18 = vld [vmem:[#allocation2 + $0x151] sm:$0xff]  ;;  %v2375_v15 = vld [vmem:[#allocation2 + $0x159] sm:$0xff] }
 0x149   : > { %v806_v26 = vadd.f32 %v805_v31, %v10417_v48  ;;  %v10526_v7 = vadd.f32 %v9092_v12, %v814_v9  ;;  %v9433_v31 = vld [vmem:[#allocation5 + $0x70] sm:$0xff]  }
 0x14a   : > { %v1069_v33 = vpop.f32.mrf.mxu0  ;;  %v9059_v51 = vpop.f32.mrf.mxu1  ;;  %8538 = vmatprep.subr.bf16.mxu0 %v9433_v31 }
 0x14b   : > { %v817_v62 = vadd.f32 %v9059_v51, %v10423_v56  ;;  %v10531_v13 = vadd.f32 %v1066_v30, %v806_v26  ;;  %v2373_v30 = vld [vmem:[#allocation2 + $0x141] sm:$0xff]  ;;  %v9434_v26 = vld [vmem:[#allocation5 + $0x30] sm:$0xff]  }
 0x14c   : > { %v9096_v43 = vpop.f32.mrf.mxu0  ;;  %9299 = vmatmul.mubr.msk.bf16.gmra.mxu0 %vm214_vm0, %v10182_v10  ;;  %v808_v52 = vpop.f32.mrf.mxu1  ;;  %v2372_v10 = vld [vmem:[#allocation2 + $0x139] sm:$0xff] }
 0x14d   : > { %9302 = vmatprep.mubr.msk.bf16.mxu0 %vm214_vm0, %v10184_v11  ;;  %v809_v48 = vadd.f32 %v808_v52, %v10429_v38  ;;  %v10536_v9 = vadd.f32 %v9093_v60, %v817_v62  ;;  %8539 = vmatpush3.bf16.msra.mxu0 %v9434_v26 }
 0x14e   : > { %v1082_v12 = vpop.f32.mrf.mxu0  ;;  %v9062_v54 = vpop.f32.mrf.mxu1  ;;  %9265 = vmatmul.mubr.msk.bf16.gmra.mxu1 %vm214_vm0, %v2391_v50 }
 0x14f   : > { %v830_v56 = vadd.f32 %v9062_v54, %v10345_v14  ;;  %9268 = vmatprep.mubr.msk.bf16.mxu1 %vm214_vm0, %v2392_v27  ;;  %v10541_v28 = vadd.f32 %v1069_v33, %v809_v48  ;;  %v2393_v14 = vpack.c.bf16 %v2373_v30, %v2372_v10  ;;  %v2394_v33 = vpack.c.bf16 %v2375_v15, %v2374_v18  ;;  %v9435_v30 = vld [vmem:[#allocation5 + $0x68] sm:$0xff]  }
 0x150   : > { %v9097_v32 = vpop.f32.mrf.mxu0  ;;  %v821_v11 = vpop.f32.mrf.mxu1  ;;  %8540 = vmatprep.subr.bf16.mxu0 %v9435_v30  ;;  %v9438_v30 = vld [vmem:[#allocation5 + $0x20] sm:$0xff]  }
 0x151   : > { %v822_v38 = vadd.f32 %v821_v11, %v10353_v21  ;;  %v10544_v60 = vadd.f32 %v9096_v43, %v830_v56  ;;  %v9436_v11 = vld [vmem:[#allocation5 + $0x28] sm:$0xff]  }
 0x152   : > { %v1085_v62 = vpop.f32.mrf.mxu0  ;;  %v9063_v41 = vpop.f32.mrf.mxu1  ;;  %8541 = vmatpush3.bf16.msra.mxu0 %v9436_v11 }
 0x153   : > { %v833_v51 = vadd.f32 %v9063_v41, %v10357_v34  ;;  %v10549_v27 = vadd.f32 %v1082_v12, %v822_v38  ;;  %v2377_v12 = vld [vmem:[#allocation2 + $0x171] sm:$0xff]  ;;  %v2674_v41 = vld [vmem:[#allocation2 + $0x1a2] sm:$0xff] }
 0x154   : > { %v9100_v50 = vpop.f32.mrf.mxu0  ;;  %9303 = vmatmul.mubr.msk.bf16.gmra.mxu0 %vm214_vm0, %v10198_v36  ;;  %v824_v52 = vpop.f32.mrf.mxu1  ;;  %v2376_v36 = vld [vmem:[#allocation2 + $0x169] sm:$0xff] }
 0x155   : > { %9306 = vmatprep.mubr.msk.bf16.mxu0 %vm214_vm0, %v10200_v40  ;;  %v825_v21 = vadd.f32 %v824_v52, %v10363_v44  ;;  %v10554_v48 = vadd.f32 %v9097_v32, %v833_v51  ;;  %v2395_v15 = vpack.c.bf16 %v2377_v12, %v2376_v36  ;;  %v2380_v52 = vld [vmem:[#allocation2 + $0x199] sm:$0xff] }
 0x156   : > { %v1098_v43 = vpop.f32.mrf.mxu0  ;;  %v9066_v54 = vpop.f32.mrf.mxu1  ;;  %9269 = vmatmul.mubr.msk.bf16.gmra.mxu1 %vm214_vm0, %v2393_v14 }
 0x157   : > { %v846_v34 = vadd.f32 %v9066_v54, %v10369_v58  ;;  %9272 = vmatprep.mubr.msk.bf16.mxu1 %vm214_vm0, %v2394_v33  ;;  %v10559_v10 = vadd.f32 %v1085_v62, %v825_v21 }
 0x158   : > { %v9101_v56 = vpop.f32.mrf.mxu0  ;;  %v837_v40 = vpop.f32.mrf.mxu1 }
 0x159   : > { %v838_v31 = vadd.f32 %v837_v40, %v10377_v3  ;;  %v10564_v32 = vadd.f32 %v9100_v50, %v846_v34  ;;  %v2673_v3 = vld [vmem:[#allocation2 + $0x19a] sm:$0xff] }
 0x15a   : > { %v10562_v44 = vpop.f32.mrf.mxu0  ;;  %v9067_v18 = vpop.f32.mrf.mxu1  ;;  %v2690_v21 = vpack.c.bf16 %v2674_v41, %v2673_v3  ;;  %v5033_v34 = vld [vmem:[#allocation2 + $0x19] sm:$0xff] }
 0x15b   : > { %v849_v58 = vadd.f32 %v9067_v18, %v10381_v22  ;;  %v10569_v62 = vadd.f32 %v1098_v43, %v838_v31  ;;  %v9437_v43 = vld [vmem:[#allocation5 + $0x60] sm:$0xff]   ;;  %v9439_v41 = vld [vmem:[#allocation5 + $0x58] sm:$0xff]  }
 0x15c   : > { %v9104_v38 = vpop.f32.mrf.mxu0  ;;  %9307 = vmatmul.mubr.msk.bf16.gmra.mxu0 %vm214_vm0, %v10214_v59  ;;  %v840_v26 = vpop.f32.mrf.mxu1  ;;  %8542 = vmatprep.subr.bf16.mxu0 %v9437_v43 }
 0x15d   : > { %9310 = vmatprep.mubr.msk.bf16.mxu0 %vm214_vm0, %v10406_v35  ;;  %v10574_v14 = vadd.f32 %v840_v26, %v10387_v39  ;;  %v10576_v50 = vadd.f32 %v9101_v56, %v849_v58  ;;  %v2381_v35 = vld [vmem:[#allocation2 + $0x1a1] sm:$0xff]  ;;  %8543 = vmatpush3.bf16.msra.mxu0 %v9438_v30 }
 0x15e   : > { %v1114_v51 = vpop.f32.mrf.mxu0  ;;  %v9070_v22 = vpop.f32.mrf.mxu1  ;;  %9273 = vmatmul.mubr.msk.bf16.gmra.mxu1 %vm214_vm0, %v2395_v15  ;;  %v5034_v39 = vld [vmem:[#allocation2 + $0x21] sm:$0xff]  ;;  %v2397_v40 = vpack.c.bf16 %v2381_v35, %v2380_v52  ;;  %8544 = vmatprep.subr.bf16.mxu0 %v9439_v41 }
 0x15f   : > { %v862_v59 = vadd.f32 %v9070_v22, %v10392_v8  ;;  %9276 = vmatprep.mubr.msk.bf16.mxu1 %vm214_vm0, %v10294_v47  ;;  %v5065_v18 = vpack.c.bf16 %v5034_v39, %v5033_v34 }
 0x160   : > { %v9105_v33 = vpop.f32.mrf.mxu0  ;;  %v853_v54 = vpop.f32.mrf.mxu1 }
 0x161   : > { %v854_v36 = vadd.f32 %v853_v54, %v10400_v24  ;;  %v10585_v12 = vadd.f32 %v9104_v38, %v862_v59 }
 0x162   : > { %v10583_v56 = vpop.f32.mrf.mxu0  ;;  %v9071_v8 = vpop.f32.mrf.mxu1 }
 0x163   : > { %v865_v31 = vadd.f32 %v9071_v8, %v10404_v29  ;;  %v10589_v11 = vadd.f32 %v1114_v51, %v854_v36  ;;  %v9443_v36 = vld [vmem:[#allocation5 + $0xf8] sm:$0xff]   ;;  %v9442_v8 = vld [vmem:[#allocation5 + $0x10] sm:$0xff]  }
 0x164   : > { %v9108_v47 = vpop.f32.mrf.mxu0  ;;  %9311 = vmatmul.mubr.msk.bf16.gmra.mxu0 %vm214_vm0, %v2690_v21  ;;  %v856_v15 = vpop.f32.mrf.mxu1  ;;  %8648 = vmatprep.subr.bf16.mxu1 %v9443_v36 }
 0x165   : > { %v10592_v24 = vadd.f32 %v856_v15, %v10413_v46  ;;  %v10594_v38 = vadd.f32 %v9105_v33, %v865_v31  ;;  %v9440_v46 = vld [vmem:[#allocation5 + $0x18] sm:$0xff]  }
 0x166   : > { %v1130_v58 = vpop.f32.mrf.mxu0  ;;  %v9074_v26 = vpop.f32.mrf.mxu1  ;;  %9277 = vmatmul.mubr.msk.bf16.gmra.mxu1 %vm214_vm0, %v2397_v40  ;;  %8545 = vmatpush3.bf16.msra.mxu0 %v9440_v46  ;;  %v9444_v40 = vld [vmem:[#allocation5 + $0xb8] sm:$0xff]  }
 0x167   : > { %v878_v3 = vadd.f32 %v9074_v26, %v10419_v49  ;;  %9316 = vmatprep.mubr.msk.bf16.mxu1 %vm214_vm0, %v5065_v18  ;;  %v11701_v18 = vld [vmem:[#allocation8_spill] sm:$0xff] }
 0x168   : > { %v9109_v29 = vpop.f32.mrf.mxu0  ;;  %v869_v51 = vpop.f32.mrf.mxu1 }
 0x169   : > { %v870_v22 = vadd.f32 %v869_v51, %v10427_v5  ;;  %v10602_v52 = vadd.f32 %v9108_v47, %v878_v3  ;;  %v9441_v5 = vld [vmem:[#allocation5 + $0x50] sm:$0xff]  }
 0x16a   : > { %v10600_v59 = vpop.f32.mrf.mxu0  ;;  %v9075_v33 = vpop.f32.mrf.mxu1  ;;  %8546 = vmatprep.subr.bf16.mxu0 %v9441_v5 }
 0x16b   : > { %v881_v35 = vadd.f32 %v9075_v33, %v10431_v37  ;;  %v10605_v43 = vadd.f32 %v1130_v58, %v870_v22  ;;  %v3192_v37 = vld [vmem:[#allocation3 + $0x1] sm:$0xff]  ;;  %v3193_v58 = vld [vmem:[#allocation3 + $0x9] sm:$0xff]  ;;  %8547 = vmatpush3.bf16.msra.mxu0 %v9442_v8  ;;  %v9447_v33 = vld [vmem:[#allocation5 + $0x8] sm:$0xff]  }
 0x16c   : > { %v9148_v21 = vpop.f32.mrf.mxu0  ;;  %v872_v49 = vpop.f32.mrf.mxu1  ;;  %v8110_v3 = vpack.c.bf16 %v3192_v37, %v3192_v37  ;;  %v9446_v22 = vld [vmem:[#allocation5 + $0xf0] sm:$0xff]   ;;  %v9450_v37 = vld [vmem:[#allocation5 + $0xe8] sm:$0xff]  }
 0x16d   : > { %v10608_v54 = vadd.f32 %v872_v49, %v10439_v57  ;;  %v10610_v39 = vadd.f32 %v9109_v29, %v881_v35  ;;  %v9711_v57 = vld [vmem:[#allocation3] sm:$0xff]  ;;  %v8111_v29 = vpack.c.bf16 %v3193_v58, %v3193_v58 }
 0x16e   : > { %v1604_v34 = vpop.f32.mrf.mxu0  ;;  %v9114_v30 = vpop.f32.mrf.mxu1  ;;  %9317 = vmatmul.mubr.msk.bf16.vlgmr.msra.gmra.mxu1 %vm214_vm0, %v10411_v45  ;;  %v8078_v15 = vpack.c.bf16 %v9711_v57, %v9711_v57  ;;  %v9448_v35 = vld [vmem:[#allocation5 + $0xb0] sm:$0xff]   ;;  %3352 = vst [vmem:[#allocation4 + $0x4] sm:$0xf] %v8110_v3 }
 0x16f   : > { %v1440_v31 = vadd.f32 %v9114_v30, %v10449_v63  ;;  %9320 = vmatprep.mubr.msk.bf16.mxu1 %vm214_vm0, %v11701_v18  ;;  %8649 = vmatpush3.bf16.msra.mxu1 %v9444_v40  ;;  %v9445_v63 = vld [vmem:[#allocation5 + $0x48] sm:$0xff]   ;;  %3353 = vst [vmem:[#allocation4 + $0x28] sm:$0xf] %v8111_v29  ;;  %v9449_v40 = vld [vmem:[#allocation5 + $0x40] sm:$0xff]  }
 0x170   : > { %v9149_v47 = vpop.f32.mrf.mxu0  ;;  %v1311_v26 = vpop.f32.mrf.mxu1  ;;  %3160 = vst [vmem:[#allocation4] sm:$0xf] %v8078_v15  ;;  %3161 = vst [vmem:[#allocation4 + $0x24] sm:$0xf] %v8078_v15  ;;  %8548 = vmatprep.subr.bf16.mxu0 %v9445_v63  ;;  %8650 = vmatprep.subr.bf16.mxu1 %v9446_v22  ;;  %v11702_v18 = vld [vmem:[#allocation9_spill] sm:$0xff]  ;;  %v9456_v63 = vld [vmem:[#allocation5 + $0xe0] sm:$0xff]  }
 0x171   : > { %v1438_v45 = vadd.f32 %v1311_v26, %v10458_v53  ;;  %v10620_v51 = vadd.f32 %v9148_v21, %v1440_v31  ;;  %8549 = vmatpush3.bf16.msra.mxu0 %v9447_v33 }
 0x172   : > { %v10618_v41 = vpop.f32.mrf.mxu0  ;;  %v9115_v46 = vpop.f32.mrf.mxu1  ;;  %8550 = vmatprep.subr.bf16.mxu0 %v9449_v40  ;;  %v9459_v40 = vld [vmem:[#allocation5 + $0x98] sm:$0xff]  }
 0x173   : > { %v1441_v49 = vadd.f32 %v9115_v46, %v10463_v55  ;;  %v10623_v36 = vadd.f32 %v1604_v34, %v1438_v45  ;;  %8651 = vmatpush3.bf16.msra.mxu1 %v9448_v35  ;;  %v9451_v55 = vld [vmem:[#allocation5] sm:$0xff]   ;;  %v9452_v34 = vld [vmem:[#allocation5 + $0xa8] sm:$0xff]  }
 0x174   : > { %v9152_v5 = vpop.f32.mrf.mxu0  ;;  %v1314_v53 = vpop.f32.mrf.mxu1  ;;  %8652 = vmatprep.subr.bf16.mxu1 %v9450_v37  ;;  %v3384_v37 = vld [vmem:[#allocation3 + $0x2] sm:$0xff] }
 0x175   : > { %v10626_v21 = vadd.f32 %v1314_v53, %v10470_v20  ;;  %v10628_v8 = vadd.f32 %v9149_v47, %v1441_v49  ;;  %8551 = vmatpush3.bf16.msra.mxu0 %v9451_v55 }
 0x176   : > { %v1620_v30 = vpop.f32.mrf.mxu0  ;;  %v9118_v31 = vpop.f32.mrf.mxu1  ;;  %9321 = vmatmul.mubr.msk.bf16.gmra.mxu1 %vm214_vm0, %v11702_v18  ;;  %v9455_v45 = vld [vmem:[#allocation4 + $0x4] ss:$36 sps:$4 sm:$0xff]  }
 0x177   : > { %v1444_v57 = vadd.f32 %v9118_v31, %v10473_v25  ;;  %9324 = vmatprep.mubr.msk.bf16.mxu1 %vm214_vm0, %v10451_v6  ;;  %8653 = vmatpush3.bf16.msra.mxu1 %v9452_v34  ;;  %v9453_v3 = vld [vmem:[#allocation4] ss:$36 sps:$4 sm:$0xff]   ;;  %v8142_v31 = vpack.c.bf16 %v3384_v37, %v3384_v37 }
 0x178   : > { %v9153_v15 = vpop.f32.mrf.mxu0  ;;  %v1327_v20 = vpop.f32.mrf.mxu1  ;;  %v9457_v6 = vld [vmem:[#allocation5 + $0xa0] sm:$0xff]   ;;  %6494 = vmatprep.mubr.bf16.mxu0 %v9455_v45  ;;  %8654 = vmatprep.subr.bf16.mxu1 %v9456_v63 }
 0x179   : > { %v1442_v47 = vadd.f32 %v1327_v20, %v10482_v0  ;;  %v10638_v26 = vadd.f32 %v9152_v5, %v1444_v57  ;;  %6495 = vmatmul.mubr.bf16.vlgmr.msra.gmra.mxu0 %v9453_v3  ;;  %v9460_v57 = vld [vmem:[#allocation5 + $0xd0] sm:$0xff]   ;;  %3544 = vst [vmem:[#allocation4 + $0x8] sm:$0xf] %v8142_v31  ;;  %v9466_v37 = vld [vmem:[#allocation5 + $0xc0] sm:$0xff]  }
 0x17a   : > { %v10636_v58 = vpop.f32.mrf.mxu0  ;;  %v9119_v29 = vpop.f32.mrf.mxu1 }
 0x17b   : > { %v1445_v25 = vadd.f32 %v9119_v29, %v10487_v16  ;;  %v10641_v46 = vadd.f32 %v1620_v30, %v1442_v47  ;;  %8655 = vmatpush3.bf16.msra.mxu1 %v9457_v6  ;;  %v9458_v16 = vld [vmem:[#allocation5 + $0xd8] sm:$0xff]  }
 0x17c   : > { %v9156_v22 = vpop.f32.mrf.mxu0  ;;  %v1330_v33 = vpop.f32.mrf.mxu1  ;;  %8656 = vmatprep.subr.bf16.mxu1 %v9458_v16  ;;  %v3385_v47 = vld [vmem:[#allocation3 + $0xa] sm:$0xff]  ;;  %v5054_v16 = vld [vmem:[#allocation2 + $0x111] sm:$0xff] }
 0x17d   : > { %v10644_v0 = vadd.f32 %v1330_v33, %v10494_v17  ;;  %v10646_v49 = vadd.f32 %v9153_v15, %v1445_v25  ;;  %v8143_v29 = vpack.c.bf16 %v3385_v47, %v3385_v47  ;;  %v11703_v33 = vld [vmem:[#allocation10_spill] sm:$0xff]  ;;  %v11707_v47 = vld [vmem:[#allocation11_spill] sm:$0xff] }
 0x17e   : > { %v1636_v35 = vpop.f32.mrf.mxu0  ;;  %v9122_v5 = vpop.f32.mrf.mxu1  ;;  %9325 = vmatmul.mubr.msk.bf16.gmra.mxu1 %vm214_vm0, %v10456_v1 }
 0x17f   : > { %v1448_v53 = vadd.f32 %v9122_v5, %v10497_v42  ;;  %9328 = vmatprep.mubr.msk.bf16.mxu1 %vm214_vm0, %v10475_v4  ;;  %8657 = vmatpush3.bf16.msra.mxu1 %v9459_v40  ;;  %v9461_v4 = vld [vmem:[#allocation5 + $0x90] sm:$0xff]   ;;  %3545 = vst [vmem:[#allocation4 + $0x2c] sm:$0xf] %v8143_v29  ;;  %v5055_v29 = vld [vmem:[#allocation2 + $0x121] sm:$0xff] }
 0x180   : > { %v9157_v30 = vpop.f32.mrf.mxu0  ;;  %v1343_v17 = vpop.f32.mrf.mxu1  ;;  %8658 = vmatprep.subr.bf16.mxu1 %v9460_v57 }
 0x181   : > { %v1446_v18 = vadd.f32 %v1343_v17, %v10506_v61  ;;  %v10656_v34 = vadd.f32 %v9156_v22, %v1448_v53 }
 0x182   : > { %v10654_v55 = vpop.f32.mrf.mxu0  ;;  %v9123_v1 = vpop.f32.mrf.mxu1 }
 0x183   : > { %v1449_v42 = vadd.f32 %v9123_v1, %v10515_v2  ;;  %v10659_v20 = vadd.f32 %v1636_v35, %v1446_v18  ;;  %8659 = vmatpush3.bf16.msra.mxu1 %v9461_v4  ;;  %v9463_v2 = vld [vmem:[#allocation5 + $0xc8] sm:$0xff]   ;;  %v9467_v1 = vld [vmem:[#allocation5 + $0x80] sm:$0xff]  }
 0x184   : > { %v9160_v15 = vpop.f32.mrf.mxu0  ;;  %v1346_v3 = vpop.f32.mrf.mxu1  ;;  %v9465_v35 = vld [vmem:[#allocation5 + $0x88] sm:$0xff]   ;;  %8660 = vmatprep.subr.bf16.mxu1 %v9463_v2  ;;  %v5057_v2 = vld [vmem:[#allocation2 + $0x139] sm:$0xff] }
 0x185   : > { %v10662_v61 = vadd.f32 %v1346_v3, %v10523_v23  ;;  %v10664_v63 = vadd.f32 %v9157_v30, %v1449_v42  ;;  %v5053_v23 = vld [vmem:[#allocation2 + $0x109] sm:$0xff] }
 0x186   : > { %v1652_v45 = vpop.f32.mrf.mxu0  ;;  %v9126_v25 = vpop.f32.mrf.mxu1  ;;  %9329 = vmatmul.mubr.msk.bf16.gmra.mxu1 %vm214_vm0, %v10480_v19  ;;  %v5075_v18 = vpack.c.bf16 %v5054_v16, %v5053_v23 }
 0x187   : > { %v1452_v22 = vadd.f32 %v9126_v25, %v10526_v7  ;;  %9332 = vmatprep.mubr.msk.bf16.mxu1 %vm214_vm0, %v11703_v33  ;;  %8661 = vmatpush3.bf16.msra.mxu1 %v9465_v35 }
 0x188   : > { %v9161_v6 = vpop.f32.mrf.mxu0  ;;  %v1359_v5 = vpop.f32.mrf.mxu1  ;;  %8662 = vmatprep.subr.bf16.mxu1 %v9466_v37 }
 0x189   : > { %v1450_v53 = vadd.f32 %v1359_v5, %v10531_v13  ;;  %v10674_v40 = vadd.f32 %v9160_v15, %v1452_v22  ;;  %v5058_v22 = vld [vmem:[#allocation2 + $0x141] sm:$0xff] }
 0x18a   : > { %v10672_v30 = vpop.f32.mrf.mxu0  ;;  %v9127_v19 = vpop.f32.mrf.mxu1 }
 0x18b   : > { %11704 = vst [vmem:[#allocation8_spill] sm:$0xff] %v10674_v40  ;;  %v1453_v7 = vadd.f32 %v9127_v19, %v10536_v9  ;;  %v10677_v31 = vadd.f32 %v1652_v45, %v1450_v53  ;;  %8663 = vmatpush3.bf16.msra.mxu1 %v9467_v1  ;;  %v5056_v45 = vld [vmem:[#allocation2 + $0x129] sm:$0xff]  ;;  %v5077_v53 = vpack.c.bf16 %v5058_v22, %v5057_v2 }
 0x18c   : > { %v9164_v17 = vpop.f32.mrf.mxu0  ;;  %v1362_v57 = vpop.f32.mrf.mxu1  ;;  %v5076_v5 = vpack.c.bf16 %v5056_v45, %v5055_v29 }
 0x18d   : > { %11705 = vst [vmem:[#allocation9_spill] sm:$0xff] %v10677_v31  ;;  %v10680_v42 = vadd.f32 %v1362_v57, %v10541_v28  ;;  %v10682_v4 = vadd.f32 %v9161_v6, %v1453_v7  ;;  %v5059_v57 = vld [vmem:[#allocation2 + $0x151] sm:$0xff] }
 0x18e   : > { %v1668_v13 = vpop.f32.mrf.mxu0  ;;  %v9130_v15 = vpop.f32.mrf.mxu1  ;;  %9333 = vmatmul.mubr.msk.bf16.gmra.mxu1 %vm214_vm0, %v11707_v47  ;;  %v5062_v47 = vld [vmem:[#allocation2 + $0x171] sm:$0xff] }
 0x18f   : > { %11706 = vst [vmem:[#allocation10_spill] sm:$0xff] %v10682_v4  ;;  %v1456_v9 = vadd.f32 %v9130_v15, %v10544_v60  ;;  %9336 = vmatprep.mubr.msk.bf16.mxu1 %vm214_vm0, %v5075_v18  ;;  %v9462_v18 = vld [vmem:[#allocation5 + $0x178] sm:$0xff]   ;;  %v5061_v15 = vld [vmem:[#allocation2 + $0x169] sm:$0xff] }
 0x190   : > { %v9165_v3 = vpop.f32.mrf.mxu0  ;;  %v1375_v25 = vpop.f32.mrf.mxu1  ;;  %8760 = vmatprep.subr.bf16.mxu0 %v9462_v18 }
 0x191   : > { %v1454_v28 = vadd.f32 %v1375_v25, %v10549_v27  ;;  %v10691_v6 = vadd.f32 %v9164_v17, %v1456_v9  ;;  %v9464_v9 = vld [vmem:[#allocation5 + $0x138] sm:$0xff]  }
 0x192   : > { %v10689_v33 = vpop.f32.mrf.mxu0  ;;  %v9131_v35 = vpop.f32.mrf.mxu1  ;;  %8761 = vmatpush3.bf16.msra.mxu0 %v9464_v9 }
 0x193   : > { %11708 = vst [vmem:[#allocation11_spill] sm:$0xff] %v10691_v6  ;;  %v1457_v23 = vadd.f32 %v9131_v35, %v10554_v48  ;;  %v10694_v60 = vadd.f32 %v1668_v13, %v1454_v28  ;;  %v5060_v48 = vld [vmem:[#allocation2 + $0x159] sm:$0xff]  ;;  %v5079_v35 = vpack.c.bf16 %v5062_v47, %v5061_v15 }
 0x194   : > { %v9168_v16 = vpop.f32.mrf.mxu0  ;;  %v10696_v19 = vpop.f32.mrf.mxu1  ;;  %v5078_v2 = vpack.c.bf16 %v5060_v48, %v5059_v57 }
 0x195   : > { %11709 = vst [vmem:[#allocation12_spill] sm:$0xff] %v10694_v60  ;;  %v10698_v7 = vadd.f32 %v9165_v3, %v1457_v23 }
 0x196   : > { %v1684_v37 = vpop.f32.mrf.mxu0  ;;  %v9134_v1 = vpop.f32.mrf.mxu1  ;;  %9337 = vmatmul.mubr.msk.bf16.gmra.mxu1 %vm214_vm0, %v5076_v5 }
 0x197   : > { %11710 = vst [vmem:[#allocation13_spill] sm:$0xff] %v10698_v7  ;;  %v1460_v27 = vadd.f32 %v9134_v1, %v10564_v32  ;;  %9340 = vmatprep.mubr.msk.bf16.mxu1 %vm214_vm0, %v5077_v53  ;;  %v5063_v1 = vld [vmem:[#allocation2 + $0x181] sm:$0xff]  ;;  %v9524_v7 = vld [vmem:[#allocation5 + $0x158] sm:$0xff]  }
 0x198   : > { %v9169_v17 = vpop.f32.mrf.mxu0  ;;  %v1391_v13 = vpop.f32.mrf.mxu1 }
 0x199   : > { %v1458_v29 = vadd.f32 %v1391_v13, %v10569_v62  ;;  %v10706_v45 = vadd.f32 %v9168_v16, %v1460_v27  ;;  %v5064_v27 = vld [vmem:[#allocation2 + $0x189] sm:$0xff] }
 0x19a   : > { %v10704_v3 = vpop.f32.mrf.mxu0  ;;  %v9135_v25 = vpop.f32.mrf.mxu1 }
 0x19b   : > { %11711 = vst [vmem:[#allocation14_spill] sm:$0xff] %v10706_v45  ;;  %v1461_v32 = vadd.f32 %v9135_v25, %v10576_v50  ;;  %v10709_v28 = vadd.f32 %v1684_v37, %v1458_v29 }
 0x19c   : > { %v9172_v22 = vpop.f32.mrf.mxu0  ;;  %v10711_v5 = vpop.f32.mrf.mxu1 }
 0x19d   : > { %11712 = vst [vmem:[#allocation15_spill] sm:$0xff] %v10709_v28  ;;  %v10713_v53 = vadd.f32 %v9169_v17, %v1461_v32  ;;  %v5080_v17 = vpack.c.bf16 %v5064_v27, %v5063_v1 }
 0x19e   : > { %v1700_v23 = vpop.f32.mrf.mxu0  ;;  %v9138_v18 = vpop.f32.mrf.mxu1  ;;  %9341 = vmatmul.mubr.msk.bf16.gmra.mxu1 %vm214_vm0, %v5078_v2  ;;  %v9480_v2 = vld [vmem:[#allocation5 + $0x170] sm:$0xff]  }
 0x19f   : > { %11713 = vst [vmem:[#allocation16_spill] sm:$0xff] %v10713_v53  ;;  %v1464_v62 = vadd.f32 %v9138_v18, %v10585_v12  ;;  %9344 = vmatprep.mubr.msk.bf16.mxu1 %vm214_vm0, %v5079_v35  ;;  %8762 = vmatprep.subr.bf16.mxu0 %v9480_v2  ;;  %v9481_v18 = vld [vmem:[#allocation5 + $0x130] sm:$0xff]  }
 0x1a0   : > { %v9173_v16 = vpop.f32.mrf.mxu0  ;;  %v1407_v50 = vpop.f32.mrf.mxu1  ;;  %8763 = vmatpush3.bf16.msra.mxu0 %v9481_v18 }
 0x1a1   : > { %v1462_v37 = vadd.f32 %v1407_v50, %v10589_v11  ;;  %v10721_v48 = vadd.f32 %v9172_v22, %v1464_v62 }
 0x1a2   : > { %v10719_v57 = vpop.f32.mrf.mxu0  ;;  %v9139_v13 = vpop.f32.mrf.mxu1 }
 0x1a3   : > { %11714 = vst [vmem:[#allocation17_spill] sm:$0xff] %v10721_v48  ;;  %v1465_v15 = vadd.f32 %v9139_v13, %v10594_v38  ;;  %v10724_v9 = vadd.f32 %v1700_v23, %v1462_v37 }
 0x1a4   : > { %v9176_v47 = vpop.f32.mrf.mxu0  ;;  %v10726_v12 = vpop.f32.mrf.mxu1 }
 0x1a5   : > { %11715 = vst [vmem:[#allocation18_spill] sm:$0xff] %v10724_v9  ;;  %v10728_v25 = vadd.f32 %v9173_v16, %v1465_v15  ;;  %v9509_v9 = vld [vmem:[#allocation5 + $0x120] sm:$0xff]  }
 0x1a6   : > { %v1716_v29 = vpop.f32.mrf.mxu0  ;;  %v9142_v32 = vpop.f32.mrf.mxu1  ;;  %9345 = vmatmul.mubr.msk.bf16.gmra.mxu1 %vm214_vm0, %v5080_v17 }
 0x1a7   : > { %11716 = vst [vmem:[#allocation19_spill] sm:$0xff] %v10728_v25  ;;  %v1468_v11 = vadd.f32 %v9142_v32, %v10602_v52  ;;  %v9508_v25 = vld [vmem:[#allocation5 + $0x160] sm:$0xff]  }
 0x1a8   : > { %v9177_v22 = vpop.f32.mrf.mxu0  ;;  %v1423_v35 = vpop.f32.mrf.mxu1 }
 0x1a9   : > { %v1466_v38 = vadd.f32 %v1423_v35, %v10605_v43  ;;  %v10735_v23 = vadd.f32 %v9176_v47, %v1468_v11  ;;  %v9494_v11 = vld [vmem:[#allocation5 + $0x168] sm:$0xff]  }
 0x1aa   : > { %v10733_v62 = vpop.f32.mrf.mxu0  ;;  %v9143_v1 = vpop.f32.mrf.mxu1  ;;  %8764 = vmatprep.subr.bf16.mxu0 %v9494_v11 }
 0x1ab   : > { %11717 = vst [vmem:[#allocation20_spill] sm:$0xff] %v10735_v23  ;;  %v1469_v16 = vadd.f32 %v9143_v1, %v10610_v39  ;;  %v10740_v50 = vadd.f32 %v1716_v29, %v1466_v38  ;;  %v9495_v38 = vld [vmem:[#allocation5 + $0x128] sm:$0xff]  }
 0x1ac   : > { %v10738_v27 = vpop.f32.mrf.mxu0  ;;  %v10742_v37 = vpop.f32.mrf.mxu1  ;;  %8765 = vmatpush3.bf16.msra.mxu0 %v9495_v38  ;;  %v9522_v38 = vld [vmem:[#allocation5 + $0x1f8] sm:$0xff]  }
 0x1ad   : > { %11718 = vst [vmem:[#allocation21_spill] sm:$0xff] %v10740_v50  ;;  %v10746_v13 = vadd.f32 %v9177_v22, %v1469_v16  ;;  %8766 = vmatprep.subr.bf16.mxu0 %v9508_v25  ;;  %8872 = vmatprep.subr.bf16.mxu1 %v9522_v38 }
 0x1ae   : > { %v10744_v52 = vpop.f32.mrf.mxu0  ;;  %v10748_v17 = vpop.f32.mrf.mxu1 }
 0x1af   : > { %11719 = vst [vmem:[#allocation22_spill] sm:$0xff] %v10746_v13 }
 0x1b0   : > { %v10750_v43 = vpop.f32.mrf.mxu0  ;;  %v10752_v15 = vpop.f32.mrf.mxu1  ;;  %8767 = vmatpush3.bf16.msra.mxu0 %v9509_v9 }
 0x1b1   : > { %8768 = vmatprep.subr.bf16.mxu0 %v9524_v7 }
 0x1b2   : > { %v10754_v47 = vpop.f32.mrf.mxu0  ;;  %v10756_v2 = vpop.f32.mrf.mxu1 }
 0x1b4   : > { %v10758_v39 = vpop.f32.mrf.mxu0  ;;  %v10760_v29 = vpop.f32.mrf.mxu1 }
 0x1b6   : > { %v10762_v32 = vpop.f32.mrf.mxu0  ;;  %v10764_v35 = vpop.f32.mrf.mxu1 }
 0x1b8   : > { %v10766_v22 = vpop.f32.mrf.mxu0  ;;  %v10768_v18 = vpop.f32.mrf.mxu1 }
 0x1ba   : > { %v10770_v1 = vpop.f32.mrf.mxu0  ;;  %v10772_v16 = vpop.f32.mrf.mxu1 }
 0x1bc   : > { %v10774_v13 = vpop.f32.mrf.mxu0  ;;  %v10776_v50 = vpop.f32.mrf.mxu1 }
 0x1bd   : > { %11720 = vst [vmem:[#allocation23_spill] sm:$0xff] %v10774_v13 }
 0x1be   : > { %v10778_v23 = vpop.f32.mrf.mxu0  ;;  %v10780_v48 = vpop.f32.mrf.mxu1 }
 0x1bf   : > { %11721 = vst [vmem:[#allocation24_spill] sm:$0xff] %v10778_v23 }
 0x1c0   : > { %v10782_v53 = vpop.f32.mrf.mxu0  ;;  %v10784_v11 = vpop.f32.mrf.mxu1 }
 0x1c1   : > { %11722 = vst [vmem:[#allocation25_spill] sm:$0xff] %v10782_v53 }
 0x1c2   : > { %v10786_v28 = vpop.f32.mrf.mxu0  ;;  %v10788_v45 = vpop.f32.mrf.mxu1 }
 0x1c3   : > { %11723 = vst [vmem:[#allocation26_spill] sm:$0xff] %v10786_v28  ;;  %v9525_v28 = vld [vmem:[#allocation5 + $0x118] sm:$0xff]  }
 0x1c4   : > { %v10790_v60 = vpop.f32.mrf.mxu0  ;;  %v10792_v6 = vpop.f32.mrf.mxu1  ;;  %8769 = vmatpush3.bf16.msra.mxu0 %v9525_v28 }
 0x1c5   : > { %11724 = vst [vmem:[#allocation27_spill] sm:$0xff] %v10790_v60 }
 0x1c6   : > { %v10794_v4 = vpop.f32.mrf.mxu0  ;;  %v10796_v31 = vpop.f32.mrf.mxu1 }
 0x1c7   : > { %11725 = vst [vmem:[#allocation28_spill] sm:$0xff] %v10794_v4  ;;  %11726 = vst [vmem:[#allocation29_spill] sm:$0xff] %v10796_v31 }
 0x1c8   : > { %v10798_v25 = vpop.f32.mrf.mxu0  ;;  %v10800_v53 = vpop.f32.mrf.mxu1 }
 0x1c9   : > { %11727 = vst [vmem:[#allocation30_spill] sm:$0xff] %v10798_v25  ;;  %11728 = vst [vmem:[#allocation31_spill] sm:$0xff] %v10800_v53 }
 0x1ca   : > { %v10802_v9 = vpop.f32.mrf.mxu0  ;;  %v10804_v23 = vpop.f32.mrf.mxu1 }
 0x1cb   : > { %11729 = vst [vmem:[#allocation32_spill] sm:$0xff] %v10802_v9  ;;  %11730 = vst [vmem:[#allocation33_spill] sm:$0xff] %v10804_v23  ;;  %v9540_v9 = vld [vmem:[#allocation5 + $0x150] sm:$0xff]  }
 0x1cc   : > { %v10806_v40 = vpop.f32.mrf.mxu0  ;;  %v10808_v60 = vpop.f32.mrf.mxu1  ;;  %8770 = vmatprep.subr.bf16.mxu0 %v9540_v9 }
 0x1cd   : > { %11731 = vst [vmem:[#allocation34_spill] sm:$0xff] %v10806_v40  ;;  %11732 = vst [vmem:[#allocation35_spill] sm:$0xff] %v10808_v60 }
 0x1ce   : > { %v10810_v38 = vpop.f32.mrf.mxu0  ;;  %v10812_v7 = vpop.f32.mrf.mxu1 }
 0x1cf   : > { %11733 = vst [vmem:[#allocation36_spill] sm:$0xff] %v10810_v38  ;;  %11734 = vst [vmem:[#allocation37_spill] sm:$0xff] %v10812_v7 }
 0x1d0   : > { %v10814_v4 = vpop.f32.mrf.mxu0  ;;  %v10816_v31 = vpop.f32.mrf.mxu1 }
 0x1d1   : > { %11735 = vst [vmem:[#allocation38_spill] sm:$0xff] %v10814_v4  ;;  %11736 = vst [vmem:[#allocation39_spill] sm:$0xff] %v10816_v31  ;;  %v9541_v31 = vld [vmem:[#allocation5 + $0x110] sm:$0xff]  }
 0x1d2   : > { %v10818_v25 = vpop.f32.mrf.mxu0  ;;  %v10820_v53 = vpop.f32.mrf.mxu1  ;;  %8771 = vmatpush3.bf16.msra.mxu0 %v9541_v31 }
 0x1d3   : > { %11737 = vst [vmem:[#allocation40_spill] sm:$0xff] %v10818_v25  ;;  %11738 = vst [vmem:[#allocation41_spill] sm:$0xff] %v10820_v53 }
 0x1d4   : > { %v10822_v13 = vpop.f32.mrf.mxu0  ;;  %v10824_v23 = vpop.f32.mrf.mxu1 }
 0x1d5   : > { %11739 = vst [vmem:[#allocation42_spill] sm:$0xff] %v10822_v13  ;;  %11740 = vst [vmem:[#allocation43_spill] sm:$0xff] %v10824_v23 }
 0x1d6   : > { %v10826_v28 = vpop.f32.mrf.mxu0  ;;  %v10828_v40 = vpop.f32.mrf.mxu1 }
 0x1d7   : > { %11741 = vst [vmem:[#allocation44_spill] sm:$0xff] %v10826_v28  ;;  %11742 = vst [vmem:[#allocation45_spill] sm:$0xff] %v10828_v40 }
 0x1d8   : > { %v10830_v38 = vpop.f32.mrf.mxu0  ;;  %v10832_v7 = vpop.f32.mrf.mxu1 }
 0x1d9   : > { %11743 = vst [vmem:[#allocation46_spill] sm:$0xff] %v10830_v38  ;;  %11744 = vst [vmem:[#allocation47_spill] sm:$0xff] %v10832_v7 }
 0x1da   : > { %v10834_v4 = vpop.f32.mrf.mxu0  ;;  %v10836_v25 = vpop.f32.mrf.mxu1 }
 0x1db   : > { %11745 = vst [vmem:[#allocation48_spill] sm:$0xff] %v10834_v4  ;;  %11746 = vst [vmem:[#allocation49_spill] sm:$0xff] %v10836_v25  ;;  %v9556_v4 = vld [vmem:[#allocation5 + $0x148] sm:$0xff]  }
 0x1dc   : > { %v10838_v53 = vpop.f32.mrf.mxu0  ;;  %v10840_v13 = vpop.f32.mrf.mxu1  ;;  %8772 = vmatprep.subr.bf16.mxu0 %v9556_v4 }
 0x1dd   : > { %11747 = vst [vmem:[#allocation50_spill] sm:$0xff] %v10838_v53 }
 0x1de   : > { %v10842_v23 = vpop.f32.mrf.mxu0  ;;  %v10844_v9 = vpop.f32.mrf.mxu1 }
 0x1df   : > { %11748 = vst [vmem:[#allocation51_spill] sm:$0xff] %v10842_v23  ;;  %11749 = vst [vmem:[#allocation52_spill] sm:$0xff] %v10844_v9 }
 0x1e0   : > { %v10846_v28 = vpop.f32.mrf.mxu0  ;;  %v10848_v40 = vpop.f32.mrf.mxu1 }
 0x1e1   : > { %11750 = vst [vmem:[#allocation53_spill] sm:$0xff] %v10846_v28  ;;  %11751 = vst [vmem:[#allocation54_spill] sm:$0xff] %v10848_v40  ;;  %v2026_v28 = vadd.f32 %v10748_v17, %v10620_v51 }
 0x1e2   : > { %v10850_v38 = vpop.f32.mrf.mxu0  ;;  %v10852_v7 = vpop.f32.mrf.mxu1 }
 0x1e3   : > { %11752 = vst [vmem:[#allocation55_spill] sm:$0xff] %v10850_v38  ;;  %11753 = vst [vmem:[#allocation56_spill] sm:$0xff] %v10852_v7  ;;  %v9557_v7 = vld [vmem:[#allocation5 + $0x108] sm:$0xff]   ;;  %v2320_v51 = vadd.f32 %v10738_v27, %v2026_v28 }
 0x1e4   : > { %v10854_v60 = vpop.f32.mrf.mxu0  ;;  %v10856_v25 = vpop.f32.mrf.mxu1  ;;  %8773 = vmatpush3.bf16.msra.mxu0 %v9557_v7  ;;  %v2030_v7 = vadd.f32 %v10764_v35, %v10638_v26 }
 0x1e5   : > { %11754 = vst [vmem:[#allocation57_spill] sm:$0xff] %v10854_v60  ;;  %11755 = vst [vmem:[#allocation58_spill] sm:$0xff] %v10856_v25  ;;  %v2024_v60 = vadd.f32 %v10752_v15, %v10623_v36  ;;  %v1166_v15 = vadd.f32 %v10562_v44, %v10574_v14  ;;  %v2028_v44 = vadd.f32 %v10768_v18, %v10641_v46 }
 0x1e6   : > { %v10858_v31 = vpop.f32.mrf.mxu0  ;;  %v10860_v53 = vpop.f32.mrf.mxu1  ;;  %v1736_v14 = vadd.f32 %v10636_v58, %v10644_v0  ;;  %v2324_v58 = vadd.f32 %v10758_v39, %v2030_v7  ;;  %v9573_v7 = vld [vmem:[#allocation5 + $0x100] sm:$0xff]  }
 0x1e7   : > { %11756 = vst [vmem:[#allocation59_spill] sm:$0xff] %v10858_v31  ;;  %11757 = vst [vmem:[#allocation60_spill] sm:$0xff] %v10860_v53  ;;  %v2318_v25 = vadd.f32 %v10744_v52, %v2024_v60  ;;  %v1174_v60 = vadd.f32 %v10600_v59, %v10608_v54  ;;  %v9572_v52 = vld [vmem:[#allocation5 + $0x140] sm:$0xff]   ;;  %v1740_v59 = vadd.f32 %v10654_v55, %v10662_v61 }
 0x1e8   : > { %v10862_v23 = vpop.f32.mrf.mxu0  ;;  %v10864_v9 = vpop.f32.mrf.mxu1  ;;  %v10905_v54 = vadd.f32 %v10672_v30, %v10680_v42  ;;  %8774 = vmatprep.subr.bf16.mxu0 %v9572_v52  ;;  %v1459_v18 = vadd.f32 %v10711_v5, %v1166_v15  ;;  %v2322_v30 = vadd.f32 %v10762_v32, %v2028_v44  ;;  %v11764_v52 = vld [vmem:[#allocation29_spill] sm:$0xff] }
 0x1e9   : > { %11758 = vst [vmem:[#allocation61_spill] sm:$0xff] %v10862_v23  ;;  %11759 = vst [vmem:[#allocation62_spill] sm:$0xff] %v10864_v9  ;;  %v2027_v23 = vadd.f32 %v10756_v2, %v10628_v8  ;;  %v1732_v9 = vadd.f32 %v10618_v41, %v10626_v21  ;;  %v1170_v41 = vadd.f32 %v10583_v56, %v10592_v24  ;;  %8775 = vmatpush3.bf16.msra.mxu0 %v9573_v7 }
 0x1ea   : > { %v10868_v38 = vpop.f32.mrf.mxu0  ;;  %v10870_v40 = vpop.f32.mrf.mxu1  ;;  %v1467_v5 = vadd.f32 %v10742_v37, %v1174_v60  ;;  %v2035_v37 = vadd.f32 %v10788_v45, %v10664_v63 }
 0x1eb   : > { %11760 = vst [vmem:[#allocation63_spill] sm:$0xff] %v10868_v38  ;;  %11761 = vst [vmem:[#allocation64_spill] sm:$0xff] %v10870_v40  ;;  %v2025_v53 = vadd.f32 %v10760_v29, %v1732_v9  ;;  %v2321_v2 = vadd.f32 %v10750_v43, %v2027_v23  ;;  %v1455_v29 = vadd.f32 %v10696_v19, %v10559_v10 }
 0x1ec   : > { %v9284_v4 = vpop.f32.mrf.mxu0  ;;  %v10874_v31 = vpop.f32.mrf.mxu1  ;;  %v2031_v10 = vadd.f32 %v10772_v16, %v10646_v49  ;;  %v2029_v49 = vadd.f32 %v10776_v50, %v1736_v14  ;;  %v1463_v9 = vadd.f32 %v10726_v12, %v1170_v41  ;;  %v2032_v12 = vadd.f32 %v10784_v11, %v10659_v20  ;;  %v11762_v11 = vld [vmem:[#allocation23_spill] sm:$0xff] }
 0x1ed   : > { %v2319_v23 = vadd.f32 %v10754_v47, %v2025_v53  ;;  %v10911_v55 = vadd.f32 %v10689_v33, %v1455_v29  ;;  %v2034_v33 = vadd.f32 %v10780_v48, %v10656_v34  ;;  %v10924_v34 = vadd.f32 %v10704_v3, %v1459_v18  ;;  %v11769_v18 = vld [vmem:[#allocation10_spill] sm:$0xff] }
 0x1ee   : > { %v2777_v17 = vpop.f32.mrf.mxu0  ;;  %v9250_v38 = vpop.f32.mrf.mxu1  ;;  %v2033_v20 = vadd.f32 %v10792_v6, %v1740_v59  ;;  %v10929_v63 = vadd.f32 %v10719_v57, %v1463_v9  ;;  %v10932_v3 = vadd.f32 %v10733_v62, %v1467_v5  ;;  %v11763_v6 = vld [vmem:[#allocation8_spill] sm:$0xff] }
 0x1ef   : > { %v2613_v40 = vadd.f32 %v9250_v38, %v2320_v51  ;;  %v10939_v57 = vadd.f32 %v11764_v52, %v11763_v6  ;;  %v11774_v6 = vld [vmem:[#allocation28_spill] sm:$0xff] }
 0x1f0   : > { %v9285_v36 = vpop.f32.mrf.mxu0  ;;  %v2484_v8 = vpop.f32.mrf.mxu1 }
 0x1f1   : > { %v2906_v21 = vadd.f32 %v9284_v4, %v2613_v40  ;;  %v2611_v27 = vadd.f32 %v2484_v8, %v2318_v25  ;;  %v2325_v4 = vadd.f32 %v10766_v22, %v2031_v10  ;;  %v2323_v22 = vadd.f32 %v10770_v1, %v2029_v49  ;;  %v11770_v49 = vld [vmem:[#allocation33_spill] sm:$0xff] }
 0x1f2   : > { %v2780_v28 = vpop.f32.mrf.mxu0  ;;  %v9251_v26 = vpop.f32.mrf.mxu1 }
 0x1f3   : > { %v2938_v56 = vmax.f32 %v2906_v21, 0.0  ;;  %v2904_v24 = vadd.f32 %v2777_v17, %v2611_v27  ;;  %v2614_v40 = vadd.f32 %v9251_v26, %v2321_v2 }
 0x1f4   : > { %v9288_v43 = vpop.f32.mrf.mxu0  ;;  %v2487_v46 = vpop.f32.mrf.mxu1 }
 0x1f5   : > { %2970 = vst [vmem:[#allocation3 + $0x31] sm:$0xff] %v2938_v56  ;;  %v8114_v0 = vpack.c.bf16 %v2938_v56, %v2938_v56  ;;  %v2936_v19 = vmax.f32 %v2904_v24, 0.0  ;;  %v2907_v35 = vadd.f32 %v9285_v36, %v2614_v40  ;;  %v2612_v53 = vadd.f32 %v2487_v46, %v2319_v23  ;;  %v11765_v40 = vld [vmem:[#allocation24_spill] sm:$0xff] }
 0x1f6   : > { %v2793_v47 = vpop.f32.mrf.mxu0  ;;  %v9254_v61 = vpop.f32.mrf.mxu1  ;;  %v2326_v23 = vadd.f32 %v11765_v40, %v2032_v12 }
 0x1f7   : > { %3356 = vst [vmem:[#allocation4 + $0x94] sm:$0xf] %v8114_v0  ;;  %3930 = vst [vmem:[#allocation4 + $0x58] sm:$0xf] %v8114_v0  ;;  %v8112_v42 = vpack.c.bf16 %v2936_v19, %v2936_v19  ;;  %v2939_v39 = vmax.f32 %v2907_v35, 0.0  ;;  %v2905_v16 = vadd.f32 %v2780_v28, %v2612_v53  ;;  %v2617_v25 = vadd.f32 %v9254_v61, %v2324_v58  ;;  %v11767_v35 = vld [vmem:[#allocation9_spill] sm:$0xff] }
 0x1f8   : > { %4505 = vst [vmem:[#allocation4 + $0x1c] sm:$0xf] %v8114_v0  ;;  %2968 = vst [vmem:[#allocation3 + $0x19] sm:$0xff] %v2936_v19  ;;  %v9289_v38 = vpop.f32.mrf.mxu0  ;;  %v2500_v50 = vpop.f32.mrf.mxu1  ;;  %v2328_v28 = vadd.f32 %v11762_v11, %v2034_v33  ;;  %v11768_v53 = vld [vmem:[#allocation31_spill] sm:$0xff]  ;;  %v10951_v61 = vadd.f32 %v11770_v49, %v11769_v18  ;;  %v11779_v49 = vld [vmem:[#allocation12_spill] sm:$0xff] }
 0x1f9   : > { %3354 = vst [vmem:[#allocation4 + $0x4c] sm:$0xf] %v8112_v42  ;;  %3928 = vst [vmem:[#allocation4 + $0x10] sm:$0xf] %v8112_v42  ;;  %v8115_v32 = vpack.c.bf16 %v2939_v39, %v2939_v39  ;;  %v2937_v51 = vmax.f32 %v2905_v16, 0.0  ;;  %v2615_v17 = vadd.f32 %v2500_v50, %v2322_v30  ;;  %v2910_v36 = vadd.f32 %v9288_v43, %v2617_v25  ;;  %v11766_v43 = vld [vmem:[#allocation25_spill] sm:$0xff] }
 0x1fa   : > { %2971 = vst [vmem:[#allocation3 + $0x39] sm:$0xff] %v2939_v39  ;;  %v2796_v15 = vpop.f32.mrf.mxu0  ;;  %v9255_v48 = vpop.f32.mrf.mxu1  ;;  %v2329_v10 = vadd.f32 %v11766_v43, %v2035_v37 }
 0x1fb   : > { %3357 = vst [vmem:[#allocation4 + $0xb8] sm:$0xf] %v8115_v32  ;;  %3931 = vst [vmem:[#allocation4 + $0x7c] sm:$0xf] %v8115_v32  ;;  %v8113_v8 = vpack.c.bf16 %v2937_v51, %v2937_v51  ;;  %v2942_v41 = vmax.f32 %v2910_v36, 0.0  ;;  %v2618_v21 = vadd.f32 %v9255_v48, %v2325_v4  ;;  %v2908_v27 = vadd.f32 %v2793_v47, %v2615_v17 }
 0x1fc   : > { %4506 = vst [vmem:[#allocation4 + $0x40] sm:$0xf] %v8115_v32  ;;  %2969 = vst [vmem:[#allocation3 + $0x21] sm:$0xff] %v2937_v51  ;;  %v9292_v2 = vpop.f32.mrf.mxu0  ;;  %v3004_v45 = vld [vmem:[#allocation3 + $0x30] sm:$0xff]  ;;  %v2503_v1 = vpop.f32.mrf.mxu1  ;;  %v10947_v47 = vadd.f32 %v11768_v53, %v11767_v35  ;;  %v11772_v51 = vld [vmem:[#allocation35_spill] sm:$0xff] }
 0x1fd   : > { %v8082_v29 = vpack.c.bf16 %v3004_v45, %v3004_v45  ;;  %3355 = vst [vmem:[#allocation4 + $0x70] sm:$0xf] %v8113_v8  ;;  %3929 = vst [vmem:[#allocation4 + $0x34] sm:$0xf] %v8113_v8  ;;  %v8118_v60 = vpack.c.bf16 %v2942_v41, %v2942_v41  ;;  %v2940_v44 = vmax.f32 %v2908_v27, 0.0  ;;  %v2616_v14 = vadd.f32 %v2503_v1, %v2323_v22  ;;  %v11778_v53 = vld [vmem:[#allocation32_spill] sm:$0xff] }
 0x1fe   : > { %2974 = vst [vmem:[#allocation3 + $0x61] sm:$0xff] %v2942_v41  ;;  %v10935_v26 = vpop.f32.mrf.mxu0  ;;  %v2911_v62 = vadd.f32 %v9289_v38, %v2618_v21  ;;  %v9258_v24 = vpop.f32.mrf.mxu1  ;;  %v11771_v38 = vld [vmem:[#allocation26_spill] sm:$0xff]  ;;  %v2037_v17 = vadd.f32 %v11772_v51, %v10905_v54  ;;  %v2330_v52 = vadd.f32 %v11774_v6, %v10947_v47 }
 0x1ff   : > { %v3002_v56 = vld [vmem:[#allocation3 + $0x18] sm:$0xff]  ;;  %3164 = vst [vmem:[#allocation4 + $0x90] sm:$0xf] %v8082_v29  ;;  %3738 = vst [vmem:[#allocation4 + $0x54] sm:$0xf] %v8082_v29  ;;  %v8116_v46 = vpack.c.bf16 %v2940_v44, %v2940_v44  ;;  %v2621_v58 = vadd.f32 %v9258_v24, %v2328_v28  ;;  %v2909_v0 = vadd.f32 %v2796_v15, %v2616_v14  ;;  %v11773_v28 = vld [vmem:[#allocation27_spill] sm:$0xff] }
 0x200   : > { %4313 = vst [vmem:[#allocation4 + $0x18] sm:$0xf] %v8082_v29  ;;  %v8080_v59 = vpack.c.bf16 %v3002_v56, %v3002_v56  ;;  %3360 = vst [vmem:[#allocation4 + $0x124] sm:$0xf] %v8118_v60  ;;  %v10943_v19 = vpop.f32.mrf.mxu0  ;;  %v2943_v16 = vmax.f32 %v2911_v62, 0.0  ;;  %v2516_v25 = vpop.f32.mrf.mxu1  ;;  %v2327_v9 = vadd.f32 %v11771_v38, %v2033_v20  ;;  %v2332_v29 = vadd.f32 %v11773_v28, %v10939_v57  ;;  %v11776_v62 = vld [vmem:[#allocation11_spill] sm:$0xff] }
 0x201   : > { %3934 = vst [vmem:[#allocation4 + $0xe8] sm:$0xf] %v8118_v60  ;;  %4509 = vst [vmem:[#allocation4 + $0xac] sm:$0xf] %v8118_v60  ;;  %v3005_v30 = vld [vmem:[#allocation3 + $0x38] sm:$0xff]  ;;  %v2941_v4 = vmax.f32 %v2909_v0, 0.0  ;;  %v2619_v37 = vadd.f32 %v2516_v25, %v2326_v23  ;;  %v2914_v48 = vadd.f32 %v9292_v2, %v2621_v58  ;;  %v10973_v47 = vadd.f32 %v11778_v53, %v2037_v17 }
 0x202   : > { %2972 = vst [vmem:[#allocation3 + $0x49] sm:$0xff] %v2940_v44  ;;  %v3388_v42 = vld [vmem:[#allocation3 + $0x32] sm:$0xff]  ;;  %v3389_v39 = vld [vmem:[#allocation3 + $0x3a] sm:$0xff]  ;;  %3162 = vst [vmem:[#allocation4 + $0x48] sm:$0xf] %v8080_v59  ;;  %v8083_v5 = vpack.c.bf16 %v3005_v30, %v3005_v30  ;;  %v2812_v32 = vpop.f32.mrf.mxu0  ;;  %v8119_v12 = vpack.c.bf16 %v2943_v16, %v2943_v16  ;;  %v9259_v22 = vpop.f32.mrf.mxu1 }
 0x203   : > { %3736 = vst [vmem:[#allocation4 + $0xc] sm:$0xf] %v8080_v59  ;;  %v8146_v33 = vpack.c.bf16 %v3388_v42, %v3388_v42  ;;  %v8147_v50 = vpack.c.bf16 %v3389_v39, %v3389_v39  ;;  %3358 = vst [vmem:[#allocation4 + $0xdc] sm:$0xf] %v8116_v46  ;;  %v3003_v36 = vld [vmem:[#allocation3 + $0x20] sm:$0xff]  ;;  %v8117_v21 = vpack.c.bf16 %v2941_v4, %v2941_v4  ;;  %v2946_v2 = vmax.f32 %v2914_v48, 0.0 }
 0x204   : > { %3932 = vst [vmem:[#allocation4 + $0xa0] sm:$0xf] %v8116_v46  ;;  %4507 = vst [vmem:[#allocation4 + $0x64] sm:$0xf] %v8116_v46  ;;  %v3386_v15 = vld [vmem:[#allocation3 + $0x1a] sm:$0xff]  ;;  %v3387_v7 = vld [vmem:[#allocation3 + $0x22] sm:$0xff]  ;;  %v8081_v8 = vpack.c.bf16 %v3003_v36, %v3003_v36  ;;  %v9296_v27 = vpop.f32.mrf.mxu0  ;;  %v2622_v45 = vadd.f32 %v9259_v22, %v2329_v10  ;;  %v2912_v1 = vadd.f32 %v10935_v26, %v2619_v37  ;;  %v2519_v11 = vpop.f32.mrf.mxu1 }
 0x205   : > { %2975 = vst [vmem:[#allocation3 + $0x69] sm:$0xff] %v2943_v16  ;;  %3165 = vst [vmem:[#allocation4 + $0xb4] sm:$0xf] %v8083_v5  ;;  %v8144_v41 = vpack.c.bf16 %v3386_v15, %v3386_v15  ;;  %v8145_v54 = vpack.c.bf16 %v3387_v7, %v3387_v7  ;;  %v3008_v20 = vld [vmem:[#allocation3 + $0x60] sm:$0xff]  ;;  %v9590_v60 = vld [vmem:[#allocation5 + $0x238] sm:$0xff]   ;;  %v2620_v14 = vadd.f32 %v2519_v11, %v2327_v9 }
 0x206   : > { %3548 = vst [vmem:[#allocation4 + $0x98] sm:$0xf] %v8146_v33  ;;  %3549 = vst [vmem:[#allocation4 + $0xbc] sm:$0xf] %v8147_v50  ;;  %v8086_v44 = vpack.c.bf16 %v3008_v20, %v3008_v20  ;;  %v11775_v26 = vld [vmem:[#allocation30_spill] sm:$0xff]  ;;  %v10965_v57 = vpop.f32.mrf.mxu0  ;;  %v11777_v24 = vld [vmem:[#allocation37_spill] sm:$0xff]  ;;  %v8122_v43 = vpack.c.bf16 %v2946_v2, %v2946_v2  ;;  %v2915_v59 = vadd.f32 %v10943_v19, %v2622_v45  ;;  %v9262_v46 = vpop.f32.mrf.mxu1  ;;  %9348 = vmatprep.subr.bf16.mxu0 %v9590_v60 }
 0x207   : > { %3739 = vst [vmem:[#allocation4 + $0x78] sm:$0xf] %v8083_v5  ;;  %4122 = vst [vmem:[#allocation4 + $0x5c] sm:$0xf] %v8146_v33  ;;  %v10963_v56 = vadd.f32 %v11775_v26, %v10951_v61  ;;  %v10969_v40 = vadd.f32 %v11777_v24, %v11776_v62  ;;  %v2944_v10 = vmax.f32 %v2912_v1, 0.0  ;;  %v2625_v0 = vadd.f32 %v9262_v46, %v2332_v29  ;;  %v11780_v61 = vld [vmem:[#allocation39_spill] sm:$0xff] }
 0x208   : > { %4123 = vst [vmem:[#allocation4 + $0x80] sm:$0xf] %v8147_v50  ;;  %4314 = vst [vmem:[#allocation4 + $0x3c] sm:$0xf] %v8083_v5  ;;  %v2913_v35 = vadd.f32 %v2812_v32, %v2620_v14  ;;  %v10975_v18 = vpop.f32.mrf.mxu0  ;;  %v10979_v30 = vadd.f32 %v11780_v61, %v11779_v49  ;;  %v11781_v42 = vld [vmem:[#allocation13_spill] sm:$0xff]  ;;  %v2947_v25 = vmax.f32 %v2915_v59, 0.0  ;;  %v2532_v38 = vpop.f32.mrf.mxu1 }
 0x209   : > { %4697 = vst [vmem:[#allocation4 + $0x20] sm:$0xf] %v8146_v33  ;;  %4698 = vst [vmem:[#allocation4 + $0x44] sm:$0xf] %v8147_v50  ;;  %v3006_v23 = vld [vmem:[#allocation3 + $0x48] sm:$0xff]  ;;  %v11782_v39 = vld [vmem:[#allocation41_spill] sm:$0xff]  ;;  %v8120_v16 = vpack.c.bf16 %v2944_v10, %v2944_v10  ;;  %v2623_v51 = vadd.f32 %v2532_v38, %v2330_v52  ;;  %v2918_v17 = vadd.f32 %v9296_v27, %v2625_v0 }
 0x20a   : > { %2973 = vst [vmem:[#allocation3 + $0x51] sm:$0xff] %v2941_v4  ;;  %3361 = vst [vmem:[#allocation4 + $0x148] sm:$0xf] %v8119_v12  ;;  %v8084_v58 = vpack.c.bf16 %v3006_v23, %v3006_v23  ;;  %v10983_v19 = vadd.f32 %v11782_v39, %v11781_v42  ;;  %v11783_v9 = vld [vmem:[#allocation43_spill] sm:$0xff]  ;;  %v2945_v32 = vmax.f32 %v2913_v35, 0.0  ;;  %v10989_v36 = vpop.f32.mrf.mxu0  ;;  %v11784_v28 = vld [vmem:[#allocation34_spill] sm:$0xff] }
 0x20b   : > { %3935 = vst [vmem:[#allocation4 + $0x10c] sm:$0xf] %v8119_v12  ;;  %4510 = vst [vmem:[#allocation4 + $0xd0] sm:$0xf] %v8119_v12  ;;  %v10987_v5 = vadd.f32 %v11783_v9, %v10911_v55  ;;  %v8123_v55 = vpack.c.bf16 %v2947_v25, %v2947_v25  ;;  %v2916_v1 = vadd.f32 %v10965_v57, %v2623_v51  ;;  %v9476_v14 = vld [vmem:[#allocation4 + $0x94] ss:$36 sps:$4 sm:$0xff]  }
 0x20c   : > { %3163 = vst [vmem:[#allocation4 + $0x6c] sm:$0xf] %v8081_v8  ;;  %3546 = vst [vmem:[#allocation4 + $0x50] sm:$0xf] %v8144_v41  ;;  %v3009_v33 = vld [vmem:[#allocation3 + $0x68] sm:$0xff]  ;;  %v8121_v20 = vpack.c.bf16 %v2945_v32, %v2945_v32  ;;  %v10991_v27 = vpop.f32.mrf.mxu0  ;;  %v2336_v29 = vadd.f32 %v11784_v28, %v10969_v40  ;;  %v11785_v6 = vld [vmem:[#allocation14_spill] sm:$0xff] }
 0x20d   : > { %3547 = vst [vmem:[#allocation4 + $0x74] sm:$0xf] %v8145_v54  ;;  %3737 = vst [vmem:[#allocation4 + $0x30] sm:$0xf] %v8081_v8  ;;  %v3392_v50 = vld [vmem:[#allocation3 + $0x62] sm:$0xff]  ;;  %v3393_v4 = vld [vmem:[#allocation3 + $0x6a] sm:$0xff]  ;;  %v8087_v15 = vpack.c.bf16 %v3009_v33, %v3009_v33  ;;  %v9263_v8 = vpop.f32.mrf.mxu1 }
 0x20e   : > { %4120 = vst [vmem:[#allocation4 + $0x14] sm:$0xf] %v8144_v41  ;;  %4121 = vst [vmem:[#allocation4 + $0x38] sm:$0xf] %v8145_v54  ;;  %v8150_v7 = vpack.c.bf16 %v3392_v50, %v3392_v50  ;;  %v8151_v12 = vpack.c.bf16 %v3393_v4, %v3393_v4  ;;  %v2626_v45 = vadd.f32 %v9263_v8, %v10963_v56  ;;  %v11786_v52 = vld [vmem:[#allocation45_spill] sm:$0xff]  ;;  %v11787_v24 = vld [vmem:[#allocation36_spill] sm:$0xff] }
 0x20f   : > { %3359 = vst [vmem:[#allocation4 + $0x100] sm:$0xf] %v8117_v21  ;;  %3933 = vst [vmem:[#allocation4 + $0xc4] sm:$0xf] %v8117_v21  ;;  %v2535_v11 = vpop.f32.mrf.mxu1  ;;  %v10999_v26 = vadd.f32 %v11786_v52, %v11785_v6  ;;  %v9471_v62 = vld [vmem:[#allocation4 + $0x8] ss:$36 sps:$4 sm:$0xff]   ;;  %v2334_v40 = vadd.f32 %v11787_v24, %v10979_v30 }
 0x210   : > { %4508 = vst [vmem:[#allocation4 + $0x88] sm:$0xf] %v8117_v21  ;;  %2978 = vst [vmem:[#allocation3 + $0x91] sm:$0xff] %v2946_v2  ;;  %v2950_v2 = vmax.f32 %v2918_v17, 0.0  ;;  %v2624_v57 = vadd.f32 %v2535_v11, %v10973_v47  ;;  %v11788_v23 = vld [vmem:[#allocation38_spill] sm:$0xff]  ;;  %v9523_v59 = vld [vmem:[#allocation5 + $0x1b8] sm:$0xff]   ;;  %v2919_v35 = vadd.f32 %v10975_v18, %v2626_v45 }
 0x211   : > { %3168 = vst [vmem:[#allocation4 + $0x120] sm:$0xf] %v8086_v44  ;;  %3742 = vst [vmem:[#allocation4 + $0xe4] sm:$0xf] %v8086_v44  ;;  %v3007_v37 = vld [vmem:[#allocation3 + $0x50] sm:$0xff]  ;;  %v2948_v0 = vmax.f32 %v2916_v1, 0.0  ;;  %v9266_v53 = vpop.f32.mrf.mxu1 }
 0x212   : > { %4317 = vst [vmem:[#allocation4 + $0xa8] sm:$0xf] %v8086_v44  ;;  %3364 = vst [vmem:[#allocation4 + $0x1b4] sm:$0xf] %v8122_v43  ;;  %v3390_v48 = vld [vmem:[#allocation3 + $0x4a] sm:$0xff]  ;;  %v3391_v22 = vld [vmem:[#allocation3 + $0x52] sm:$0xff]  ;;  %v8085_v41 = vpack.c.bf16 %v3007_v37, %v3007_v37  ;;  %v2629_v39 = vadd.f32 %v9266_v53, %v2336_v29 }
 0x213   : > { %3938 = vst [vmem:[#allocation4 + $0x178] sm:$0xf] %v8122_v43  ;;  %4513 = vst [vmem:[#allocation4 + $0x13c] sm:$0xf] %v8122_v43  ;;  %v8148_v54 = vpack.c.bf16 %v3390_v48, %v3390_v48  ;;  %v8149_v21 = vpack.c.bf16 %v3391_v22, %v3391_v22  ;;  %v9468_v60 = vld [vmem:[#allocation4 + $0x48] ss:$36 sps:$4 sm:$0xff]   ;;  %v11006_v43 = vadd.f32 %v11788_v23, %v10983_v19 }
 0x214   : > { %2976 = vst [vmem:[#allocation3 + $0x79] sm:$0xff] %v2944_v10  ;;  %3166 = vst [vmem:[#allocation4 + $0xd8] sm:$0xf] %v8084_v58  ;;  %v9470_v44 = vld [vmem:[#allocation4 + $0x4c] ss:$36 sps:$4 sm:$0xff]   ;;  %v11008_v10 = vpop.f32.mrf.mxu0  ;;  %v11789_v49 = vld [vmem:[#allocation15_spill] sm:$0xff]  ;;  %v2917_v19 = vadd.f32 %v10989_v36, %v2624_v57  ;;  %v8124_v51 = vpack.c.bf16 %v2948_v0, %v2948_v0  ;;  %v11030_v36 = vadd.f32 %v10840_v13, %v10924_v34 }
 0x215   : > { %3740 = vst [vmem:[#allocation4 + $0x9c] sm:$0xf] %v8084_v58  ;;  %4315 = vst [vmem:[#allocation4 + $0x60] sm:$0xf] %v8084_v58  ;;  %v8126_v58 = vpack.c.bf16 %v2950_v2, %v2950_v2  ;;  %6502 = vmatprep.mubr.bf16.mxu0 %v9470_v44  ;;  %v9473_v47 = vld [vmem:[#allocation4 + $0xc] ss:$36 sps:$4 sm:$0xff]   ;;  %v2922_v22 = vadd.f32 %v10991_v27, %v2629_v39 }
 0x216   : > { %3362 = vst [vmem:[#allocation4 + $0x16c] sm:$0xf] %v8120_v16  ;;  %3936 = vst [vmem:[#allocation4 + $0x130] sm:$0xf] %v8120_v16  ;;  %v11790_v61 = vld [vmem:[#allocation47_spill] sm:$0xff]  ;;  %6503 = vmatmul.mubr.bf16.gmra.mxu0 %v9468_v60  ;;  %v11020_v9 = vpop.f32.mrf.mxu0  ;;  %v11022_v18 = vld [vmem:[#allocation5 + $0x1f0] sm:$0xff]   ;;  %6655 = vmatprep.mubr.bf16.mxu1 %v9473_v47 }
 0x217   : > { %4511 = vst [vmem:[#allocation4 + $0xf4] sm:$0xf] %v8120_v16  ;;  %2979 = vst [vmem:[#allocation3 + $0x99] sm:$0xff] %v2947_v25  ;;  %v3012_v56 = vld [vmem:[#allocation3 + $0x90] sm:$0xff]  ;;  %v11013_v42 = vadd.f32 %v11790_v61, %v11789_v49  ;;  %v9479_v16 = vld [vmem:[#allocation4 + $0x54] ss:$36 sps:$4 sm:$0xff]   ;;  %6510 = vmatprep.mubr.bf16.mxu0 %v9476_v14  ;;  %6656 = vmatmul.mubr.bf16.vlgmr.msra.gmra.mxu1 %v9471_v62 }
 0x218   : > { %2977 = vst [vmem:[#allocation3 + $0x81] sm:$0xff] %v2945_v32  ;;  %3169 = vst [vmem:[#allocation4 + $0x144] sm:$0xf] %v8087_v15  ;;  %v8090_v46 = vpack.c.bf16 %v3012_v56, %v3012_v56  ;;  %v11791_v25 = vld [vmem:[#allocation40_spill] sm:$0xff]  ;;  %v11793_v50 = vld [vmem:[#allocation49_spill] sm:$0xff]  ;;  %v2951_v17 = vmax.f32 %v2919_v35, 0.0  ;;  %6663 = vmatprep.mubr.bf16.mxu1 %v9479_v16  ;;  %8873 = vmatpush3.bf16.msra.mxu1 %v9523_v59 }
 0x219   : > { %3552 = vst [vmem:[#allocation4 + $0x128] sm:$0xf] %v8150_v7  ;;  %3553 = vst [vmem:[#allocation4 + $0x14c] sm:$0xf] %v8151_v12  ;;  %v11018_v38 = vadd.f32 %v11791_v25, %v10987_v5  ;;  %v11792_v33 = vld [vmem:[#allocation16_spill] sm:$0xff]  ;;  %v2548_v5 = vpop.f32.mrf.mxu1  ;;  %v2949_v37 = vmax.f32 %v2917_v19, 0.0  ;;  %8874 = vmatprep.subr.bf16.mxu1 %v11022_v18 }
 0x21a   : > { %3743 = vst [vmem:[#allocation4 + $0x108] sm:$0xf] %v8087_v15  ;;  %4126 = vst [vmem:[#allocation4 + $0xec] sm:$0xf] %v8150_v7  ;;  %v11026_v4 = vadd.f32 %v11793_v50, %v11792_v33  ;;  %v2627_v48 = vadd.f32 %v2548_v5, %v2334_v40  ;;  %v8127_v34 = vpack.c.bf16 %v2951_v17, %v2951_v17  ;;  %v9539_v29 = vld [vmem:[#allocation5 + $0x1b0] sm:$0xff]   ;;  %v2954_v60 = vmax.f32 %v2922_v22, 0.0 }
 0x21b   : > { %4127 = vst [vmem:[#allocation4 + $0x110] sm:$0xf] %v8151_v12  ;;  %4318 = vst [vmem:[#allocation4 + $0xcc] sm:$0xf] %v8087_v15  ;;  %v3010_v30 = vld [vmem:[#allocation3 + $0x78] sm:$0xff]  ;;  %v8125_v11 = vpack.c.bf16 %v2949_v37, %v2949_v37  ;;  %v11794_v52 = vld [vmem:[#allocation42_spill] sm:$0xff] }
 0x21c   : > { %4701 = vst [vmem:[#allocation4 + $0xb0] sm:$0xf] %v8150_v7  ;;  %4702 = vst [vmem:[#allocation4 + $0xd4] sm:$0xf] %v8151_v12  ;;  %v8088_v32 = vpack.c.bf16 %v3010_v30, %v3010_v30  ;;  %v2920_v14 = vadd.f32 %v11008_v10, %v2627_v48  ;;  %v2340_v56 = vadd.f32 %v11794_v52, %v10999_v26  ;;  %v9554_v57 = vld [vmem:[#allocation5 + $0x1e8] sm:$0xff]   ;;  %v11796_v24 = vld [vmem:[#allocation52_spill] sm:$0xff]  ;;  %8875 = vmatpush3.bf16.msra.mxu1 %v9539_v29 }
 0x21d   : > { %3365 = vst [vmem:[#allocation4 + $0x1d8] sm:$0xf] %v8123_v55  ;;  %3939 = vst [vmem:[#allocation4 + $0x19c] sm:$0xf] %v8123_v55  ;;  %v11795_v62 = vld [vmem:[#allocation17_spill] sm:$0xff]  ;;  %v11797_v10 = vld [vmem:[#allocation44_spill] sm:$0xff]  ;;  %v8130_v47 = vpack.c.bf16 %v2954_v60, %v2954_v60  ;;  %8876 = vmatprep.subr.bf16.mxu1 %v9554_v57 }
 0x21e   : > { %4514 = vst [vmem:[#allocation4 + $0x160] sm:$0xf] %v8123_v55  ;;  %4699 = vst [vmem:[#allocation4 + $0x68] sm:$0xf] %v8148_v54  ;;  %v3013_v15 = vld [vmem:[#allocation3 + $0x98] sm:$0xff]  ;;  %v11033_v55 = vpop.f32.mrf.mxu0  ;;  %v11044_v40 = vadd.f32 %v11796_v24, %v11795_v62  ;;  %v2338_v59 = vadd.f32 %v11797_v10, %v11013_v42  ;;  %v2952_v49 = vmax.f32 %v2920_v14, 0.0 }
 0x21f   : > { %4700 = vst [vmem:[#allocation4 + $0x8c] sm:$0xf] %v8149_v21  ;;  %3167 = vst [vmem:[#allocation4 + $0xfc] sm:$0xf] %v8085_v41  ;;  %v3396_v7 = vld [vmem:[#allocation3 + $0x92] sm:$0xff]  ;;  %v3397_v12 = vld [vmem:[#allocation3 + $0x9a] sm:$0xff]  ;;  %v8091_v8 = vpack.c.bf16 %v3013_v15, %v3013_v15 }
 0x220   : > { %3550 = vst [vmem:[#allocation4 + $0xe0] sm:$0xf] %v8148_v54  ;;  %3551 = vst [vmem:[#allocation4 + $0x104] sm:$0xf] %v8149_v21  ;;  %v3395_v13 = vld [vmem:[#allocation3 + $0x82] sm:$0xff]  ;;  %v11035_v28 = vpop.f32.mrf.mxu0  ;;  %v11055_v35 = vld [vmem:[#allocation5 + $0x1a8] sm:$0xff]   ;;  %v8128_v5 = vpack.c.bf16 %v2952_v49, %v2952_v49 }
 0x221   : > { %3741 = vst [vmem:[#allocation4 + $0xc0] sm:$0xf] %v8085_v41  ;;  %4124 = vst [vmem:[#allocation4 + $0xa4] sm:$0xf] %v8148_v54  ;;  %v8155_v54 = vpack.c.bf16 %v3397_v12, %v3397_v12  ;;  %v8153_v1 = vpack.c.bf16 %v3395_v13, %v3395_v13  ;;  %v9474_v26 = vld [vmem:[#allocation4 + $0x90] ss:$36 sps:$4 sm:$0xff]   ;;  %8877 = vmatpush3.bf16.msra.mxu1 %v11055_v35 }
 0x222   : > { %4125 = vst [vmem:[#allocation4 + $0xc8] sm:$0xf] %v8149_v21  ;;  %4316 = vst [vmem:[#allocation4 + $0x84] sm:$0xf] %v8085_v41  ;;  %v8154_v41 = vpack.c.bf16 %v3396_v7, %v3396_v7  ;;  %v3011_v21 = vld [vmem:[#allocation3 + $0x80] sm:$0xff]  ;;  %v11058_v19 = vld [vmem:[#allocation5 + $0x1e0] sm:$0xff]   ;;  %6511 = vmatmul.mubr.bf16.gmra.mxu0 %v9474_v26 }
 0x223   : > { %3363 = vst [vmem:[#allocation4 + $0x190] sm:$0xf] %v8121_v20  ;;  %3937 = vst [vmem:[#allocation4 + $0x154] sm:$0xf] %v8121_v20  ;;  %v8089_v27 = vpack.c.bf16 %v3011_v21, %v3011_v21  ;;  %v9484_v39 = vld [vmem:[#allocation4 + $0xdc] ss:$36 sps:$4 sm:$0xff]   ;;  %8878 = vmatprep.subr.bf16.mxu1 %v11058_v19 }
 0x224   : > { %4512 = vst [vmem:[#allocation4 + $0x118] sm:$0xf] %v8121_v20  ;;  %2982 = vst [vmem:[#allocation3 + $0xc1] sm:$0xff] %v2950_v2  ;;  %v3394_v20 = vld [vmem:[#allocation3 + $0x7a] sm:$0xff]  ;;  %v9267_v2 = vpop.f32.mrf.mxu1  ;;  %v11799_v33 = vld [vmem:[#allocation48_spill] sm:$0xff]  ;;  %6518 = vmatprep.mubr.bf16.mxu0 %v9484_v39 }
 0x225   : > { %3172 = vst [vmem:[#allocation4 + $0x1b0] sm:$0xf] %v8090_v46  ;;  %3746 = vst [vmem:[#allocation4 + $0x174] sm:$0xf] %v8090_v46  ;;  %v8152_v45 = vpack.c.bf16 %v3394_v20, %v3394_v20  ;;  %v2630_v44 = vadd.f32 %v9267_v2, %v11006_v43  ;;  %v9477_v42 = vld [vmem:[#allocation4 + $0x50] ss:$36 sps:$4 sm:$0xff]   ;;  %v11063_v50 = vadd.f32 %v11799_v33, %v11030_v36 }
 0x226   : > { %4321 = vst [vmem:[#allocation4 + $0x138] sm:$0xf] %v8090_v46  ;;  %3368 = vst [vmem:[#allocation4 + $0x244] sm:$0xf] %v8126_v58  ;;  %v2551_v6 = vpop.f32.mrf.mxu1  ;;  %v11798_v46 = vld [vmem:[#allocation46_spill] sm:$0xff]  ;;  %v11802_v36 = vld [vmem:[#allocation19_spill] sm:$0xff]  ;;  %6664 = vmatmul.mubr.bf16.gmra.mxu1 %v9477_v42 }
 0x227   : > { %3942 = vst [vmem:[#allocation4 + $0x208] sm:$0xf] %v8126_v58  ;;  %4517 = vst [vmem:[#allocation4 + $0x1cc] sm:$0xf] %v8126_v58  ;;  %v2628_v43 = vadd.f32 %v2551_v6, %v11018_v38  ;;  %v11051_v58 = vadd.f32 %v11798_v46, %v11026_v4  ;;  %v2923_v61 = vadd.f32 %v11020_v9, %v2630_v44  ;;  %v11801_v9 = vld [vmem:[#allocation54_spill] sm:$0xff]  ;;  %v11803_v12 = vld [vmem:[#allocation56_spill] sm:$0xff] }
 0x228   : > { %2980 = vst [vmem:[#allocation3 + $0xa9] sm:$0xff] %v2948_v0  ;;  %3170 = vst [vmem:[#allocation4 + $0x168] sm:$0xf] %v8088_v32  ;;  %v11053_v0 = vpop.f32.mrf.mxu0  ;;  %v9270_v30 = vpop.f32.mrf.mxu1  ;;  %v9487_v18 = vld [vmem:[#allocation4 + $0x9c] ss:$36 sps:$4 sm:$0xff]   ;;  %v11804_v52 = vld [vmem:[#allocation58_spill] sm:$0xff] }
 0x229   : > { %3744 = vst [vmem:[#allocation4 + $0x12c] sm:$0xf] %v8088_v32  ;;  %4319 = vst [vmem:[#allocation4 + $0xf0] sm:$0xf] %v8088_v32  ;;  %v2633_v25 = vadd.f32 %v9270_v30, %v2340_v56  ;;  %v2921_v38 = vadd.f32 %v11033_v55, %v2628_v43  ;;  %v11800_v32 = vld [vmem:[#allocation18_spill] sm:$0xff]  ;;  %v2955_v15 = vmax.f32 %v2923_v61, 0.0  ;;  %6671 = vmatprep.mubr.bf16.mxu1 %v9487_v18 }
 0x22a   : > { %3366 = vst [vmem:[#allocation4 + $0x1fc] sm:$0xf] %v8124_v51  ;;  %3940 = vst [vmem:[#allocation4 + $0x1c0] sm:$0xf] %v8124_v51  ;;  %v11065_v4 = vpop.f32.mrf.mxu0  ;;  %v2564_v7 = vpop.f32.mrf.mxu1  ;;  %v11078_v20 = vld [vmem:[#allocation5 + $0x1a0] sm:$0xff]   ;;  %v11085_v56 = vadd.f32 %v11804_v52, %v10929_v63  ;;  %v9580_v63 = vld [vmem:[#allocation5 + $0x1d8] sm:$0xff]  }
 0x22b   : > { %4515 = vst [vmem:[#allocation4 + $0x184] sm:$0xf] %v8124_v51  ;;  %2983 = vst [vmem:[#allocation3 + $0xc9] sm:$0xff] %v2951_v17  ;;  %v3016_v23 = vld [vmem:[#allocation3 + $0xc0] sm:$0xff]  ;;  %v11069_v51 = vadd.f32 %v11801_v9, %v11800_v32  ;;  %v9482_v43 = vld [vmem:[#allocation4 + $0xd8] ss:$36 sps:$4 sm:$0xff]   ;;  %8879 = vmatpush3.bf16.msra.mxu1 %v11078_v20 }
 0x22c   : > { %2981 = vst [vmem:[#allocation3 + $0xb1] sm:$0xff] %v2949_v37  ;;  %3173 = vst [vmem:[#allocation4 + $0x1d4] sm:$0xf] %v8091_v8  ;;  %v8094_v53 = vpack.c.bf16 %v3016_v23, %v3016_v23  ;;  %v11073_v37 = vadd.f32 %v11803_v12, %v11802_v36  ;;  %v11076_v21 = vpop.f32.mrf.mxu0  ;;  %v11807_v35 = vld [vmem:[#allocation53_spill] sm:$0xff]  ;;  %v9587_v42 = vld [vmem:[#allocation5 + $0x198] sm:$0xff]   ;;  %6519 = vmatmul.mubr.bf16.gmra.mxu0 %v9482_v43  ;;  %8880 = vmatprep.subr.bf16.mxu1 %v9580_v63 }
 0x22d   : > { %3556 = vst [vmem:[#allocation4 + $0x1b8] sm:$0xf] %v8154_v41  ;;  %3557 = vst [vmem:[#allocation4 + $0x1dc] sm:$0xf] %v8155_v54  ;;  %v9485_v33 = vld [vmem:[#allocation4 + $0x98] ss:$36 sps:$4 sm:$0xff]  }
 0x22e   : > { %3747 = vst [vmem:[#allocation4 + $0x198] sm:$0xf] %v8091_v8  ;;  %4130 = vst [vmem:[#allocation4 + $0x17c] sm:$0xf] %v8154_v41  ;;  %v11080_v6 = vpop.f32.mrf.mxu0  ;;  %v9588_v12 = vld [vmem:[#allocation5 + $0x1d0] sm:$0xff]   ;;  %6672 = vmatmul.mubr.bf16.gmra.mxu1 %v9485_v33 }
 0x22f   : > { %4131 = vst [vmem:[#allocation4 + $0x1a0] sm:$0xf] %v8155_v54  ;;  %4322 = vst [vmem:[#allocation4 + $0x15c] sm:$0xf] %v8091_v8  ;;  %v3014_v16 = vld [vmem:[#allocation3 + $0xa8] sm:$0xff]  ;;  %v2953_v8 = vmax.f32 %v2921_v38, 0.0  ;;  %8881 = vmatpush3.bf16.msra.mxu1 %v9587_v42 }
 0x230   : > { %4705 = vst [vmem:[#allocation4 + $0x140] sm:$0xf] %v8154_v41  ;;  %4706 = vst [vmem:[#allocation4 + $0x164] sm:$0xf] %v8155_v54  ;;  %v8092_v17 = vpack.c.bf16 %v3014_v16, %v3014_v16  ;;  %v2631_v41 = vadd.f32 %v2564_v7, %v2338_v59  ;;  %v2926_v54 = vadd.f32 %v11035_v28, %v2633_v25  ;;  %v9271_v28 = vpop.f32.mrf.mxu1  ;;  %v11805_v59 = vld [vmem:[#allocation50_spill] sm:$0xff]  ;;  %v11808_v25 = vld [vmem:[#allocation20_spill] sm:$0xff]  ;;  %8882 = vmatprep.subr.bf16.mxu1 %v9588_v12 }
 0x231   : > { %3369 = vst [vmem:[#allocation4 + $0x268] sm:$0xf] %v8127_v34  ;;  %3943 = vst [vmem:[#allocation4 + $0x22c] sm:$0xf] %v8127_v34  ;;  %v8129_v14 = vpack.c.bf16 %v2953_v8, %v2953_v8  ;;  %v2634_v62 = vadd.f32 %v9271_v28, %v11051_v58  ;;  %v2344_v46 = vadd.f32 %v11805_v59, %v11044_v40  ;;  %v11806_v58 = vld [vmem:[#allocation51_spill] sm:$0xff]  ;;  %v11809_v40 = vld [vmem:[#allocation60_spill] sm:$0xff] }
 0x232   : > { %4518 = vst [vmem:[#allocation4 + $0x1f0] sm:$0xf] %v8127_v34  ;;  %4703 = vst [vmem:[#allocation4 + $0xf8] sm:$0xf] %v8152_v45  ;;  %v3017_v48 = vld [vmem:[#allocation3 + $0xc8] sm:$0xff]  ;;  %v2958_v57 = vmax.f32 %v2926_v54, 0.0  ;;  %v2924_v24 = vadd.f32 %v11053_v0, %v2631_v41  ;;  %v2567_v23 = vpop.f32.mrf.mxu1  ;;  %v2342_v0 = vadd.f32 %v11806_v58, %v11069_v51  ;;  %v11104_v38 = vadd.f32 %v11809_v40, %v11808_v25 }
 0x233   : > { %4704 = vst [vmem:[#allocation4 + $0x11c] sm:$0xf] %v8153_v1  ;;  %3171 = vst [vmem:[#allocation4 + $0x18c] sm:$0xf] %v8089_v27  ;;  %v3400_v22 = vld [vmem:[#allocation3 + $0xc2] sm:$0xff]  ;;  %v3401_v55 = vld [vmem:[#allocation3 + $0xca] sm:$0xff]  ;;  %v8095_v13 = vpack.c.bf16 %v3017_v48, %v3017_v48  ;;  %v2632_v10 = vadd.f32 %v2567_v23, %v11063_v50  ;;  %v2927_v39 = vadd.f32 %v11065_v4, %v2634_v62 }
 0x234   : > { %3554 = vst [vmem:[#allocation4 + $0x170] sm:$0xf] %v8152_v45  ;;  %3555 = vst [vmem:[#allocation4 + $0x194] sm:$0xf] %v8153_v1  ;;  %v8158_v34 = vpack.c.bf16 %v3400_v22, %v3400_v22  ;;  %v8159_v2 = vpack.c.bf16 %v3401_v55, %v3401_v55  ;;  %v8134_v61 = vpack.c.bf16 %v2958_v57, %v2958_v57  ;;  %v2956_v30 = vmax.f32 %v2924_v24, 0.0  ;;  %v9274_v19 = vpop.f32.mrf.mxu1  ;;  %v11810_v7 = vld [vmem:[#allocation55_spill] sm:$0xff] }
 0x235   : > { %3745 = vst [vmem:[#allocation4 + $0x150] sm:$0xf] %v8089_v27  ;;  %4128 = vst [vmem:[#allocation4 + $0x134] sm:$0xf] %v8152_v45  ;;  %v3398_v45 = vld [vmem:[#allocation3 + $0xaa] sm:$0xff]  ;;  %v2637_v50 = vadd.f32 %v9274_v19, %v2344_v46  ;;  %v2925_v32 = vadd.f32 %v11076_v21, %v2632_v10  ;;  %v11112_v36 = vadd.f32 %v11810_v7, %v11085_v56  ;;  %v11812_v48 = vld [vmem:[#allocation62_spill] sm:$0xff] }
 0x236   : > { %4129 = vst [vmem:[#allocation4 + $0x158] sm:$0xf] %v8153_v1  ;;  %4320 = vst [vmem:[#allocation4 + $0x114] sm:$0xf] %v8089_v27  ;;  %v3015_v27 = vld [vmem:[#allocation3 + $0xb0] sm:$0xff]  ;;  %v8132_v51 = vpack.c.bf16 %v2956_v30, %v2956_v30  ;;  %v2053_v10 = vadd.f32 %v10874_v31, %v10932_v3  ;;  %v11816_v25 = vld [vmem:[#allocation59_spill] sm:$0xff] }
 0x237   : > { %3367 = vst [vmem:[#allocation4 + $0x220] sm:$0xf] %v8125_v11  ;;  %3941 = vst [vmem:[#allocation4 + $0x1e4] sm:$0xf] %v8125_v11  ;;  %v3399_v1 = vld [vmem:[#allocation3 + $0xb2] sm:$0xff]  ;;  %v8093_v29 = vpack.c.bf16 %v3015_v27, %v3015_v27  ;;  %v2957_v54 = vmax.f32 %v2925_v32, 0.0  ;;  %v2930_v20 = vadd.f32 %v11080_v6, %v2637_v50 }
 0x238   : > { %4516 = vst [vmem:[#allocation4 + $0x1a8] sm:$0xf] %v8125_v11  ;;  %2986 = vst [vmem:[#allocation3 + $0xf1] sm:$0xff] %v2954_v60  ;;  %v8131_v11 = vpack.c.bf16 %v2955_v15, %v2955_v15  ;;  %v8156_v60 = vpack.c.bf16 %v3398_v45, %v3398_v45  ;;  %v8157_v44 = vpack.c.bf16 %v3399_v1, %v3399_v1  ;;  %v9490_v16 = vld [vmem:[#allocation4 + $0x124] ss:$36 sps:$4 sm:$0xff]  }
 0x239   : > { %3176 = vst [vmem:[#allocation4 + $0x240] sm:$0xf] %v8094_v53  ;;  %3750 = vst [vmem:[#allocation4 + $0x204] sm:$0xf] %v8094_v53  ;;  %6526 = vmatprep.mubr.bf16.mxu0 %v9490_v16  ;;  %v8133_v52 = vpack.c.bf16 %v2957_v54, %v2957_v54  ;;  %v11814_v62 = vld [vmem:[#allocation64_spill] sm:$0xff]  ;;  %v2962_v23 = vmax.f32 %v2930_v20, 0.0 }
 0x23a   : > { %4325 = vst [vmem:[#allocation4 + $0x1c8] sm:$0xf] %v8094_v53  ;;  %3372 = vst [vmem:[#allocation4 + $0x2d4] sm:$0xf] %v8130_v47  ;;  %v11097_v53 = vadd.f32 %v11807_v35, %v11073_v37  ;;  %v11811_v37 = vld [vmem:[#allocation21_spill] sm:$0xff] }
 0x23b   : > { %3946 = vst [vmem:[#allocation4 + $0x298] sm:$0xf] %v8130_v47  ;;  %4521 = vst [vmem:[#allocation4 + $0x25c] sm:$0xf] %v8130_v47  ;;  %v11099_v47 = vpop.f32.mrf.mxu0  ;;  %v11116_v22 = vadd.f32 %v11812_v48, %v11811_v37  ;;  %v9488_v46 = vld [vmem:[#allocation4 + $0x120] ss:$36 sps:$4 sm:$0xff]  }
 0x23c   : > { %2984 = vst [vmem:[#allocation3 + $0xd9] sm:$0xff] %v2952_v49  ;;  %3174 = vst [vmem:[#allocation4 + $0x1f8] sm:$0xf] %v8092_v17  ;;  %v9491_v19 = vld [vmem:[#allocation4 + $0xe0] ss:$36 sps:$4 sm:$0xff]   ;;  %6527 = vmatmul.mubr.bf16.gmra.mxu0 %v9488_v46  ;;  %v11818_v37 = vld [vmem:[#allocation63_spill] sm:$0xff] }
 0x23d   : > { %3748 = vst [vmem:[#allocation4 + $0x1bc] sm:$0xf] %v8092_v17  ;;  %4323 = vst [vmem:[#allocation4 + $0x180] sm:$0xf] %v8092_v17  ;;  %v11107_v9 = vpop.f32.mrf.mxu0  ;;  %v2959_v17 = vmax.f32 %v2927_v39, 0.0  ;;  %v2346_v40 = vadd.f32 %v11816_v25, %v11116_v22  ;;  %v2347_v48 = vadd.f32 %v11818_v37, %v2053_v10 }
 0x23e   : > { %3370 = vst [vmem:[#allocation4 + $0x28c] sm:$0xf] %v8128_v5  ;;  %3944 = vst [vmem:[#allocation4 + $0x250] sm:$0xf] %v8128_v5  ;;  %v9501_v32 = vld [vmem:[#allocation4 + $0x12c] ss:$36 sps:$4 sm:$0xff]  }
 0x23f   : > { %4519 = vst [vmem:[#allocation4 + $0x214] sm:$0xf] %v8128_v5  ;;  %2987 = vst [vmem:[#allocation3 + $0xf9] sm:$0xff] %v2955_v15  ;;  %v3020_v26 = vld [vmem:[#allocation3 + $0xf0] sm:$0xff]  ;;  %v2580_v5 = vpop.f32.mrf.mxu1  ;;  %v9507_v46 = vld [vmem:[#allocation4 + $0x174] ss:$36 sps:$4 sm:$0xff]  }
 0x240   : > { %2985 = vst [vmem:[#allocation3 + $0xe1] sm:$0xff] %v2953_v8  ;;  %3177 = vst [vmem:[#allocation4 + $0x264] sm:$0xf] %v8095_v13  ;;  %v8098_v49 = vpack.c.bf16 %v3020_v26, %v3020_v26  ;;  %v9493_v15 = vld [vmem:[#allocation4 + $0xe4] ss:$36 sps:$4 sm:$0xff]   ;;  %v2635_v21 = vadd.f32 %v2580_v5, %v2342_v0 }
 0x241   : > { %3560 = vst [vmem:[#allocation4 + $0x248] sm:$0xf] %v8158_v34  ;;  %3561 = vst [vmem:[#allocation4 + $0x26c] sm:$0xf] %v8159_v2  ;;  %6679 = vmatprep.mubr.bf16.mxu1 %v9493_v15  ;;  %v11815_v0 = vld [vmem:[#allocation57_spill] sm:$0xff] }
 0x242   : > { %3751 = vst [vmem:[#allocation4 + $0x228] sm:$0xf] %v8095_v13  ;;  %4134 = vst [vmem:[#allocation4 + $0x20c] sm:$0xf] %v8158_v34  ;;  %v2928_v26 = vadd.f32 %v11099_v47, %v2635_v21  ;;  %v2348_v35 = vadd.f32 %v11815_v0, %v11104_v38  ;;  %6680 = vmatmul.mubr.bf16.gmra.mxu1 %v9491_v19 }
 0x243   : > { %4135 = vst [vmem:[#allocation4 + $0x230] sm:$0xf] %v8159_v2  ;;  %4326 = vst [vmem:[#allocation4 + $0x1ec] sm:$0xf] %v8095_v13  ;;  %v3018_v18 = vld [vmem:[#allocation3 + $0xd8] sm:$0xff]  ;;  %v11119_v13 = vpop.f32.mrf.mxu0  ;;  %6687 = vmatprep.mubr.bf16.mxu1 %v9501_v32 }
 0x244   : > { %4709 = vst [vmem:[#allocation4 + $0x1d0] sm:$0xf] %v8158_v34  ;;  %4710 = vst [vmem:[#allocation4 + $0x1f4] sm:$0xf] %v8159_v2  ;;  %v8096_v4 = vpack.c.bf16 %v3018_v18, %v3018_v18  ;;  %v11121_v34 = vld [vmem:[#allocation5 + $0x190] sm:$0xff]   ;;  %v2960_v47 = vmax.f32 %v2928_v26, 0.0 }
 0x245   : > { %3373 = vst [vmem:[#allocation4 + $0x2f8] sm:$0xf] %v8131_v11  ;;  %3947 = vst [vmem:[#allocation4 + $0x2bc] sm:$0xf] %v8131_v11  ;;  %v11123_v56 = vpop.f32.mrf.mxu0  ;;  %8883 = vmatpush3.bf16.msra.mxu1 %v11121_v34 }
 0x246   : > { %4522 = vst [vmem:[#allocation4 + $0x280] sm:$0xf] %v8131_v11  ;;  %4707 = vst [vmem:[#allocation4 + $0x188] sm:$0xf] %v8156_v60  ;;  %v3021_v55 = vld [vmem:[#allocation3 + $0xf8] sm:$0xff]  ;;  %v8136_v18 = vpack.c.bf16 %v2960_v47, %v2960_v47 }
 0x247   : > { %4708 = vst [vmem:[#allocation4 + $0x1ac] sm:$0xf] %v8157_v44  ;;  %3175 = vst [vmem:[#allocation4 + $0x21c] sm:$0xf] %v8093_v29  ;;  %v3404_v8 = vld [vmem:[#allocation3 + $0xf2] sm:$0xff]  ;;  %v3405_v41 = vld [vmem:[#allocation3 + $0xfa] sm:$0xff]  ;;  %v8099_v2 = vpack.c.bf16 %v3021_v55, %v3021_v55  ;;  %v11136_v31 = vpop.f32.mrf.mxu0 }
 0x248   : > { %3558 = vst [vmem:[#allocation4 + $0x200] sm:$0xf] %v8156_v60  ;;  %3559 = vst [vmem:[#allocation4 + $0x224] sm:$0xf] %v8157_v44  ;;  %v8162_v27 = vpack.c.bf16 %v3404_v8, %v3404_v8  ;;  %v8163_v45 = vpack.c.bf16 %v3405_v41, %v3405_v41  ;;  %v3019_v1 = vld [vmem:[#allocation3 + $0xe0] sm:$0xff] }
 0x249   : > { %3749 = vst [vmem:[#allocation4 + $0x1e0] sm:$0xf] %v8093_v29  ;;  %4132 = vst [vmem:[#allocation4 + $0x1c4] sm:$0xf] %v8156_v60  ;;  %v3402_v11 = vld [vmem:[#allocation3 + $0xda] sm:$0xff]  ;;  %v3403_v28 = vld [vmem:[#allocation3 + $0xe2] sm:$0xff]  ;;  %v9275_v60 = vpop.f32.mrf.mxu1 }
 0x24a   : > { %4133 = vst [vmem:[#allocation4 + $0x1e8] sm:$0xf] %v8157_v44  ;;  %4324 = vst [vmem:[#allocation4 + $0x1a4] sm:$0xf] %v8093_v29  ;;  %v8135_v29 = vpack.c.bf16 %v2959_v17, %v2959_v17  ;;  %v8097_v44 = vpack.c.bf16 %v3019_v1, %v3019_v1  ;;  %v8161_v6 = vpack.c.bf16 %v3403_v28, %v3403_v28 }
 0x24b   : > { %3371 = vst [vmem:[#allocation4 + $0x2b0] sm:$0xf] %v8129_v14  ;;  %3945 = vst [vmem:[#allocation4 + $0x274] sm:$0xf] %v8129_v14  ;;  %v2638_v63 = vadd.f32 %v9275_v60, %v11097_v53  ;;  %v2583_v43 = vpop.f32.mrf.mxu1  ;;  %v8138_v53 = vpack.c.bf16 %v2962_v23, %v2962_v23 }
 0x24c   : > { %4520 = vst [vmem:[#allocation4 + $0x238] sm:$0xf] %v8129_v14  ;;  %2990 = vst [vmem:[#allocation3 + $0x121] sm:$0xff] %v2958_v57  ;;  %v8160_v14 = vpack.c.bf16 %v3402_v11, %v3402_v11  ;;  %v11813_v57 = vld [vmem:[#allocation22_spill] sm:$0xff]  ;;  %v2636_v58 = vadd.f32 %v2583_v43, %v11112_v36 }
 0x24d   : > { %3180 = vst [vmem:[#allocation4 + $0x2d0] sm:$0xf] %v8098_v49  ;;  %3754 = vst [vmem:[#allocation4 + $0x294] sm:$0xf] %v8098_v49  ;;  %v11127_v24 = vadd.f32 %v11814_v62, %v11813_v57 }
 0x24e   : > { %4329 = vst [vmem:[#allocation4 + $0x258] sm:$0xf] %v8098_v49  ;;  %3376 = vst [vmem:[#allocation4 + $0x364] sm:$0xf] %v8134_v61  ;;  %v2931_v49 = vadd.f32 %v11107_v9, %v2638_v63  ;;  %v2929_v42 = vadd.f32 %v11119_v13, %v2636_v58  ;;  %v11817_v9 = vld [vmem:[#allocation61_spill] sm:$0xff] }
 0x24f   : > { %3950 = vst [vmem:[#allocation4 + $0x328] sm:$0xf] %v8134_v61  ;;  %4525 = vst [vmem:[#allocation4 + $0x2ec] sm:$0xf] %v8134_v61  ;;  %v9278_v61 = vpop.f32.mrf.mxu1  ;;  %v9499_v63 = vld [vmem:[#allocation4 + $0x128] ss:$36 sps:$4 sm:$0xff]  }
 0x250   : > { %2988 = vst [vmem:[#allocation3 + $0x109] sm:$0xff] %v2956_v30  ;;  %3178 = vst [vmem:[#allocation4 + $0x288] sm:$0xf] %v8096_v4  ;;  %v9498_v30 = vld [vmem:[#allocation4 + $0x16c] ss:$36 sps:$4 sm:$0xff]   ;;  %v2641_v16 = vadd.f32 %v9278_v61, %v2348_v35  ;;  %v2963_v33 = vmax.f32 %v2931_v49, 0.0  ;;  %6688 = vmatmul.mubr.bf16.gmra.mxu1 %v9499_v63 }
 0x251   : > { %3752 = vst [vmem:[#allocation4 + $0x24c] sm:$0xf] %v8096_v4  ;;  %4327 = vst [vmem:[#allocation4 + $0x210] sm:$0xf] %v8096_v4  ;;  %v2596_v50 = vpop.f32.mrf.mxu1  ;;  %6534 = vmatprep.mubr.bf16.mxu0 %v9498_v30  ;;  %v2349_v4 = vadd.f32 %v11817_v9, %v11127_v24  ;;  %v2961_v7 = vmax.f32 %v2929_v42, 0.0  ;;  %6695 = vmatprep.mubr.bf16.mxu1 %v9507_v46 }
 0x252   : > { %3374 = vst [vmem:[#allocation4 + $0x31c] sm:$0xf] %v8132_v51  ;;  %3948 = vst [vmem:[#allocation4 + $0x2e0] sm:$0xf] %v8132_v51  ;;  %v2639_v36 = vadd.f32 %v2596_v50, %v2346_v40  ;;  %v2934_v12 = vadd.f32 %v11123_v56, %v2641_v16  ;;  %v8139_v20 = vpack.c.bf16 %v2963_v33, %v2963_v33  ;;  %v9504_v24 = vld [vmem:[#allocation4 + $0x1b4] ss:$36 sps:$4 sm:$0xff]  }
 0x253   : > { %4523 = vst [vmem:[#allocation4 + $0x2a4] sm:$0xf] %v8132_v51  ;;  %2991 = vst [vmem:[#allocation3 + $0x129] sm:$0xff] %v2959_v17  ;;  %v3024_v59 = vld [vmem:[#allocation3 + $0x120] sm:$0xff]  ;;  %v11145_v51 = vpop.f32.mrf.mxu0  ;;  %v9279_v13 = vpop.f32.mrf.mxu1  ;;  %v9512_v50 = vld [vmem:[#allocation4 + $0x1fc] ss:$36 sps:$4 sm:$0xff]  }
 0x254   : > { %2989 = vst [vmem:[#allocation3 + $0x111] sm:$0xff] %v2957_v54  ;;  %3181 = vst [vmem:[#allocation4 + $0x2f4] sm:$0xf] %v8099_v2  ;;  %v8102_v3 = vpack.c.bf16 %v3024_v59, %v3024_v59  ;;  %v2966_v1 = vmax.f32 %v2934_v12, 0.0  ;;  %v2642_v11 = vadd.f32 %v9279_v13, %v2349_v4  ;;  %v2932_v28 = vadd.f32 %v11136_v31, %v2639_v36  ;;  %v9515_v4 = vld [vmem:[#allocation4 + $0x1bc] ss:$36 sps:$4 sm:$0xff]  }
 0x255   : > { %3564 = vst [vmem:[#allocation4 + $0x2d8] sm:$0xf] %v8162_v27  ;;  %3565 = vst [vmem:[#allocation4 + $0x2fc] sm:$0xf] %v8163_v45  ;;  %v2892_v60 = vpop.f32.mrf.mxu0  ;;  %v9513_v13 = vld [vmem:[#allocation4 + $0x1b8] ss:$36 sps:$4 sm:$0xff]  }
 0x256   : > { %3755 = vst [vmem:[#allocation4 + $0x2b8] sm:$0xf] %v8099_v2  ;;  %4138 = vst [vmem:[#allocation4 + $0x29c] sm:$0xf] %v8162_v27  ;;  %v8236_v56 = vpack.c.bf16 %v2966_v1, %v2966_v1  ;;  %v2964_v57 = vmax.f32 %v2932_v28, 0.0  ;;  %v2935_v62 = vadd.f32 %v11145_v51, %v2642_v11  ;;  %v9595_v28 = vld [vmem:[#allocation5 + $0x188] sm:$0xff]  }
 0x257   : > { %4139 = vst [vmem:[#allocation4 + $0x2c0] sm:$0xf] %v8163_v45  ;;  %4330 = vst [vmem:[#allocation4 + $0x27c] sm:$0xf] %v8099_v2  ;;  %v3022_v39 = vld [vmem:[#allocation3 + $0x108] sm:$0xff] }
 0x258   : > { %4713 = vst [vmem:[#allocation4 + $0x260] sm:$0xf] %v8162_v27  ;;  %4714 = vst [vmem:[#allocation4 + $0x284] sm:$0xf] %v8163_v45  ;;  %v8100_v38 = vpack.c.bf16 %v3022_v39, %v3022_v39  ;;  %v8137_v45 = vpack.c.bf16 %v2961_v7, %v2961_v7  ;;  %v8140_v10 = vpack.c.bf16 %v2964_v57, %v2964_v57  ;;  %v2967_v59 = vmax.f32 %v2935_v62, 0.0 }
 0x259   : > { %3377 = vst [vmem:[#allocation4 + $0x388] sm:$0xf] %v8135_v29  ;;  %3951 = vst [vmem:[#allocation4 + $0x34c] sm:$0xf] %v8135_v29  ;;  %v9529_v62 = vld [vmem:[#allocation4 + $0x248] ss:$36 sps:$4 sm:$0xff]  }
 0x25a   : > { %4526 = vst [vmem:[#allocation4 + $0x310] sm:$0xf] %v8135_v29  ;;  %4711 = vst [vmem:[#allocation4 + $0x218] sm:$0xf] %v8160_v14  ;;  %v3025_v17 = vld [vmem:[#allocation3 + $0x128] sm:$0xff]  ;;  %v2599_v29 = vpop.f32.mrf.mxu1  ;;  %v8237_v39 = vpack.c.bf16 %v2967_v59, %v2967_v59 }
 0x25b   : > { %4712 = vst [vmem:[#allocation4 + $0x23c] sm:$0xf] %v8161_v6  ;;  %3179 = vst [vmem:[#allocation4 + $0x2ac] sm:$0xf] %v8097_v44  ;;  %v3408_v5 = vld [vmem:[#allocation3 + $0x122] sm:$0xff]  ;;  %v3409_v15 = vld [vmem:[#allocation3 + $0x12a] sm:$0xff]  ;;  %v8103_v22 = vpack.c.bf16 %v3025_v17, %v3025_v17 }
 0x25c   : > { %3562 = vst [vmem:[#allocation4 + $0x290] sm:$0xf] %v8160_v14  ;;  %3563 = vst [vmem:[#allocation4 + $0x2b4] sm:$0xf] %v8161_v6  ;;  %v8166_v55 = vpack.c.bf16 %v3408_v5, %v3408_v5  ;;  %v8167_v8 = vpack.c.bf16 %v3409_v15, %v3409_v15  ;;  %v3023_v41 = vld [vmem:[#allocation3 + $0x110] sm:$0xff] }
 0x25d   : > { %3753 = vst [vmem:[#allocation4 + $0x270] sm:$0xf] %v8097_v44  ;;  %4136 = vst [vmem:[#allocation4 + $0x254] sm:$0xf] %v8160_v14  ;;  %v3406_v54 = vld [vmem:[#allocation3 + $0x10a] sm:$0xff]  ;;  %v3407_v21 = vld [vmem:[#allocation3 + $0x112] sm:$0xff]  ;;  %v8101_v34 = vpack.c.bf16 %v3023_v41, %v3023_v41 }
 0x25e   : > { %4137 = vst [vmem:[#allocation4 + $0x278] sm:$0xf] %v8161_v6  ;;  %4328 = vst [vmem:[#allocation4 + $0x234] sm:$0xf] %v8097_v44  ;;  %v8164_v2 = vpack.c.bf16 %v3406_v54, %v3406_v54  ;;  %v8165_v27 = vpack.c.bf16 %v3407_v21, %v3407_v21  ;;  %v9496_v14 = vld [vmem:[#allocation4 + $0x168] ss:$36 sps:$4 sm:$0xff]   ;;  %v2640_v6 = vadd.f32 %v2599_v29, %v2347_v48  ;;  %v11151_v54 = vpop.f32.mrf.mxu1  ;;  %v8552_v21 = vpop.f32.mrf.mxu0 }
 0x25f   : > { %3375 = vst [vmem:[#allocation4 + $0x340] sm:$0xf] %v8133_v52  ;;  %3949 = vst [vmem:[#allocation4 + $0x304] sm:$0xf] %v8133_v52  ;;  %6535 = vmatmul.mubr.bf16.gmra.mxu0 %v9496_v14  ;;  %v9510_v41 = vld [vmem:[#allocation4 + $0x1f8] ss:$36 sps:$4 sm:$0xff]  }
 0x260   : > { %4524 = vst [vmem:[#allocation4 + $0x2c8] sm:$0xf] %v8133_v52  ;;  %2994 = vst [vmem:[#allocation3 + $0x151] sm:$0xff] %v2962_v23  ;;  %v2933_v26 = vadd.f32 %v2892_v60, %v2640_v6  ;;  %6542 = vmatprep.mubr.bf16.mxu0 %v9504_v24  ;;  %v9516_v29 = vld [vmem:[#allocation4 + $0x240] ss:$36 sps:$4 sm:$0xff]  }
 0x261   : > { %3184 = vst [vmem:[#allocation4 + $0x360] sm:$0xf] %v8102_v3  ;;  %3758 = vst [vmem:[#allocation4 + $0x324] sm:$0xf] %v8102_v3  ;;  %v9528_v60 = vld [vmem:[#allocation4 + $0x28c] ss:$36 sps:$4 sm:$0xff]  }
 0x262   : > { %4333 = vst [vmem:[#allocation4 + $0x2e8] sm:$0xf] %v8102_v3  ;;  %3380 = vst [vmem:[#allocation4 + $0x3f4] sm:$0xf] %v8138_v53  ;;  %v2965_v31 = vmax.f32 %v2933_v26, 0.0  ;;  %v9599_v6 = vld [vmem:[#allocation5 + $0x1c0] sm:$0xff]  }
 0x263   : > { %3954 = vst [vmem:[#allocation4 + $0x3b8] sm:$0xf] %v8138_v53  ;;  %4529 = vst [vmem:[#allocation4 + $0x37c] sm:$0xf] %v8138_v53  ;;  %v9537_v24 = vld [vmem:[#allocation4 + $0x294] ss:$36 sps:$4 sm:$0xff]  }
 0x264   : > { %2992 = vst [vmem:[#allocation3 + $0x139] sm:$0xff] %v2960_v47  ;;  %3182 = vst [vmem:[#allocation4 + $0x318] sm:$0xf] %v8100_v38  ;;  %v8141_v25 = vpack.c.bf16 %v2965_v31, %v2965_v31  ;;  %v9531_v14 = vld [vmem:[#allocation4 + $0x24c] ss:$36 sps:$4 sm:$0xff]  }
 0x265   : > { %3756 = vst [vmem:[#allocation4 + $0x2dc] sm:$0xf] %v8100_v38  ;;  %4331 = vst [vmem:[#allocation4 + $0x2a0] sm:$0xf] %v8100_v38  ;;  %v9502_v38 = vld [vmem:[#allocation4 + $0x1b0] ss:$36 sps:$4 sm:$0xff]  }
 0x266   : > { %3378 = vst [vmem:[#allocation4 + $0x3ac] sm:$0xf] %v8136_v18  ;;  %3952 = vst [vmem:[#allocation4 + $0x370] sm:$0xf] %v8136_v18  ;;  %v9544_v63 = vld [vmem:[#allocation4 + $0x31c] ss:$36 sps:$4 sm:$0xff]  }
 0x267   : > { %4527 = vst [vmem:[#allocation4 + $0x334] sm:$0xf] %v8136_v18  ;;  %2995 = vst [vmem:[#allocation3 + $0x159] sm:$0xff] %v2963_v33  ;;  %v3028_v44 = vld [vmem:[#allocation3 + $0x150] sm:$0xff]  ;;  %v9505_v33 = vld [vmem:[#allocation4 + $0x170] ss:$36 sps:$4 sm:$0xff]   ;;  %6543 = vmatmul.mubr.bf16.gmra.mxu0 %v9502_v38 }
 0x268   : > { %2993 = vst [vmem:[#allocation3 + $0x141] sm:$0xff] %v2961_v7  ;;  %3185 = vst [vmem:[#allocation4 + $0x384] sm:$0xf] %v8103_v22  ;;  %v8106_v52 = vpack.c.bf16 %v3028_v44, %v3028_v44  ;;  %6550 = vmatprep.mubr.bf16.mxu0 %v9512_v50  ;;  %6696 = vmatmul.mubr.bf16.gmra.mxu1 %v9505_v33  ;;  %v9519_v44 = vld [vmem:[#allocation4 + $0x200] ss:$36 sps:$4 sm:$0xff]  }
 0x269   : > { %3568 = vst [vmem:[#allocation4 + $0x368] sm:$0xf] %v8166_v55  ;;  %3569 = vst [vmem:[#allocation4 + $0x38c] sm:$0xf] %v8167_v8  ;;  %6703 = vmatprep.mubr.bf16.mxu1 %v9515_v4  ;;  %v9535_v26 = vld [vmem:[#allocation4 + $0x290] ss:$36 sps:$4 sm:$0xff]  }
 0x26a   : > { %3759 = vst [vmem:[#allocation4 + $0x348] sm:$0xf] %v8103_v22  ;;  %4142 = vst [vmem:[#allocation4 + $0x32c] sm:$0xf] %v8166_v55 }
 0x26b   : > { %4143 = vst [vmem:[#allocation4 + $0x350] sm:$0xf] %v8167_v8  ;;  %4334 = vst [vmem:[#allocation4 + $0x30c] sm:$0xf] %v8103_v22  ;;  %v3026_v23 = vld [vmem:[#allocation3 + $0x138] sm:$0xff] }
 0x26c   : > { %4717 = vst [vmem:[#allocation4 + $0x2f0] sm:$0xf] %v8166_v55  ;;  %4718 = vst [vmem:[#allocation4 + $0x314] sm:$0xf] %v8167_v8  ;;  %v8104_v43 = vpack.c.bf16 %v3026_v23, %v3026_v23  ;;  %v9532_v23 = vld [vmem:[#allocation4 + $0x2d0] ss:$36 sps:$4 sm:$0xff]  }
 0x26d   : > { %3381 = vst [vmem:[#allocation4 + $0x418] sm:$0xf] %v8139_v20  ;;  %3955 = vst [vmem:[#allocation4 + $0x3dc] sm:$0xf] %v8139_v20 }
 0x26e   : > { %4530 = vst [vmem:[#allocation4 + $0x3a0] sm:$0xf] %v8139_v20  ;;  %4715 = vst [vmem:[#allocation4 + $0x2a8] sm:$0xf] %v8164_v2  ;;  %v3029_v58 = vld [vmem:[#allocation3 + $0x158] sm:$0xff] }
 0x26f   : > { %4716 = vst [vmem:[#allocation4 + $0x2cc] sm:$0xf] %v8165_v27  ;;  %3183 = vst [vmem:[#allocation4 + $0x33c] sm:$0xf] %v8101_v34  ;;  %v3412_v0 = vld [vmem:[#allocation3 + $0x152] sm:$0xff]  ;;  %v3413_v35 = vld [vmem:[#allocation3 + $0x15a] sm:$0xff]  ;;  %v8107_v3 = vpack.c.bf16 %v3029_v58, %v3029_v58  ;;  %6551 = vmatmul.mubr.bf16.gmra.mxu0 %v9510_v41 }
 0x270   : > { %3566 = vst [vmem:[#allocation4 + $0x320] sm:$0xf] %v8164_v2  ;;  %3567 = vst [vmem:[#allocation4 + $0x344] sm:$0xf] %v8165_v27  ;;  %v8170_v53 = vpack.c.bf16 %v3412_v0, %v3412_v0  ;;  %v8171_v47 = vpack.c.bf16 %v3413_v35, %v3413_v35  ;;  %v3027_v49 = vld [vmem:[#allocation3 + $0x140] sm:$0xff]  ;;  %6704 = vmatmul.mubr.bf16.gmra.mxu1 %v9513_v13  ;;  %v9620_v41 = vld [vmem:[#allocation5 + $0x228] sm:$0xff]  }
 0x271   : > { %3757 = vst [vmem:[#allocation4 + $0x300] sm:$0xf] %v8101_v34  ;;  %4140 = vst [vmem:[#allocation4 + $0x2e4] sm:$0xf] %v8164_v2  ;;  %v3410_v61 = vld [vmem:[#allocation3 + $0x13a] sm:$0xff]  ;;  %v3411_v30 = vld [vmem:[#allocation3 + $0x142] sm:$0xff]  ;;  %v8105_v19 = vpack.c.bf16 %v3027_v49, %v3027_v49 }
 0x272   : > { %4141 = vst [vmem:[#allocation4 + $0x308] sm:$0xf] %v8165_v27  ;;  %4332 = vst [vmem:[#allocation4 + $0x2c4] sm:$0xf] %v8101_v34  ;;  %v8168_v16 = vpack.c.bf16 %v3410_v61, %v3410_v61  ;;  %v8169_v42 = vpack.c.bf16 %v3411_v30, %v3411_v30  ;;  %v9518_v20 = vld [vmem:[#allocation4 + $0x244] ss:$36 sps:$4 sm:$0xff]   ;;  %v8553_v34 = vpop.f32.mrf.mxu0 }
 0x273   : > { %3379 = vst [vmem:[#allocation4 + $0x3d0] sm:$0xf] %v8137_v45  ;;  %3953 = vst [vmem:[#allocation4 + $0x394] sm:$0xf] %v8137_v45  ;;  %6558 = vmatprep.mubr.bf16.mxu0 %v9518_v20  ;;  %v9521_v2 = vld [vmem:[#allocation4 + $0x204] ss:$36 sps:$4 sm:$0xff]  }
 0x274   : > { %4528 = vst [vmem:[#allocation4 + $0x358] sm:$0xf] %v8137_v45  ;;  %2998 = vst [vmem:[#allocation3 + $0x181] sm:$0xff] %v2966_v1  ;;  %v9591_v27 = vld [vmem:[#allocation5 + $0x1c8] sm:$0xff]   ;;  %v8554_v45 = vadd.f32 %v8553_v34, %v8552_v21  ;;  %v5167_v1 = vpop.f32.mrf.mxu1  ;;  %6711 = vmatprep.mubr.bf16.mxu1 %v9521_v2  ;;  %v9545_v0 = vld [vmem:[#allocation4 + $0x2d8] ss:$36 sps:$4 sm:$0xff]  }
 0x275   : > { %3188 = vst [vmem:[#allocation4 + $0x3f0] sm:$0xf] %v8106_v52  ;;  %3762 = vst [vmem:[#allocation4 + $0x3b4] sm:$0xf] %v8106_v52  ;;  %8884 = vmatprep.subr.bf16.mxu1 %v9591_v27  ;;  %v9550_v58 = vld [vmem:[#allocation4 + $0x364] ss:$36 sps:$4 sm:$0xff]  }
 0x276   : > { %4337 = vst [vmem:[#allocation4 + $0x378] sm:$0xf] %v8106_v52  ;;  %3958 = vst [vmem:[#allocation4 + $0x448] sm:$0xf] %v8236_v56  ;;  %v11153_v11 = vadd.f32 %v8554_v45, %v5167_v1  ;;  %8885 = vmatpush3.bf16.msra.mxu1 %v9595_v28  ;;  %v9600_v52 = vld [vmem:[#allocation5 + $0x180] sm:$0xff]   ;;  %v9713_v20 = vld [vmem:[#allocation3] sm:$0xff] }
 0x277   : > { %4533 = vst [vmem:[#allocation4 + $0x40c] sm:$0xf] %v8236_v56  ;;  %2996 = vst [vmem:[#allocation3 + $0x169] sm:$0xff] %v2964_v57  ;;  %6559 = vmatmul.mubr.bf16.gmra.mxu0 %v9516_v29  ;;  %8886 = vmatprep.subr.bf16.mxu1 %v9599_v6  ;;  %v9526_v56 = vld [vmem:[#allocation4 + $0x288] ss:$36 sps:$4 sm:$0xff]   ;;  %v8300_v13 = vpack.c.bf16 %v9713_v20, %v9713_v20  ;;  %v4376_v2 = vld [vmem:[#allocation3 + $0x1a1] sm:$0xff] }
 0x278   : > { %3186 = vst [vmem:[#allocation4 + $0x3a8] sm:$0xf] %v8104_v43  ;;  %3760 = vst [vmem:[#allocation4 + $0x36c] sm:$0xf] %v8104_v43  ;;  %6566 = vmatprep.mubr.bf16.mxu0 %v9528_v60  ;;  %6712 = vmatmul.mubr.bf16.gmra.mxu1 %v9519_v44  ;;  %v9534_v57 = vld [vmem:[#allocation4 + $0x2d4] ss:$36 sps:$4 sm:$0xff]   ;;  %v8333_v45 = vpack.c.bf16 %v4376_v2, %v4376_v2 }
 0x279   : > { %4335 = vst [vmem:[#allocation4 + $0x330] sm:$0xf] %v8104_v43  ;;  %3382 = vst [vmem:[#allocation4 + $0x43c] sm:$0xf] %v8140_v10  ;;  %6719 = vmatprep.mubr.bf16.mxu1 %v9531_v14  ;;  %v9547_v43 = vld [vmem:[#allocation4 + $0x2dc] ss:$36 sps:$4 sm:$0xff]  }
 0x27a   : > { %3956 = vst [vmem:[#allocation4 + $0x400] sm:$0xf] %v8140_v10  ;;  %4531 = vst [vmem:[#allocation4 + $0x3c4] sm:$0xf] %v8140_v10  ;;  %8887 = vmatpush3.bf16.msra.mxu1 %v9600_v52  ;;  %v11155_v10 = vpop.f32.mrf.mxu1  ;;  %v9553_v35 = vld [vmem:[#allocation4 + $0x324] ss:$36 sps:$4 sm:$0xff]  }
 0x27b   : > { %2999 = vst [vmem:[#allocation3 + $0x189] sm:$0xff] %v2967_v59  ;;  %2997 = vst [vmem:[#allocation3 + $0x171] sm:$0xff] %v2965_v31  ;;  %v3606_v40 = vld [vmem:[#allocation3 + $0x180] sm:$0xff]  ;;  %v9542_v59 = vld [vmem:[#allocation4 + $0x318] ss:$36 sps:$4 sm:$0xff]  }
 0x27c   : > { %3189 = vst [vmem:[#allocation4 + $0x414] sm:$0xf] %v8107_v3  ;;  %3572 = vst [vmem:[#allocation4 + $0x3f8] sm:$0xf] %v8170_v53  ;;  %v8204_v18 = vpack.c.bf16 %v3606_v40, %v3606_v40  ;;  %v11157_v46 = vpop.f32.mrf.mxu1  ;;  %v9551_v49 = vld [vmem:[#allocation4 + $0x320] ss:$36 sps:$4 sm:$0xff]  }
 0x27d   : > { %3573 = vst [vmem:[#allocation4 + $0x41c] sm:$0xf] %v8171_v47  ;;  %3763 = vst [vmem:[#allocation4 + $0x3d8] sm:$0xf] %v8107_v3  ;;  %v4375_v34 = vld [vmem:[#allocation3 + $0x199] sm:$0xff]  ;;  %v9633_v29 = vld [vmem:[#allocation5 + $0x220] sm:$0xff]  }
 0x27e   : > { %4146 = vst [vmem:[#allocation4 + $0x3bc] sm:$0xf] %v8170_v53  ;;  %4147 = vst [vmem:[#allocation4 + $0x3e0] sm:$0xf] %v8171_v47  ;;  %v3030_v32 = vld [vmem:[#allocation3 + $0x168] sm:$0xff]  ;;  %v11159_v31 = vpop.f32.mrf.mxu1  ;;  %v8332_v27 = vpack.c.bf16 %v4375_v34, %v4375_v34 }
 0x27f   : > { %4338 = vst [vmem:[#allocation4 + $0x39c] sm:$0xf] %v8107_v3  ;;  %4721 = vst [vmem:[#allocation4 + $0x380] sm:$0xf] %v8170_v53  ;;  %v8108_v9 = vpack.c.bf16 %v3030_v32, %v3030_v32  ;;  %6567 = vmatmul.mubr.bf16.gmra.mxu0 %v9526_v56  ;;  %v9548_v3 = vld [vmem:[#allocation4 + $0x360] ss:$36 sps:$4 sm:$0xff]  }
 0x280   : > { %4722 = vst [vmem:[#allocation4 + $0x3a4] sm:$0xf] %v8171_v47  ;;  %3959 = vst [vmem:[#allocation4 + $0x46c] sm:$0xf] %v8237_v39  ;;  %6574 = vmatprep.mubr.bf16.mxu0 %v9534_v57  ;;  %6720 = vmatmul.mubr.bf16.gmra.mxu1 %v9529_v62  ;;  %v11161_v53 = vpop.f32.mrf.mxu1  ;;  %v9560_v47 = vld [vmem:[#allocation4 + $0x3ac] ss:$36 sps:$4 sm:$0xff]  }
 0x281   : > { %4534 = vst [vmem:[#allocation4 + $0x430] sm:$0xf] %v8237_v39  ;;  %4719 = vst [vmem:[#allocation4 + $0x338] sm:$0xf] %v8168_v16  ;;  %6727 = vmatprep.mubr.bf16.mxu1 %v9537_v24  ;;  %v9592_v1 = vld [vmem:[#allocation4 + $0x58] ss:$36 sps:$4 sm:$0xff]  }
 0x282   : > { %4720 = vst [vmem:[#allocation4 + $0x35c] sm:$0xf] %v8169_v42  ;;  %3187 = vst [vmem:[#allocation4 + $0x3cc] sm:$0xf] %v8105_v19  ;;  %v3607_v51 = vld [vmem:[#allocation3 + $0x188] sm:$0xff]  ;;  %v3031_v12 = vld [vmem:[#allocation3 + $0x170] sm:$0xff]  ;;  %v11163_v30 = vpop.f32.mrf.mxu1 }
 0x283   : > { %3570 = vst [vmem:[#allocation4 + $0x3b0] sm:$0xf] %v8168_v16  ;;  %3571 = vst [vmem:[#allocation4 + $0x3d4] sm:$0xf] %v8169_v42  ;;  %v3990_v17 = vld [vmem:[#allocation3 + $0x182] sm:$0xff]  ;;  %v3991_v5 = vld [vmem:[#allocation3 + $0x18a] sm:$0xff]  ;;  %v8205_v15 = vpack.c.bf16 %v3607_v51, %v3607_v51  ;;  %v8109_v22 = vpack.c.bf16 %v3031_v12, %v3031_v12 }
 0x284   : > { %3761 = vst [vmem:[#allocation4 + $0x390] sm:$0xf] %v8105_v19  ;;  %4144 = vst [vmem:[#allocation4 + $0x374] sm:$0xf] %v8168_v16  ;;  %v8268_v7 = vpack.c.bf16 %v3990_v17, %v3990_v17  ;;  %v8269_v36 = vpack.c.bf16 %v3991_v5, %v3991_v5  ;;  %v3414_v37 = vld [vmem:[#allocation3 + $0x16a] sm:$0xff]  ;;  %v3415_v48 = vld [vmem:[#allocation3 + $0x172] sm:$0xff] }
 0x285   : > { %4145 = vst [vmem:[#allocation4 + $0x398] sm:$0xf] %v8169_v42  ;;  %4336 = vst [vmem:[#allocation4 + $0x354] sm:$0xf] %v8105_v19  ;;  %v8172_v55 = vpack.c.bf16 %v3414_v37, %v3414_v37  ;;  %v8173_v8 = vpack.c.bf16 %v3415_v48, %v3415_v48  ;;  %v11165_v19 = vpop.f32.mrf.mxu1  ;;  %v9566_v16 = vld [vmem:[#allocation4 + $0x3f4] ss:$36 sps:$4 sm:$0xff]  }
 0x286   : > { %3383 = vst [vmem:[#allocation4 + $0x460] sm:$0xf] %v8141_v25  ;;  %3957 = vst [vmem:[#allocation4 + $0x424] sm:$0xf] %v8141_v25  ;;  %v9561_v42 = vld [vmem:[#allocation4 + $0x368] ss:$36 sps:$4 sm:$0xff]  }
 0x287   : > { %4532 = vst [vmem:[#allocation4 + $0x3e8] sm:$0xf] %v8141_v25  ;;  %3766 = vst [vmem:[#allocation4 + $0x444] sm:$0xf] %v8204_v18  ;;  %6575 = vmatmul.mubr.bf16.gmra.mxu0 %v9532_v23  ;;  %v9569_v25 = vld [vmem:[#allocation4 + $0x3b4] ss:$36 sps:$4 sm:$0xff]   ;;  %v11167_v40 = vpop.f32.mrf.mxu1 }
 0x288   : > { %4341 = vst [vmem:[#allocation4 + $0x408] sm:$0xf] %v8204_v18  ;;  %3190 = vst [vmem:[#allocation4 + $0x438] sm:$0xf] %v8108_v9  ;;  %6582 = vmatprep.mubr.bf16.mxu0 %v9544_v63  ;;  %6728 = vmatmul.mubr.bf16.gmra.mxu1 %v9535_v26  ;;  %v9564_v38 = vld [vmem:[#allocation4 + $0x3f0] ss:$36 sps:$4 sm:$0xff]  }
 0x289   : > { %3764 = vst [vmem:[#allocation4 + $0x3fc] sm:$0xf] %v8108_v9  ;;  %4339 = vst [vmem:[#allocation4 + $0x3c0] sm:$0xf] %v8108_v9  ;;  %6735 = vmatprep.mubr.bf16.mxu1 %v9547_v43  ;;  %v9558_v39 = vld [vmem:[#allocation4 + $0x3a8] ss:$36 sps:$4 sm:$0xff]   ;;  %v11169_v18 = vpop.f32.mrf.mxu1 }
 0x28a   : > { %3767 = vst [vmem:[#allocation4 + $0x468] sm:$0xf] %v8205_v15  ;;  %4150 = vst [vmem:[#allocation4 + $0x44c] sm:$0xf] %v8268_v7  ;;  %v9567_v50 = vld [vmem:[#allocation4 + $0x3b0] ss:$36 sps:$4 sm:$0xff]  }
 0x28b   : > { %4151 = vst [vmem:[#allocation4 + $0x470] sm:$0xf] %v8269_v36  ;;  %4342 = vst [vmem:[#allocation4 + $0x42c] sm:$0xf] %v8205_v15  ;;  %v9563_v61 = vld [vmem:[#allocation4 + $0x36c] ss:$36 sps:$4 sm:$0xff]   ;;  %v11171_v9 = vpop.f32.mrf.mxu1 }
 0x28c   : > { %4725 = vst [vmem:[#allocation4 + $0x410] sm:$0xf] %v8268_v7  ;;  %4726 = vst [vmem:[#allocation4 + $0x434] sm:$0xf] %v8269_v36  ;;  %v9586_v17 = vld [vmem:[#allocation4 + $0x14] ss:$36 sps:$4 sm:$0xff]  }
 0x28d   : > { %4723 = vst [vmem:[#allocation4 + $0x3c8] sm:$0xf] %v8172_v55  ;;  %4724 = vst [vmem:[#allocation4 + $0x3ec] sm:$0xf] %v8173_v8  ;;  %v9576_v33 = vld [vmem:[#allocation4 + $0x43c] ss:$36 sps:$4 sm:$0xff]   ;;  %v11173_v51 = vpop.f32.mrf.mxu1 }
 0x28e   : > { %3191 = vst [vmem:[#allocation4 + $0x45c] sm:$0xf] %v8109_v22  ;;  %3574 = vst [vmem:[#allocation4 + $0x440] sm:$0xf] %v8172_v55  ;;  %v9577_v5 = vld [vmem:[#allocation4 + $0x3f8] ss:$36 sps:$4 sm:$0xff]  }
 0x28f   : > { %3575 = vst [vmem:[#allocation4 + $0x464] sm:$0xf] %v8173_v8  ;;  %3765 = vst [vmem:[#allocation4 + $0x420] sm:$0xf] %v8109_v22  ;;  %6583 = vmatmul.mubr.bf16.gmra.mxu0 %v9542_v59  ;;  %v11175_v7 = vpop.f32.mrf.mxu1  ;;  %v9584_v36 = vld [vmem:[#allocation4 + $0x10] ss:$36 sps:$4 sm:$0xff]  }
 0x290   : > { %4148 = vst [vmem:[#allocation4 + $0x404] sm:$0xf] %v8172_v55  ;;  %4149 = vst [vmem:[#allocation4 + $0x428] sm:$0xf] %v8173_v8  ;;  %6590 = vmatprep.mubr.bf16.mxu0 %v9550_v58  ;;  %6736 = vmatmul.mubr.bf16.gmra.mxu1 %v9545_v0  ;;  %v9607_v12 = vld [vmem:[#allocation5 + $0x230] sm:$0xff]   ;;  %v9712_v55 = vld [vmem:[#allocation5 + $0x238] sm:$0xff]  }
 0x291   : > { %4340 = vst [vmem:[#allocation4 + $0x3e4] sm:$0xf] %v8109_v22  ;;  %6743 = vmatprep.mubr.bf16.mxu1 %v9553_v35  ;;  %v9583_v15 = vld [vmem:[#allocation4 + $0x444] ss:$36 sps:$4 sm:$0xff]   ;;  %v11177_v37 = vpop.f32.mrf.mxu1  ;;  %v9594_v48 = vld [vmem:[#allocation4 + $0x5c] ss:$36 sps:$4 sm:$0xff]  }
 0x292   : > { %v9598_v8 = vld [vmem:[#allocation4 + $0x1c] ss:$36 sps:$4 sm:$0xff]   ;;  %4343 = vst [vmem:[#allocation4 + $0x450] sm:$0xf] %v8300_v13  ;;  %4344 = vst [vmem:[#allocation4 + $0x474] sm:$0xf] %v8300_v13 }
 0x293   : > { %v11179_v21 = vpop.f32.mrf.mxu1  ;;  %4535 = vst [vmem:[#allocation4 + $0x454] sm:$0xf] %v8332_v27  ;;  %4536 = vst [vmem:[#allocation4 + $0x478] sm:$0xf] %v8333_v45  ;;  %v9603_v60 = vld [vmem:[#allocation4 + $0xa4] ss:$36 sps:$4 sm:$0xff]  }
 0x294   : > { %v9596_v44 = vld [vmem:[#allocation4 + $0x18] ss:$36 sps:$4 sm:$0xff]   ;;  %v9606_v14 = vld [vmem:[#allocation4 + $0x64] ss:$36 sps:$4 sm:$0xff]   ;;  %v9659_v62 = vld [vmem:[#allocation5 + $0x210] sm:$0xff]  }
 0x295   : > { %v9574_v4 = vld [vmem:[#allocation4 + $0x438] ss:$36 sps:$4 sm:$0xff]   ;;  %v11181_v28 = vpop.f32.mrf.mxu1  ;;  %v9601_v56 = vld [vmem:[#allocation4 + $0xa0] ss:$36 sps:$4 sm:$0xff]   ;;  %v9610_v24 = vld [vmem:[#allocation4 + $0xec] ss:$36 sps:$4 sm:$0xff]  }
 0x296   : > { %v9579_v32 = vld [vmem:[#allocation4 + $0x3fc] ss:$36 sps:$4 sm:$0xff]   ;;  %v9613_v63 = vld [vmem:[#allocation4 + $0xac] ss:$36 sps:$4 sm:$0xff]   ;;  %v9616_v35 = vld [vmem:[#allocation4 + $0x134] ss:$36 sps:$4 sm:$0xff]  }
 0x297   : > { %6591 = vmatmul.mubr.bf16.gmra.mxu0 %v9548_v3  ;;  %v9581_v22 = vld [vmem:[#allocation4 + $0x440] ss:$36 sps:$4 sm:$0xff]   ;;  %v11183_v6 = vpop.f32.mrf.mxu1  ;;  %v9646_v52 = vld [vmem:[#allocation5 + $0x218] sm:$0xff]   ;;  %v9672_v43 = vld [vmem:[#allocation5 + $0x208] sm:$0xff]  }
 0x298   : > { %6598 = vmatprep.mubr.bf16.mxu0 %v9560_v47  ;;  %6744 = vmatmul.mubr.bf16.gmra.mxu1 %v9551_v49  ;;  %v9604_v23 = vld [vmem:[#allocation4 + $0x60] ss:$36 sps:$4 sm:$0xff]   ;;  %v9608_v59 = vld [vmem:[#allocation4 + $0xe8] ss:$36 sps:$4 sm:$0xff]   ;;  %v9619_v47 = vld [vmem:[#allocation4 + $0xf4] ss:$36 sps:$4 sm:$0xff]  }
 0x299   : > { %6751 = vmatprep.mubr.bf16.mxu1 %v9563_v61  ;;  %v11185_v57 = vpop.f32.mrf.mxu1  ;;  %v9685_v0 = vld [vmem:[#allocation5 + $0x200] sm:$0xff]   ;;  %v9611_v3 = vld [vmem:[#allocation4 + $0xa8] ss:$36 sps:$4 sm:$0xff]   ;;  %v9614_v61 = vld [vmem:[#allocation4 + $0x130] ss:$36 sps:$4 sm:$0xff]  }
 0x29a   : > { %v9642_v20 = vld [vmem:[#allocation4 + $0x254] ss:$36 sps:$4 sm:$0xff]   ;;  %v9637_v13 = vld [vmem:[#allocation4 + $0x1c8] ss:$36 sps:$4 sm:$0xff]  }
 0x29b   : > { %v11187_v26 = vpop.f32.mrf.mxu1  ;;  %v9645_v34 = vld [vmem:[#allocation4 + $0x214] ss:$36 sps:$4 sm:$0xff]   ;;  %v4567_v27 = vld [vmem:[#allocation3 + $0x19a] sm:$0xff] }
 0x29c   : > { %v4568_v45 = vld [vmem:[#allocation3 + $0x1a2] sm:$0xff] }
 0x29d   : > { %v11189_v58 = vpop.f32.mrf.mxu1 }
 0x29f   : > { %6599 = vmatmul.mubr.bf16.gmra.mxu0 %v9558_v39  ;;  %v11191_v49 = vpop.f32.mrf.mxu1 }
 0x2a0   : > { %6606 = vmatprep.mubr.bf16.mxu0 %v9566_v16  ;;  %6752 = vmatmul.mubr.bf16.gmra.mxu1 %v9561_v42  ;;  %v9623_v16 = vld [vmem:[#allocation4 + $0x17c] ss:$36 sps:$4 sm:$0xff]   ;;  %v9617_v42 = vld [vmem:[#allocation4 + $0xf0] ss:$36 sps:$4 sm:$0xff]  }
 0x2a1   : > { %6759 = vmatprep.mubr.bf16.mxu1 %v9569_v25  ;;  %v11193_v39 = vpop.f32.mrf.mxu1  ;;  %v9626_v25 = vld [vmem:[#allocation4 + $0x13c] ss:$36 sps:$4 sm:$0xff]  }
 0x2a7   : > { %6607 = vmatmul.mubr.bf16.gmra.mxu0 %v9564_v38  ;;  %v11195_v38 = vpop.f32.mrf.mxu1 }
 0x2a8   : > { %6614 = vmatprep.mubr.bf16.mxu0 %v9576_v33  ;;  %6760 = vmatmul.mubr.bf16.gmra.mxu1 %v9567_v50  ;;  %v9621_v33 = vld [vmem:[#allocation4 + $0x178] ss:$36 sps:$4 sm:$0xff]  }
 0x2a9   : > { %6767 = vmatprep.mubr.bf16.mxu1 %v9579_v32  ;;  %v11197_v50 = vpop.f32.mrf.mxu1  ;;  %v9629_v32 = vld [vmem:[#allocation4 + $0x1c4] ss:$36 sps:$4 sm:$0xff]  }
 0x2af   : > { %6615 = vmatmul.mubr.bf16.gmra.mxu0 %v9574_v4  ;;  %v9624_v4 = vld [vmem:[#allocation4 + $0x138] ss:$36 sps:$4 sm:$0xff]  }
 0x2b0   : > { %6816 = vmatprep.mubr.bf16.mxu0 %v9586_v17  ;;  %6768 = vmatmul.mubr.bf16.gmra.mxu1 %v9577_v5  ;;  %v9632_v17 = vld [vmem:[#allocation4 + $0x184] ss:$36 sps:$4 sm:$0xff]   ;;  %v11199_v5 = vpop.f32.mrf.mxu1 }
 0x2b1   : > { %6775 = vmatprep.mubr.bf16.mxu1 %v9583_v15  ;;  %v9627_v15 = vld [vmem:[#allocation4 + $0x1c0] ss:$36 sps:$4 sm:$0xff]  }
 0x2b7   : > { %6817 = vmatmul.mubr.bf16.vlgmr.msra.gmra.mxu0 %v9584_v36  ;;  %v11201_v36 = vpop.f32.mrf.mxu1 }
 0x2b8   : > { %9349 = vmatpush3.bf16.msra.mxu0 %v9712_v55  ;;  %6824 = vmatprep.mubr.bf16.mxu0 %v9594_v48  ;;  %v9630_v48 = vld [vmem:[#allocation4 + $0x180] ss:$36 sps:$4 sm:$0xff]  }
 0x2b9   : > { %6776 = vmatmul.mubr.bf16.gmra.mxu1 %v9581_v22  ;;  %9350 = vmatprep.subr.bf16.mxu0 %v9607_v12  ;;  %v9639_v22 = vld [vmem:[#allocation4 + $0x1cc] ss:$36 sps:$4 sm:$0xff]   ;;  %v11203_v55 = vpop.f32.mrf.mxu1 }
 0x2ba   : > { %6977 = vmatprep.mubr.bf16.mxu1 %v9598_v8  ;;  %v9634_v8 = vld [vmem:[#allocation4 + $0x208] ss:$36 sps:$4 sm:$0xff]  }
 0x2bc   : > { %9351 = vmatpush3.bf16.msra.mxu0 %v9607_v12  ;;  %v9636_v12 = vld [vmem:[#allocation4 + $0x20c] ss:$36 sps:$4 sm:$0xff]  }
 0x2bd   : > { %9352 = vmatprep.subr.bf16.mxu0 %v9620_v41 }
 0x2bf   : > { %6825 = vmatmul.mubr.bf16.gmra.mxu0 %v9592_v1  ;;  %v8364_v1 = vpack.c.bf16 %v4567_v27, %v4567_v27 }
 0x2c0   : > { %6832 = vmatprep.mubr.bf16.mxu0 %v9603_v60  ;;  %9353 = vmatpush3.bf16.msra.mxu0 %v9620_v41  ;;  %v11205_v41 = vpop.f32.mrf.mxu1  ;;  %v9640_v60 = vld [vmem:[#allocation4 + $0x250] ss:$36 sps:$4 sm:$0xff]  }
 0x2c1   : > { %6978 = vmatmul.mubr.bf16.vlgmr.msra.gmra.mxu1 %v9596_v44  ;;  %9354 = vmatprep.subr.bf16.mxu0 %v9633_v29  ;;  %4727 = vst [vmem:[#allocation4 + $0x458] sm:$0xf] %v8364_v1 }
 0x2c2   : > { %6985 = vmatprep.mubr.bf16.mxu1 %v9606_v14  ;;  %v11207_v2 = vpop.f32.mrf.mxu1  ;;  %v9649_v14 = vld [vmem:[#allocation4 + $0x29c] ss:$36 sps:$4 sm:$0xff]  }
 0x2c4   : > { %9355 = vmatpush3.bf16.msra.mxu0 %v9633_v29  ;;  %v8365_v29 = vpack.c.bf16 %v4568_v45, %v4568_v45  ;;  %v11209_v44 = vpop.f32.mrf.mxu1  ;;  %v9665_v45 = vld [vmem:[#allocation4 + $0x2ec] ss:$36 sps:$4 sm:$0xff]  }
 0x2c5   : > { %9356 = vmatprep.subr.bf16.mxu0 %v9646_v52 }
 0x2c6   : > { %4728 = vst [vmem:[#allocation4 + $0x47c] sm:$0xf] %v8365_v29 }
 0x2c7   : > { %6833 = vmatmul.mubr.bf16.gmra.mxu0 %v9601_v56  ;;  %v9652_v56 = vld [vmem:[#allocation4 + $0x25c] ss:$36 sps:$4 sm:$0xff]  }
 0x2c8   : > { %6840 = vmatprep.mubr.bf16.mxu0 %v9610_v24  ;;  %9357 = vmatpush3.bf16.msra.mxu0 %v9646_v52  ;;  %v9643_v52 = vld [vmem:[#allocation4 + $0x210] ss:$36 sps:$4 sm:$0xff]   ;;  %v11211_v24 = vpop.f32.mrf.mxu1 }
 0x2c9   : > { %6986 = vmatmul.mubr.bf16.gmra.mxu1 %v9604_v23  ;;  %9358 = vmatprep.subr.bf16.mxu0 %v9659_v62 }
 0x2ca   : > { %6993 = vmatprep.mubr.bf16.mxu1 %v9613_v63  ;;  %v9647_v63 = vld [vmem:[#allocation4 + $0x298] ss:$36 sps:$4 sm:$0xff]  }
 0x2cc   : > { %9359 = vmatpush3.bf16.msra.mxu0 %v9659_v62  ;;  %v8555_v62 = vpop.f32.mrf.mxu0 }
 0x2cd   : > { %9360 = vmatprep.subr.bf16.mxu0 %v9672_v43 }
 0x2ce   : > { %v8556_v23 = vpop.f32.mrf.mxu0 }
 0x2cf   : > { %6841 = vmatmul.mubr.bf16.gmra.mxu0 %v9608_v59  ;;  %v9655_v59 = vld [vmem:[#allocation4 + $0x2e4] ss:$36 sps:$4 sm:$0xff]  }
 0x2d0   : > { %6848 = vmatprep.mubr.bf16.mxu0 %v9616_v35  ;;  %9361 = vmatpush3.bf16.msra.mxu0 %v9672_v43  ;;  %v11213_v43 = vpop.f32.mrf.mxu1 }
 0x2d1   : > { %6994 = vmatmul.mubr.bf16.gmra.mxu1 %v9611_v3  ;;  %9362 = vmatprep.subr.bf16.mxu0 %v9685_v0  ;;  %v9658_v3 = vld [vmem:[#allocation4 + $0x2a4] ss:$36 sps:$4 sm:$0xff]  }
 0x2d2   : > { %7001 = vmatprep.mubr.bf16.mxu1 %v9619_v47 }
 0x2d4   : > { %9363 = vmatpush3.bf16.msra.mxu0 %v9685_v0  ;;  %v9650_v0 = vld [vmem:[#allocation4 + $0x258] ss:$36 sps:$4 sm:$0xff]  }
 0x2d6   : > { %v8558_v35 = vpop.f32.mrf.mxu0 }
 0x2d7   : > { %6849 = vmatmul.mubr.bf16.gmra.mxu0 %v9614_v61  ;;  %v8664_v47 = vpop.f32.mrf.mxu1 }
 0x2d8   : > { %6856 = vmatprep.mubr.bf16.mxu0 %v9623_v16  ;;  %v8559_v61 = vpop.f32.mrf.mxu0 }
 0x2d9   : > { %7002 = vmatmul.mubr.bf16.gmra.mxu1 %v9617_v42  ;;  %v8560_v16 = vadd.f32 %v8559_v61, %v8558_v35  ;;  %v8665_v42 = vpop.f32.mrf.mxu1  ;;  %v9668_v35 = vld [vmem:[#allocation4 + $0x374] ss:$36 sps:$4 sm:$0xff]  }
 0x2da   : > { %7009 = vmatprep.mubr.bf16.mxu1 %v9626_v25  ;;  %v8561_v25 = vpop.f32.mrf.mxu0 }
 0x2df   : > { %6857 = vmatmul.mubr.bf16.gmra.mxu0 %v9621_v33  ;;  %v8557_v33 = vadd.f32 %v8556_v23, %v8555_v62  ;;  %v9660_v23 = vld [vmem:[#allocation4 + $0x328] ss:$36 sps:$4 sm:$0xff]  }
 0x2e0   : > { %6864 = vmatprep.mubr.bf16.mxu0 %v9629_v32  ;;  %v8666_v32 = vadd.f32 %v8665_v42, %v8664_v47 }
 0x2e1   : > { %7010 = vmatmul.mubr.bf16.gmra.mxu1 %v9624_v4  ;;  %v9653_v4 = vld [vmem:[#allocation4 + $0x2e0] ss:$36 sps:$4 sm:$0xff]  }
 0x2e2   : > { %7017 = vmatprep.mubr.bf16.mxu1 %v9632_v17  ;;  %v8667_v17 = vpop.f32.mrf.mxu1 }
 0x2e7   : > { %6865 = vmatmul.mubr.bf16.gmra.mxu0 %v9627_v15  ;;  %v8562_v15 = vpop.f32.mrf.mxu0 }
 0x2e8   : > { %6872 = vmatprep.mubr.bf16.mxu0 %v9636_v12  ;;  %v11216_v12 = vadd.f32 %v8666_v32, %v11153_v11 }
 0x2e9   : > { %7018 = vmatmul.mubr.bf16.gmra.mxu1 %v9630_v48  ;;  %v8563_v48 = vadd.f32 %v8562_v15, %v8561_v25 }
 0x2ea   : > { %7025 = vmatprep.mubr.bf16.mxu1 %v9639_v22  ;;  %v9662_v22 = vld [vmem:[#allocation4 + $0x32c] ss:$36 sps:$4 sm:$0xff]  }
 0x2eb   : > { %v6508_v42 = vadd.f32 %v11155_v10, %v8563_v48  ;;  %v9675_v48 = vld [vmem:[#allocation4 + $0x3bc] ss:$36 sps:$4 sm:$0xff]  }
 0x2ef   : > { %6873 = vmatmul.mubr.bf16.gmra.mxu0 %v9634_v8  ;;  %v9656_v8 = vld [vmem:[#allocation4 + $0x2a0] ss:$36 sps:$4 sm:$0xff]  }
 0x2f0   : > { %6880 = vmatprep.mubr.bf16.mxu0 %v9642_v20  ;;  %v8668_v20 = vpop.f32.mrf.mxu1 }
 0x2f1   : > { %7026 = vmatmul.mubr.bf16.gmra.mxu1 %v9637_v13  ;;  %v8564_v13 = vpop.f32.mrf.mxu0  ;;  %v8669_v27 = vadd.f32 %v8668_v20, %v8667_v17  ;;  %v9666_v20 = vld [vmem:[#allocation4 + $0x370] ss:$36 sps:$4 sm:$0xff]  }
 0x2f2   : > { %7033 = vmatprep.mubr.bf16.mxu1 %v9645_v34  ;;  %v6500_v34 = vadd.f32 %v8557_v33, %v11157_v46  ;;  %v8670_v1 = vpop.f32.mrf.mxu1  ;;  %v9671_v33 = vld [vmem:[#allocation4 + $0x334] ss:$36 sps:$4 sm:$0xff]  }
 0x2f3   : > { %v8565_v29 = vpop.f32.mrf.mxu0 }
 0x2f4   : > { %v8671_v11 = vpop.f32.mrf.mxu1 }
 0x2f5   : > { %v8672_v62 = vadd.f32 %v8671_v11, %v8670_v1 }
 0x2f7   : > { %6881 = vmatmul.mubr.bf16.gmra.mxu0 %v9640_v60  ;;  %v11219_v60 = vadd.f32 %v8669_v27, %v6500_v34 }
 0x2f8   : > { %6888 = vmatprep.mubr.bf16.mxu0 %v9649_v14  ;;  %v8566_v14 = vadd.f32 %v8565_v29, %v8564_v13 }
 0x2f9   : > { %7034 = vmatmul.mubr.bf16.gmra.mxu1 %v9643_v52  ;;  %v8567_v52 = vpop.f32.mrf.mxu0 }
 0x2fa   : > { %7041 = vmatprep.mubr.bf16.mxu1 %v9652_v56  ;;  %v6505_v56 = vadd.f32 %v11151_v54, %v8560_v16 }
 0x2ff   : > { %6889 = vmatmul.mubr.bf16.gmra.mxu0 %v9647_v63  ;;  %v8673_v63 = vpop.f32.mrf.mxu1 }
 0x300   : > { %6896 = vmatprep.mubr.bf16.mxu0 %v9655_v59  ;;  %v8568_v59 = vpop.f32.mrf.mxu0 }
 0x301   : > { %7042 = vmatmul.mubr.bf16.gmra.mxu1 %v9650_v0  ;;  %v11222_v0 = vadd.f32 %v8672_v62, %v6505_v56  ;;  %v8569_v46 = vadd.f32 %v8568_v59, %v8567_v52  ;;  %v8674_v47 = vpop.f32.mrf.mxu1  ;;  %v9678_v56 = vld [vmem:[#allocation4 + $0x37c] ss:$36 sps:$4 sm:$0xff]  }
 0x302   : > { %7049 = vmatprep.mubr.bf16.mxu1 %v9658_v3  ;;  %v9663_v3 = vld [vmem:[#allocation4 + $0x2e8] ss:$36 sps:$4 sm:$0xff]   ;;  %v8570_v61 = vpop.f32.mrf.mxu0  ;;  %v8675_v25 = vadd.f32 %v8674_v47, %v8673_v63  ;;  %v9673_v47 = vld [vmem:[#allocation4 + $0x3b8] ss:$36 sps:$4 sm:$0xff]  }
 0x303   : > { %v8676_v32 = vpop.f32.mrf.mxu1  ;;  %v6516_v11 = vadd.f32 %v8569_v46, %v11165_v19  ;;  %v9681_v46 = vld [vmem:[#allocation4 + $0x404] ss:$36 sps:$4 sm:$0xff]  }
 0x304   : > { %v8571_v54 = vpop.f32.mrf.mxu0  ;;  %v11225_v16 = vadd.f32 %v8675_v25, %v6508_v42 }
 0x305   : > { %v8677_v17 = vpop.f32.mrf.mxu1 }
 0x306   : > { %v8573_v15 = vpop.f32.mrf.mxu0 }
 0x307   : > { %6897 = vmatmul.mubr.bf16.gmra.mxu0 %v9653_v4  ;;  %v8572_v4 = vadd.f32 %v8571_v54, %v8570_v61  ;;  %v8679_v13 = vpop.f32.mrf.mxu1 }
 0x308   : > { %6904 = vmatprep.mubr.bf16.mxu0 %v9662_v22  ;;  %v6513_v22 = vadd.f32 %v8566_v14, %v11161_v53  ;;  %v8574_v34 = vpop.f32.mrf.mxu0 }
 0x309   : > { %7050 = vmatmul.mubr.bf16.gmra.mxu1 %v9656_v8  ;;  %v8678_v8 = vadd.f32 %v8677_v17, %v8676_v32  ;;  %v8575_v10 = vadd.f32 %v8574_v34, %v8573_v15  ;;  %v8680_v1 = vpop.f32.mrf.mxu1 }
 0x30a   : > { %7057 = vmatprep.mubr.bf16.mxu1 %v9665_v45  ;;  %v9669_v45 = vld [vmem:[#allocation4 + $0x330] ss:$36 sps:$4 sm:$0xff]   ;;  %v8576_v29 = vpop.f32.mrf.mxu0  ;;  %v8681_v52 = vadd.f32 %v8680_v1, %v8679_v13  ;;  %v9679_v1 = vld [vmem:[#allocation4 + $0x400] ss:$36 sps:$4 sm:$0xff]  }
 0x30b   : > { %v11228_v27 = vadd.f32 %v8678_v8, %v6513_v22  ;;  %v8682_v62 = vpop.f32.mrf.mxu1  ;;  %v6524_v17 = vadd.f32 %v11163_v30, %v8575_v10  ;;  %v9684_v22 = vld [vmem:[#allocation4 + $0x3c4] ss:$36 sps:$4 sm:$0xff]   ;;  %v9688_v10 = vld [vmem:[#allocation4 + $0x44c] ss:$36 sps:$4 sm:$0xff]  }
 0x30c   : > { %v8577_v53 = vpop.f32.mrf.mxu0  ;;  %v11231_v14 = vadd.f32 %v8681_v52, %v6516_v11 }
 0x30d   : > { %v8683_v63 = vpop.f32.mrf.mxu1 }
 0x30e   : > { %v8579_v59 = vpop.f32.mrf.mxu0 }
 0x30f   : > { %6905 = vmatmul.mubr.bf16.gmra.mxu0 %v9660_v23  ;;  %v8578_v23 = vadd.f32 %v8577_v53, %v8576_v29  ;;  %v8685_v61 = vpop.f32.mrf.mxu1 }
 0x310   : > { %6912 = vmatprep.mubr.bf16.mxu0 %v9668_v35  ;;  %v6521_v35 = vadd.f32 %v11159_v31, %v8572_v4  ;;  %v8580_v42 = vpop.f32.mrf.mxu0 }
 0x311   : > { %7058 = vmatmul.mubr.bf16.gmra.mxu1 %v9663_v3  ;;  %v8684_v3 = vadd.f32 %v8683_v63, %v8682_v62  ;;  %v8581_v19 = vadd.f32 %v8580_v42, %v8579_v59  ;;  %v8686_v32 = vpop.f32.mrf.mxu1 }
 0x312   : > { %7065 = vmatprep.mubr.bf16.mxu1 %v9671_v33  ;;  %v9676_v33 = vld [vmem:[#allocation4 + $0x378] ss:$36 sps:$4 sm:$0xff]   ;;  %v8687_v15 = vadd.f32 %v8686_v32, %v8685_v61  ;;  %v9686_v32 = vld [vmem:[#allocation4 + $0x448] ss:$36 sps:$4 sm:$0xff]  }
 0x313   : > { %v11234_v25 = vadd.f32 %v8684_v3, %v6521_v35  ;;  %v8688_v8 = vpop.f32.mrf.mxu1  ;;  %v6532_v63 = vadd.f32 %v8581_v19, %v11173_v51  ;;  %v9691_v35 = vld [vmem:[#allocation4 + $0x40c] ss:$36 sps:$4 sm:$0xff]   ;;  %v9692_v19 = vld [vmem:[#allocation4 + $0x20] ss:$36 sps:$4 sm:$0xff]  }
 0x314   : > { %v11237_v4 = vadd.f32 %v8687_v15, %v6524_v17 }
 0x315   : > { %v8689_v13 = vpop.f32.mrf.mxu1 }
 0x317   : > { %6913 = vmatmul.mubr.bf16.gmra.mxu0 %v9666_v20  ;;  %v8691_v29 = vpop.f32.mrf.mxu1 }
 0x318   : > { %6920 = vmatprep.mubr.bf16.mxu0 %v9675_v48  ;;  %v6529_v48 = vadd.f32 %v8578_v23, %v11169_v18 }
 0x319   : > { %7066 = vmatmul.mubr.bf16.gmra.mxu1 %v9669_v45  ;;  %v8690_v45 = vadd.f32 %v8689_v13, %v8688_v8  ;;  %v8692_v62 = vpop.f32.mrf.mxu1  ;;  %v9689_v8 = vld [vmem:[#allocation4 + $0x408] ss:$36 sps:$4 sm:$0xff]  }
 0x31a   : > { %7073 = vmatprep.mubr.bf16.mxu1 %v9678_v56  ;;  %v9682_v56 = vld [vmem:[#allocation4 + $0x3c0] ss:$36 sps:$4 sm:$0xff]   ;;  %v8693_v59 = vadd.f32 %v8692_v62, %v8691_v29 }
 0x31b   : > { %v11240_v52 = vadd.f32 %v8690_v45, %v6529_v48 }
 0x31c   : > { %v11243_v23 = vadd.f32 %v8693_v59, %v6532_v63  ;;  %v9693_v63 = vld [vmem:[#allocation4 + $0x450] ss:$36 sps:$4 sm:$0xff]   ;;  %v9696_v59 = vld [vmem:[#allocation4 + $0x68] ss:$36 sps:$4 sm:$0xff]  }
 0x31f   : > { %v8582_v54 = vpop.f32.mrf.mxu0  ;;  %6921 = vmatmul.mubr.bf16.gmra.mxu0 %v9673_v47 }
 0x320   : > { %6928 = vmatprep.mubr.bf16.mxu0 %v9681_v46 }
 0x321   : > { %7074 = vmatmul.mubr.bf16.gmra.mxu1 %v9676_v33  ;;  %v8583_v31 = vpop.f32.mrf.mxu0 }
 0x322   : > { %7081 = vmatprep.mubr.bf16.mxu1 %v9684_v22  ;;  %v8584_v20 = vadd.f32 %v8583_v31, %v8582_v54  ;;  %v9695_v22 = vld [vmem:[#allocation4 + $0x454] ss:$36 sps:$4 sm:$0xff]  }
 0x323   : > { %v8585_v34 = vpop.f32.mrf.mxu0 }
 0x324   : > { %v6537_v46 = vadd.f32 %v11167_v40, %v8584_v20 }
 0x325   : > { %v8586_v11 = vpop.f32.mrf.mxu0 }
 0x326   : > { %v8587_v30 = vadd.f32 %v8586_v11, %v8585_v34 }
 0x327   : > { %v8588_v53 = vpop.f32.mrf.mxu0  ;;  %6929 = vmatmul.mubr.bf16.gmra.mxu0 %v9679_v1 }
 0x328   : > { %6936 = vmatprep.mubr.bf16.mxu0 %v9688_v10  ;;  %v8694_v3 = vpop.f32.mrf.mxu1  ;;  %v6540_v34 = vadd.f32 %v11171_v9, %v8587_v30  ;;  %v9697_v30 = vld [vmem:[#allocation4 + $0xb0] ss:$36 sps:$4 sm:$0xff]  }
 0x329   : > { %7082 = vmatmul.mubr.bf16.gmra.mxu1 %v9682_v56  ;;  %v8589_v18 = vpop.f32.mrf.mxu0 }
 0x32a   : > { %7089 = vmatprep.mubr.bf16.mxu1 %v9691_v35  ;;  %v8590_v47 = vadd.f32 %v8589_v18, %v8588_v53  ;;  %v8695_v61 = vpop.f32.mrf.mxu1 }
 0x32b   : > { %v8591_v42 = vpop.f32.mrf.mxu0  ;;  %v8696_v33 = vadd.f32 %v8695_v61, %v8694_v3 }
 0x32c   : > { %v8697_v54 = vpop.f32.mrf.mxu1  ;;  %v6545_v10 = vadd.f32 %v8590_v47, %v11177_v37 }
 0x32d   : > { %v8592_v17 = vpop.f32.mrf.mxu0  ;;  %v11246_v15 = vadd.f32 %v8696_v33, %v6537_v46 }
 0x32e   : > { %v8593_v51 = vadd.f32 %v8592_v17, %v8591_v42  ;;  %v8698_v31 = vpop.f32.mrf.mxu1 }
 0x32f   : > { %v8594_v13 = vpop.f32.mrf.mxu0  ;;  %6937 = vmatmul.mubr.bf16.gmra.mxu0 %v9686_v32  ;;  %v8699_v48 = vadd.f32 %v8698_v31, %v8697_v54  ;;  %v9698_v31 = vld [vmem:[#allocation4 + $0xf8] ss:$36 sps:$4 sm:$0xff]  }
 0x330   : > { %9364 = vmatprep.mubr.bf16.mxu0 %v9692_v19  ;;  %v8700_v45 = vpop.f32.mrf.mxu1  ;;  %v6548_v61 = vadd.f32 %v8593_v51, %v11181_v28  ;;  %v9699_v28 = vld [vmem:[#allocation4 + $0x140] ss:$36 sps:$4 sm:$0xff]  }
 0x331   : > { %7090 = vmatmul.mubr.bf16.gmra.mxu1 %v9689_v8  ;;  %v8595_v40 = vpop.f32.mrf.mxu0  ;;  %v11249_v20 = vadd.f32 %v8699_v48, %v6540_v34 }
 0x332   : > { %v8596_v1 = vadd.f32 %v8595_v40, %v8594_v13  ;;  %7097 = vmatprep.mubr.bf16.mxu1 %v9695_v22  ;;  %v8701_v29 = vpop.f32.mrf.mxu1 }
 0x333   : > { %v8597_v11 = vpop.f32.mrf.mxu0  ;;  %v8702_v56 = vadd.f32 %v8701_v29, %v8700_v45 }
 0x334   : > { %v8703_v62 = vpop.f32.mrf.mxu1  ;;  %v6553_v17 = vadd.f32 %v11175_v7, %v8596_v1 }
 0x335   : > { %v8598_v53 = vpop.f32.mrf.mxu0  ;;  %v11252_v35 = vadd.f32 %v8702_v56, %v6545_v10 }
 0x336   : > { %v8599_v9 = vadd.f32 %v8598_v53, %v8597_v11  ;;  %v8704_v3 = vpop.f32.mrf.mxu1 }
 0x337   : > { %v8600_v18 = vpop.f32.mrf.mxu0  ;;  %9365 = vmatmul.mubr.bf16.vlgmr.msra.gmra.mxu0 %v9696_v59  ;;  %v8705_v42 = vadd.f32 %v8704_v3, %v8703_v62 }
 0x338   : > { %9368 = vmatprep.mubr.bf16.mxu0 %v9697_v30  ;;  %v8706_v46 = vpop.f32.mrf.mxu1  ;;  %v6556_v45 = vadd.f32 %v11179_v21, %v8599_v9  ;;  %v9700_v30 = vld [vmem:[#allocation4 + $0x188] ss:$36 sps:$4 sm:$0xff]  }
 0x339   : > { %7098 = vmatmul.mubr.bf16.gmra.mxu1 %v9693_v63  ;;  %v8601_v33 = vpop.f32.mrf.mxu0  ;;  %v11255_v37 = vadd.f32 %v8705_v42, %v6548_v61  ;;  %v9701_v61 = vld [vmem:[#allocation4 + $0x1d0] ss:$36 sps:$4 sm:$0xff]  }
 0x33a   : > { %v8602_v47 = vadd.f32 %v8601_v33, %v8600_v18  ;;  %v8707_v32 = vpop.f32.mrf.mxu1 }
 0x33b   : > { %v8603_v54 = vpop.f32.mrf.mxu0  ;;  %v8708_v19 = vadd.f32 %v8707_v32, %v8706_v46 }
 0x33c   : > { %v8709_v22 = vpop.f32.mrf.mxu1  ;;  %v6561_v62 = vadd.f32 %v8602_v47, %v11185_v57 }
 0x33d   : > { %v8604_v8 = vpop.f32.mrf.mxu0  ;;  %v11258_v13 = vadd.f32 %v8708_v19, %v6553_v17 }
 0x33e   : > { %v8605_v34 = vadd.f32 %v8604_v8, %v8603_v54  ;;  %v8710_v51 = vpop.f32.mrf.mxu1 }
 0x33f   : > { %v8606_v48 = vpop.f32.mrf.mxu0  ;;  %9369 = vmatmul.mubr.bf16.gmra.mxu0 %v9698_v31  ;;  %v8711_v40 = vadd.f32 %v8710_v51, %v8709_v22 }
 0x340   : > { %9372 = vmatprep.mubr.bf16.mxu0 %v9699_v28  ;;  %v8712_v29 = vpop.f32.mrf.mxu1  ;;  %v6564_v42 = vadd.f32 %v8605_v34, %v11189_v58  ;;  %v9702_v28 = vld [vmem:[#allocation4 + $0x218] ss:$36 sps:$4 sm:$0xff]  }
 0x341   : > { %v8607_v11 = vpop.f32.mrf.mxu0  ;;  %v11261_v10 = vadd.f32 %v8711_v40, %v6556_v45  ;;  %v9703_v45 = vld [vmem:[#allocation4 + $0x260] ss:$36 sps:$4 sm:$0xff]  }
 0x342   : > { %v8608_v7 = vadd.f32 %v8607_v11, %v8606_v48  ;;  %v8713_v1 = vpop.f32.mrf.mxu1 }
 0x343   : > { %v8609_v56 = vpop.f32.mrf.mxu0  ;;  %v8714_v53 = vadd.f32 %v8713_v1, %v8712_v29 }
 0x344   : > { %v8715_v63 = vpop.f32.mrf.mxu1  ;;  %v6569_v19 = vadd.f32 %v11183_v6, %v8608_v7 }
 0x345   : > { %v8610_v59 = vpop.f32.mrf.mxu0  ;;  %v11264_v3 = vadd.f32 %v8714_v53, %v6561_v62 }
 0x346   : > { %v8611_v18 = vadd.f32 %v8610_v59, %v8609_v56  ;;  %v8716_v21 = vpop.f32.mrf.mxu1 }
 0x347   : > { %v8612_v9 = vpop.f32.mrf.mxu0  ;;  %9373 = vmatmul.mubr.bf16.gmra.mxu0 %v9700_v30  ;;  %v8717_v46 = vadd.f32 %v8716_v21, %v8715_v63 }
 0x348   : > { %9376 = vmatprep.mubr.bf16.mxu0 %v9701_v61  ;;  %v8718_v33 = vpop.f32.mrf.mxu1  ;;  %v6572_v40 = vadd.f32 %v11187_v26, %v8611_v18  ;;  %v9704_v61 = vld [vmem:[#allocation4 + $0x2a8] ss:$36 sps:$4 sm:$0xff]  }
 0x349   : > { %v8613_v32 = vpop.f32.mrf.mxu0  ;;  %v11267_v54 = vadd.f32 %v8717_v46, %v6564_v42  ;;  %v9705_v42 = vld [vmem:[#allocation4 + $0x2f0] ss:$36 sps:$4 sm:$0xff]  }
 0x34a   : > { %v8614_v57 = vadd.f32 %v8613_v32, %v8612_v9  ;;  %v8719_v47 = vpop.f32.mrf.mxu1 }
 0x34b   : > { %v8615_v17 = vpop.f32.mrf.mxu0  ;;  %v8720_v22 = vadd.f32 %v8719_v47, %v8718_v33 }
 0x34c   : > { %v8721_v8 = vpop.f32.mrf.mxu1  ;;  %v6577_v53 = vadd.f32 %v8614_v57, %v11193_v39 }
 0x34d   : > { %v8616_v31 = vpop.f32.mrf.mxu0  ;;  %v11270_v51 = vadd.f32 %v8720_v22, %v6569_v19 }
 0x34e   : > { %v8617_v48 = vadd.f32 %v8616_v31, %v8615_v17  ;;  %v8722_v58 = vpop.f32.mrf.mxu1 }
 0x34f   : > { %v8618_v34 = vpop.f32.mrf.mxu0  ;;  %9377 = vmatmul.mubr.bf16.gmra.mxu0 %v9702_v28  ;;  %v8723_v29 = vadd.f32 %v8722_v58, %v8721_v8 }
 0x350   : > { %9380 = vmatprep.mubr.bf16.mxu0 %v9703_v45  ;;  %v8724_v11 = vpop.f32.mrf.mxu1  ;;  %v6580_v46 = vadd.f32 %v8617_v48, %v11197_v50  ;;  %v9706_v45 = vld [vmem:[#allocation4 + $0x338] ss:$36 sps:$4 sm:$0xff]  }
 0x351   : > { %v8619_v1 = vpop.f32.mrf.mxu0  ;;  %v11273_v56 = vadd.f32 %v8723_v29, %v6572_v40  ;;  %v9707_v40 = vld [vmem:[#allocation4 + $0x380] ss:$36 sps:$4 sm:$0xff]  }
 0x352   : > { %v8620_v6 = vadd.f32 %v8619_v1, %v8618_v34  ;;  %v8725_v7 = vpop.f32.mrf.mxu1 }
 0x353   : > { %v8621_v62 = vpop.f32.mrf.mxu0  ;;  %v8726_v63 = vadd.f32 %v8725_v7, %v8724_v11 }
 0x354   : > { %v8727_v59 = vpop.f32.mrf.mxu1  ;;  %v6585_v22 = vadd.f32 %v11191_v49, %v8620_v6 }
 0x355   : > { %v8622_v30 = vpop.f32.mrf.mxu0  ;;  %v11276_v21 = vadd.f32 %v8726_v63, %v6577_v53 }
 0x356   : > { %v8623_v9 = vadd.f32 %v8622_v30, %v8621_v62  ;;  %v8728_v26 = vpop.f32.mrf.mxu1 }
 0x357   : > { %v8624_v18 = vpop.f32.mrf.mxu0  ;;  %9381 = vmatmul.mubr.bf16.gmra.mxu0 %v9704_v61  ;;  %v8729_v33 = vadd.f32 %v8728_v26, %v8727_v59 }
 0x358   : > { %9384 = vmatprep.mubr.bf16.mxu0 %v9705_v42  ;;  %v8730_v32 = vpop.f32.mrf.mxu1  ;;  %v6588_v29 = vadd.f32 %v11195_v38, %v8623_v9  ;;  %v9708_v42 = vld [vmem:[#allocation4 + $0x3c8] ss:$36 sps:$4 sm:$0xff]  }
 0x359   : > { %v8625_v47 = vpop.f32.mrf.mxu0  ;;  %v11279_v17 = vadd.f32 %v8729_v33, %v6580_v46  ;;  %v9709_v46 = vld [vmem:[#allocation4 + $0x410] ss:$36 sps:$4 sm:$0xff]  }
 0x35a   : > { %v8626_v39 = vadd.f32 %v8625_v47, %v8624_v18  ;;  %v8731_v57 = vpop.f32.mrf.mxu1 }
 0x35b   : > { %v8627_v19 = vpop.f32.mrf.mxu0  ;;  %v8732_v8 = vadd.f32 %v8731_v57, %v8730_v32 }
 0x35c   : > { %v8733_v31 = vpop.f32.mrf.mxu1  ;;  %v6593_v63 = vadd.f32 %v8626_v39, %v11201_v36 }
 0x35d   : > { %v8628_v28 = vpop.f32.mrf.mxu0  ;;  %v11282_v58 = vadd.f32 %v8732_v8, %v6585_v22  ;;  %v9710_v8 = vld [vmem:[#allocation4 + $0x458] ss:$36 sps:$4 sm:$0xff]  }
 0x35e   : > { %v8629_v34 = vadd.f32 %v8628_v28, %v8627_v19  ;;  %v8734_v50 = vpop.f32.mrf.mxu1 }
 0x35f   : > { %v8630_v48 = vpop.f32.mrf.mxu0  ;;  %9385 = vmatmul.mubr.bf16.gmra.mxu0 %v9706_v45  ;;  %v8735_v11 = vadd.f32 %v8734_v50, %v8733_v31 }
 0x360   : > { %9388 = vmatprep.mubr.bf16.mxu0 %v9707_v40  ;;  %v8736_v1 = vpop.f32.mrf.mxu1  ;;  %v6596_v33 = vadd.f32 %v8629_v34, %v11205_v41 }
 0x361   : > { %v8631_v7 = vpop.f32.mrf.mxu0  ;;  %v11285_v62 = vadd.f32 %v8735_v11, %v6588_v29 }
 0x362   : > { %v8632_v49 = vadd.f32 %v8631_v7, %v8630_v48  ;;  %v8737_v6 = vpop.f32.mrf.mxu1 }
 0x363   : > { %v8633_v53 = vpop.f32.mrf.mxu0  ;;  %v8738_v59 = vadd.f32 %v8737_v6, %v8736_v1 }
 0x364   : > { %v8739_v30 = vpop.f32.mrf.mxu1  ;;  %v6601_v31 = vadd.f32 %v11199_v5, %v8632_v49 }
 0x365   : > { %v8634_v61 = vpop.f32.mrf.mxu0  ;;  %v11288_v26 = vadd.f32 %v8738_v59, %v6593_v63 }
 0x366   : > { %v8635_v18 = vadd.f32 %v8634_v61, %v8633_v53  ;;  %v8740_v38 = vpop.f32.mrf.mxu1 }
 0x367   : > { %v8636_v9 = vpop.f32.mrf.mxu0  ;;  %9389 = vmatmul.mubr.bf16.gmra.mxu0 %v9708_v42  ;;  %v8741_v32 = vadd.f32 %v8740_v38, %v8739_v30 }
 0x368   : > { %9392 = vmatprep.mubr.bf16.mxu0 %v9709_v46  ;;  %v8742_v47 = vpop.f32.mrf.mxu1  ;;  %v6604_v34 = vadd.f32 %v11203_v55, %v8635_v18 }
 0x369   : > { %v8637_v57 = vpop.f32.mrf.mxu0  ;;  %v11291_v19 = vadd.f32 %v8741_v32, %v6596_v33 }
 0x36a   : > { %v8638_v36 = vadd.f32 %v8637_v57, %v8636_v9  ;;  %v8743_v39 = vpop.f32.mrf.mxu1 }
 0x36b   : > { %v8639_v22 = vpop.f32.mrf.mxu0  ;;  %v8744_v28 = vadd.f32 %v8743_v39, %v8742_v47 }
 0x36c   : > { %v8745_v45 = vpop.f32.mrf.mxu1  ;;  %v6609_v5 = vadd.f32 %v8638_v36, %v11209_v44 }
 0x36d   : > { %v8640_v40 = vpop.f32.mrf.mxu0  ;;  %v11294_v50 = vadd.f32 %v8744_v28, %v6601_v31 }
 0x36e   : > { %v8641_v48 = vadd.f32 %v8640_v40, %v8639_v22  ;;  %v8746_v29 = vpop.f32.mrf.mxu1 }
 0x36f   : > { %v8642_v41 = vpop.f32.mrf.mxu0  ;;  %9393 = vmatmul.mubr.bf16.gmra.mxu0 %v9710_v8  ;;  %v8747_v11 = vadd.f32 %v8746_v29, %v8745_v45 }
 0x370   : > { %v8748_v1 = vpop.f32.mrf.mxu1  ;;  %v6612_v55 = vadd.f32 %v8641_v48, %v11213_v43 }
 0x371   : > { %v8643_v7 = vpop.f32.mrf.mxu0  ;;  %v11297_v6 = vadd.f32 %v8747_v11, %v6604_v34 }
 0x372   : > { %v8644_v53 = vadd.f32 %v8643_v7, %v8642_v41  ;;  %v8749_v63 = vpop.f32.mrf.mxu1 }
 0x373   : > { %v8645_v59 = vpop.f32.mrf.mxu0  ;;  %v8750_v49 = vadd.f32 %v8749_v63, %v8748_v1 }
 0x374   : > { %v8751_v30 = vpop.f32.mrf.mxu1  ;;  %v6617_v44 = vadd.f32 %v11207_v2, %v8644_v53 }
 0x375   : > { %v8646_v61 = vpop.f32.mrf.mxu0  ;;  %v11300_v42 = vadd.f32 %v8750_v49, %v6609_v5 }
 0x376   : > { %v8647_v46 = vadd.f32 %v8646_v61, %v8645_v59  ;;  %v8752_v38 = vpop.f32.mrf.mxu1 }
 0x377   : > { %v8776_v9 = vpop.f32.mrf.mxu0  ;;  %v8753_v18 = vadd.f32 %v8752_v38, %v8751_v30 }
 0x378   : > { %v6620_v48 = vadd.f32 %v11211_v24, %v8647_v46 }
 0x379   : > { %v8754_v33 = vpop.f32.mrf.mxu1  ;;  %v8777_v32 = vpop.f32.mrf.mxu0  ;;  %v11303_v47 = vadd.f32 %v8753_v18, %v6612_v55 }
 0x37a   : > { %v8778_v57 = vadd.f32 %v8777_v32, %v8776_v9 }
 0x37b   : > { %v8755_v39 = vpop.f32.mrf.mxu1  ;;  %v8779_v22 = vpop.f32.mrf.mxu0 }
 0x37c   : > { %v8756_v36 = vadd.f32 %v8755_v39, %v8754_v33  ;;  %v6819_v8 = vadd.f32 %v8778_v57, %v11216_v12 }
 0x37d   : > { %v8757_v31 = vpop.f32.mrf.mxu1  ;;  %v8780_v28 = vpop.f32.mrf.mxu0 }
 0x37e   : > { %v11307_v45 = vadd.f32 %v8756_v36, %v6617_v44  ;;  %v8781_v40 = vadd.f32 %v8780_v28, %v8779_v22 }
 0x37f   : > { %v8758_v29 = vpop.f32.mrf.mxu1  ;;  %v8782_v43 = vpop.f32.mrf.mxu0 }
 0x380   : > { %11819 = vst [vmem:[#allocation23_spill] sm:$0xff] %v11307_v45  ;;  %v8759_v41 = vadd.f32 %v8758_v29, %v8757_v31  ;;  %v6822_v34 = vadd.f32 %v8781_v40, %v11219_v60 }
 0x381   : > { %v8888_v11 = vpop.f32.mrf.mxu1  ;;  %v8783_v1 = vpop.f32.mrf.mxu0 }
 0x382   : > { %v11311_v7 = vadd.f32 %v8759_v41, %v6620_v48  ;;  %v8784_v2 = vadd.f32 %v8783_v1, %v8782_v43 }
 0x383   : > { %v8889_v53 = vpop.f32.mrf.mxu1  ;;  %v8785_v63 = vpop.f32.mrf.mxu0 }
 0x384   : > { %11820 = vst [vmem:[#allocation8_spill] sm:$0xff] %v11311_v7  ;;  %v11314_v12 = vadd.f32 %v8784_v2, %v11222_v0  ;;  %v8890_v59 = vadd.f32 %v8889_v53, %v8888_v11 }
 0x385   : > { %v8891_v5 = vpop.f32.mrf.mxu1  ;;  %v8786_v49 = vpop.f32.mrf.mxu0 }
 0x386   : > { %v8787_v30 = vadd.f32 %v8786_v49, %v8785_v63  ;;  %v11316_v61 = vadd.f32 %v8890_v59, %v6819_v8 }
 0x387   : > { %v8892_v24 = vpop.f32.mrf.mxu1  ;;  %v8788_v46 = vpop.f32.mrf.mxu0 }
 0x388   : > { %v11319_v60 = vadd.f32 %v8787_v30, %v11225_v16  ;;  %v8893_v38 = vadd.f32 %v8892_v24, %v8891_v5 }
 0x389   : > { %v11321_v9 = vpop.f32.mrf.mxu1  ;;  %v8789_v55 = vpop.f32.mrf.mxu0 }
 0x38a   : > { %v8790_v18 = vadd.f32 %v8789_v55, %v8788_v46  ;;  %v11323_v33 = vadd.f32 %v8893_v38, %v6822_v34 }
 0x38b   : > { %v11325_v0 = vpop.f32.mrf.mxu1  ;;  %v8791_v32 = vpop.f32.mrf.mxu0 }
 0x38c   : > { %v11328_v57 = vadd.f32 %v8790_v18, %v11228_v27 }
 0x38d   : > { %v11330_v39 = vpop.f32.mrf.mxu1  ;;  %v8792_v22 = vpop.f32.mrf.mxu0 }
 0x38e   : > { %v8793_v44 = vadd.f32 %v8792_v22, %v8791_v32 }
 0x38f   : > { %v11332_v36 = vpop.f32.mrf.mxu1  ;;  %v8794_v16 = vpop.f32.mrf.mxu0 }
 0x390   : > { %v11335_v8 = vadd.f32 %v8793_v44, %v11231_v14 }
 0x391   : > { %v11337_v31 = vpop.f32.mrf.mxu1  ;;  %v8795_v28 = vpop.f32.mrf.mxu0 }
 0x392   : > { %v8796_v40 = vadd.f32 %v8795_v28, %v8794_v16 }
 0x393   : > { %v11339_v29 = vpop.f32.mrf.mxu1  ;;  %v8797_v43 = vpop.f32.mrf.mxu0 }
 0x394   : > { %v11342_v27 = vadd.f32 %v8796_v40, %v11234_v25 }
 0x395   : > { %v11344_v48 = vpop.f32.mrf.mxu1  ;;  %v8798_v41 = vpop.f32.mrf.mxu0 }
 0x396   : > { %v8799_v34 = vadd.f32 %v8798_v41, %v8797_v43 }
 0x397   : > { %v11346_v11 = vpop.f32.mrf.mxu1  ;;  %v8800_v1 = vpop.f32.mrf.mxu0 }
 0x398   : > { %v11349_v14 = vadd.f32 %v8799_v34, %v11237_v4 }
 0x399   : > { %v11351_v2 = vpop.f32.mrf.mxu1  ;;  %v8801_v53 = vpop.f32.mrf.mxu0 }
 0x39a   : > { %v8802_v63 = vadd.f32 %v8801_v53, %v8800_v1 }
 0x39b   : > { %v11353_v59 = vpop.f32.mrf.mxu1  ;;  %v8803_v5 = vpop.f32.mrf.mxu0 }
 0x39c   : > { %v11356_v25 = vadd.f32 %v8802_v63, %v11240_v52 }
 0x39d   : > { %v11358_v49 = vpop.f32.mrf.mxu1  ;;  %v8804_v30 = vpop.f32.mrf.mxu0 }
 0x39e   : > { %v8805_v24 = vadd.f32 %v8804_v30, %v8803_v5 }
 0x39f   : > { %v11360_v46 = vpop.f32.mrf.mxu1  ;;  %v8806_v38 = vpop.f32.mrf.mxu0 }
 0x3a0   : > { %v11363_v4 = vadd.f32 %v8805_v24, %v11243_v23 }
 0x3a1   : > { %v11365_v55 = vpop.f32.mrf.mxu1  ;;  %v8807_v18 = vpop.f32.mrf.mxu0 }
 0x3a2   : > { %v8808_v32 = vadd.f32 %v8807_v18, %v8806_v38 }
 0x3a3   : > { %v11367_v22 = vpop.f32.mrf.mxu1  ;;  %v8809_v44 = vpop.f32.mrf.mxu0 }
 0x3a4   : > { %v11370_v52 = vadd.f32 %v8808_v32, %v11246_v15 }
 0x3a5   : > { %v11372_v16 = vpop.f32.mrf.mxu1  ;;  %v8810_v28 = vpop.f32.mrf.mxu0 }
 0x3a6   : > { %v8811_v40 = vadd.f32 %v8810_v28, %v8809_v44 }
 0x3a7   : > { %v11374_v43 = vpop.f32.mrf.mxu1  ;;  %v8812_v41 = vpop.f32.mrf.mxu0 }
 0x3a8   : > { %v11377_v23 = vadd.f32 %v8811_v40, %v11249_v20 }
 0x3a9   : > { %v11379_v34 = vpop.f32.mrf.mxu1  ;;  %v8813_v1 = vpop.f32.mrf.mxu0 }
 0x3aa   : > { %v8814_v53 = vadd.f32 %v8813_v1, %v8812_v41 }
 0x3ab   : > { %v11381_v63 = vpop.f32.mrf.mxu1  ;;  %v8815_v5 = vpop.f32.mrf.mxu0 }
 0x3ac   : > { %v11384_v15 = vadd.f32 %v8814_v53, %v11252_v35 }
 0x3ad   : > { %v11386_v30 = vpop.f32.mrf.mxu1  ;;  %v8816_v24 = vpop.f32.mrf.mxu0 }
 0x3ae   : > { %11821 = vst [vmem:[#allocation29_spill] sm:$0xff] %v11384_v15  ;;  %v8817_v38 = vadd.f32 %v8816_v24, %v8815_v5 }
 0x3af   : > { %v11388_v18 = vpop.f32.mrf.mxu1  ;;  %v8818_v32 = vpop.f32.mrf.mxu0 }
 0x3b0   : > { %v11391_v20 = vadd.f32 %v8817_v38, %v11255_v37 }
 0x3b1   : > { %v11393_v44 = vpop.f32.mrf.mxu1  ;;  %v8819_v28 = vpop.f32.mrf.mxu0 }
 0x3b2   : > { %11822 = vst [vmem:[#allocation24_spill] sm:$0xff] %v11391_v20  ;;  %v8820_v40 = vadd.f32 %v8819_v28, %v8818_v32 }
 0x3b3   : > { %v11395_v41 = vpop.f32.mrf.mxu1  ;;  %v8821_v1 = vpop.f32.mrf.mxu0 }
 0x3b4   : > { %v11398_v35 = vadd.f32 %v8820_v40, %v11258_v13 }
 0x3b5   : > { %v11400_v53 = vpop.f32.mrf.mxu1  ;;  %v8822_v7 = vpop.f32.mrf.mxu0 }
 0x3b6   : > { %11823 = vst [vmem:[#allocation25_spill] sm:$0xff] %v11398_v35  ;;  %11824 = vst [vmem:[#allocation9_spill] sm:$0xff] %v11400_v53  ;;  %v8823_v5 = vadd.f32 %v8822_v7, %v8821_v1 }
 0x3b7   : > { %v11402_v24 = vpop.f32.mrf.mxu1  ;;  %v8824_v45 = vpop.f32.mrf.mxu0 }
 0x3b8   : > { %11825 = vst [vmem:[#allocation31_spill] sm:$0xff] %v11402_v24  ;;  %v11405_v37 = vadd.f32 %v8823_v5, %v11261_v10 }
 0x3b9   : > { %v11407_v38 = vpop.f32.mrf.mxu1  ;;  %v8825_v20 = vpop.f32.mrf.mxu0 }
 0x3ba   : > { %11826 = vst [vmem:[#allocation10_spill] sm:$0xff] %v11405_v37  ;;  %v8826_v32 = vadd.f32 %v8825_v20, %v8824_v45 }
 0x3bb   : > { %v11409_v28 = vpop.f32.mrf.mxu1  ;;  %v8827_v15 = vpop.f32.mrf.mxu0 }
 0x3bc   : > { %v11412_v13 = vadd.f32 %v8826_v32, %v11264_v3 }
 0x3bd   : > { %v11414_v40 = vpop.f32.mrf.mxu1  ;;  %v8828_v53 = vpop.f32.mrf.mxu0 }
 0x3be   : > { %11827 = vst [vmem:[#allocation33_spill] sm:$0xff] %v11412_v13  ;;  %v8829_v7 = vadd.f32 %v8828_v53, %v8827_v15 }
 0x3bf   : > { %v11416_v1 = vpop.f32.mrf.mxu1  ;;  %v8830_v24 = vpop.f32.mrf.mxu0 }
 0x3c0   : > { %11828 = vst [vmem:[#allocation26_spill] sm:$0xff] %v11416_v1  ;;  %v11419_v10 = vadd.f32 %v8829_v7, %v11267_v54 }
 0x3c1   : > { %v11421_v5 = vpop.f32.mrf.mxu1  ;;  %v8831_v37 = vpop.f32.mrf.mxu0 }
 0x3c2   : > { %11829 = vst [vmem:[#allocation35_spill] sm:$0xff] %v11419_v10  ;;  %v8832_v45 = vadd.f32 %v8831_v37, %v8830_v24 }
 0x3c3   : > { %v11423_v20 = vpop.f32.mrf.mxu1  ;;  %v8833_v35 = vpop.f32.mrf.mxu0 }
 0x3c4   : > { %11830 = vst [vmem:[#allocation27_spill] sm:$0xff] %v11423_v20  ;;  %v11426_v3 = vadd.f32 %v8832_v45, %v11270_v51 }
 0x3c5   : > { %v11428_v32 = vpop.f32.mrf.mxu1  ;;  %v8834_v13 = vpop.f32.mrf.mxu0 }
 0x3c6   : > { %11831 = vst [vmem:[#allocation28_spill] sm:$0xff] %v11426_v3  ;;  %11832 = vst [vmem:[#allocation30_spill] sm:$0xff] %v11428_v32  ;;  %v8835_v15 = vadd.f32 %v8834_v13, %v8833_v35 }
 0x3c7   : > { %v11430_v53 = vpop.f32.mrf.mxu1  ;;  %v8836_v1 = vpop.f32.mrf.mxu0 }
 0x3c8   : > { %11833 = vst [vmem:[#allocation11_spill] sm:$0xff] %v11430_v53  ;;  %v11433_v54 = vadd.f32 %v8835_v15, %v11273_v56 }
 0x3c9   : > { %v11435_v7 = vpop.f32.mrf.mxu1  ;;  %v8837_v10 = vpop.f32.mrf.mxu0 }
 0x3ca   : > { %11834 = vst [vmem:[#allocation37_spill] sm:$0xff] %v11433_v54  ;;  %v8838_v24 = vadd.f32 %v8837_v10, %v8836_v1 }
 0x3cb   : > { %v11437_v37 = vpop.f32.mrf.mxu1  ;;  %v8839_v20 = vpop.f32.mrf.mxu0 }
 0x3cc   : > { %v11440_v51 = vadd.f32 %v8838_v24, %v11276_v21 }
 0x3cd   : > { %v11442_v45 = vpop.f32.mrf.mxu1  ;;  %v8840_v32 = vpop.f32.mrf.mxu0 }
 0x3ce   : > { %11835 = vst [vmem:[#allocation32_spill] sm:$0xff] %v11440_v51  ;;  %11836 = vst [vmem:[#allocation12_spill] sm:$0xff] %v11442_v45  ;;  %v8841_v35 = vadd.f32 %v8840_v32, %v8839_v20 }
 0x3cf   : > { %v11444_v13 = vpop.f32.mrf.mxu1  ;;  %v8842_v53 = vpop.f32.mrf.mxu0 }
 0x3d0   : > { %v11447_v56 = vadd.f32 %v8841_v35, %v11279_v17 }
 0x3d1   : > { %v11449_v15 = vpop.f32.mrf.mxu1  ;;  %v8843_v54 = vpop.f32.mrf.mxu0 }
 0x3d2   : > { %11837 = vst [vmem:[#allocation39_spill] sm:$0xff] %v11447_v56  ;;  %11838 = vst [vmem:[#allocation13_spill] sm:$0xff] %v11449_v15  ;;  %v8844_v1 = vadd.f32 %v8843_v54, %v8842_v53 }
 0x3d3   : > { %v11451_v10 = vpop.f32.mrf.mxu1  ;;  %v8845_v3 = vpop.f32.mrf.mxu0 }
 0x3d4   : > { %11839 = vst [vmem:[#allocation41_spill] sm:$0xff] %v11451_v10  ;;  %v11454_v21 = vadd.f32 %v8844_v1, %v11282_v58 }
 0x3d5   : > { %v8846_v24 = vpop.f32.mrf.mxu0  ;;  %v11456_v45 = vpop.f32.mrf.mxu1 }
 0x3d6   : > { %v8847_v51 = vadd.f32 %v8846_v24, %v8845_v3  ;;  %11840 = vst [vmem:[#allocation43_spill] sm:$0xff] %v11456_v45 }
 0x3d7   : > { %v8848_v20 = vpop.f32.mrf.mxu0  ;;  %v11461_v56 = vpop.f32.mrf.mxu1 }
 0x3d8   : > { %v11459_v32 = vadd.f32 %v8847_v51, %v11285_v62 }
 0x3d9   : > { %v8849_v17 = vpop.f32.mrf.mxu0  ;;  %v11466_v58 = vpop.f32.mrf.mxu1 }
 0x3da   : > { %11841 = vst [vmem:[#allocation34_spill] sm:$0xff] %v11459_v32  ;;  %v8850_v35 = vadd.f32 %v8849_v17, %v8848_v20 }
 0x3db   : > { %v8851_v15 = vpop.f32.mrf.mxu0  ;;  %v11471_v62 = vpop.f32.mrf.mxu1 }
 0x3dc   : > { %v11464_v53 = vadd.f32 %v8850_v35, %v11288_v26 }
 0x3dd   : > { %v8852_v54 = vpop.f32.mrf.mxu0  ;;  %v11476_v26 = vpop.f32.mrf.mxu1 }
 0x3de   : > { %11842 = vst [vmem:[#allocation14_spill] sm:$0xff] %v11464_v53  ;;  %v8853_v10 = vadd.f32 %v8852_v54, %v8851_v15 }
 0x3df   : > { %v8854_v1 = vpop.f32.mrf.mxu0 }
 0x3e0   : > { %v11469_v3 = vadd.f32 %v8853_v10, %v11291_v19  ;;  %v11481_v19 = vpop.f32.mrf.mxu1 }
 0x3e1   : > { %v8855_v24 = vpop.f32.mrf.mxu0 }
 0x3e2   : > { %v8856_v45 = vadd.f32 %v8855_v24, %v8854_v1 }
 0x3e3   : > { %v8857_v51 = vpop.f32.mrf.mxu0 }
 0x3e4   : > { %v11474_v20 = vadd.f32 %v8856_v45, %v11294_v50  ;;  %v11486_v45 = vpop.f32.mrf.mxu1 }
 0x3e5   : > { %v8858_v17 = vpop.f32.mrf.mxu0 }
 0x3e6   : > { %v8859_v32 = vadd.f32 %v8858_v17, %v8857_v51 }
 0x3e7   : > { %v8860_v35 = vpop.f32.mrf.mxu0 }
 0x3e8   : > { %v11479_v15 = vadd.f32 %v8859_v32, %v11297_v6  ;;  %v8896_v32 = vadd.f32 %v11325_v0, %v11321_v9  ;;  %v8908_v0 = vadd.f32 %v11353_v59, %v11351_v2  ;;  %v8911_v2 = vadd.f32 %v11360_v46, %v11358_v49 }
 0x3e9   : > { %v8861_v54 = vpop.f32.mrf.mxu0 }
 0x3ea   : > { %v8862_v53 = vadd.f32 %v8861_v54, %v8860_v35  ;;  %v11497_v35 = vpop.f32.mrf.mxu1  ;;  %v7004_v59 = vadd.f32 %v8908_v0, %v11342_v27 }
 0x3eb   : > { %v8863_v10 = vpop.f32.mrf.mxu0 }
 0x3ec   : > { %v11484_v1 = vadd.f32 %v8862_v53, %v11300_v42  ;;  %v8899_v53 = vadd.f32 %v11332_v36, %v11330_v39 }
 0x3ed   : > { %v8864_v24 = vpop.f32.mrf.mxu0 }
 0x3ee   : > { %11843 = vst [vmem:[#allocation45_spill] sm:$0xff] %v11484_v1  ;;  %v8865_v50 = vadd.f32 %v8864_v24, %v8863_v10  ;;  %v6988_v10 = vadd.f32 %v8896_v32, %v11314_v12  ;;  %v11506_v24 = vpop.f32.mrf.mxu1  ;;  %v6991_v36 = vadd.f32 %v8899_v53, %v11319_v60 }
 0x3ef   : > { %v11488_v51 = vpop.f32.mrf.mxu0 }
 0x3f0   : > { %v11491_v17 = vadd.f32 %v8865_v50, %v11303_v47  ;;  %v11519_v32 = vpop.f32.mrf.mxu1 }
 0x3f1   : > { %v11493_v6 = vpop.f32.mrf.mxu0 }
 0x3f2   : > { %11844 = vst [vmem:[#allocation36_spill] sm:$0xff] %v11491_v17  ;;  %v11531_v53 = vpop.f32.mrf.mxu1 }
 0x3f3   : > { %v11499_v54 = vpop.f32.mrf.mxu0 }
 0x3f5   : > { %v11501_v42 = vpop.f32.mrf.mxu0 }
 0x3f6   : > { %11845 = vst [vmem:[#allocation38_spill] sm:$0xff] %v11501_v42 }
 0x3f7   : > { %v9366_v47 = vpop.f32.mrf.mxu0 }
 0x3f8   : > { %v7149_v50 = vadd.f32 %v9366_v47, %v6988_v10  ;;  %v8902_v47 = vadd.f32 %v11339_v29, %v11337_v31  ;;  %v8905_v29 = vadd.f32 %v11346_v11, %v11344_v48  ;;  %v8914_v11 = vadd.f32 %v11367_v22, %v11365_v55 }
 0x3f9   : > { %v7140_v9 = vpop.f32.mrf.mxu0  ;;  %v8917_v22 = vadd.f32 %v11374_v43, %v11372_v16  ;;  %v8926_v43 = vadd.f32 %v11395_v41, %v11393_v44  ;;  %v11848_v41 = vld [vmem:[#allocation9_spill] sm:$0xff] }
 0x3fa   : > { %v7269_v39 = vmax.f32 %v7149_v50, 0.0  ;;  %v7141_v12 = vadd.f32 %v7140_v9, %v11316_v61  ;;  %v6996_v49 = vadd.f32 %v8902_v47, %v11328_v57 }
 0x3fb   : > { %v9367_v10 = vpop.f32.mrf.mxu0 }
 0x3fc   : > { %7302 = vst.msk [vmem:[%s11513_s28 + $0x10] sm:$0xff] %vm7299_vm4, %v7269_v39  ;;  %v7267_v17 = vmax.f32 %v7141_v12, 0.0  ;;  %v7152_v1 = vadd.f32 %v9367_v10, %v6991_v36  ;;  %v6999_v39 = vadd.f32 %v8905_v29, %v11335_v8  ;;  %v7015_v29 = vadd.f32 %v8917_v22, %v11363_v4 }
 0x3fd   : > { %v7143_v42 = vpop.f32.mrf.mxu0 }
 0x3fe   : > { %7300 = vst.msk [vmem:[%s11513_s28] sm:$0xff] %vm7299_vm4, %v7267_v17  ;;  %v7270_v61 = vmax.f32 %v7152_v1, 0.0  ;;  %v7144_v60 = vadd.f32 %v7143_v42, %v11323_v33  ;;  %v8920_v33 = vadd.f32 %v11381_v63, %v11379_v34  ;;  %v7007_v17 = vadd.f32 %v8911_v2, %v11349_v14  ;;  %v11543_v42 = vpop.f32.mrf.mxu1 }
 0x3ff   : > { %v9370_v31 = vpop.f32.mrf.mxu0  ;;  %v8923_v63 = vadd.f32 %v11388_v18, %v11386_v30  ;;  %v7012_v2 = vadd.f32 %v8914_v11, %v11356_v25  ;;  %v8932_v18 = vadd.f32 %v11409_v28, %v11407_v38  ;;  %v11846_v28 = vld [vmem:[#allocation26_spill] sm:$0xff] }
 0x400   : > { %7303 = vst.msk [vmem:[%s11513_s28 + $0x18] sm:$0xff] %vm7299_vm4, %v7270_v61  ;;  %v7268_v50 = vmax.f32 %v7144_v60, 0.0  ;;  %v7165_v9 = vadd.f32 %v9370_v31, %v7004_v59  ;;  %v7020_v36 = vadd.f32 %v8920_v33, %v11370_v52  ;;  %v11555_v10 = vpop.f32.mrf.mxu1 }
 0x401   : > { %v7156_v46 = vpop.f32.mrf.mxu0  ;;  %v7023_v60 = vadd.f32 %v8923_v63, %v11377_v23 }
 0x402   : > { %7301 = vst.msk [vmem:[%s11513_s28 + $0x8] sm:$0xff] %vm7299_vm4, %v7268_v50  ;;  %v7273_v27 = vmax.f32 %v7165_v9, 0.0  ;;  %v7157_v1 = vadd.f32 %v7156_v46, %v6996_v49  ;;  %v11567_v59 = vpop.f32.mrf.mxu1  ;;  %v8935_v50 = vadd.f32 %v11846_v28, %v11414_v40  ;;  %v11847_v49 = vld [vmem:[#allocation25_spill] sm:$0xff] }
 0x403   : > { %v9371_v48 = vpop.f32.mrf.mxu0  ;;  %v7036_v46 = vadd.f32 %v8932_v18, %v11847_v49  ;;  %v11858_v28 = vld [vmem:[#allocation33_spill] sm:$0xff] }
 0x404   : > { %7306 = vst.msk [vmem:[%s11513_s28 + $0x30] sm:$0xff] %vm7299_vm4, %v7273_v27  ;;  %v7271_v57 = vmax.f32 %v7157_v1, 0.0  ;;  %v7168_v0 = vadd.f32 %v9371_v48, %v7007_v17  ;;  %v11579_v33 = vpop.f32.mrf.mxu1  ;;  %v11849_v27 = vld [vmem:[#allocation31_spill] sm:$0xff]  ;;  %v11850_v48 = vld [vmem:[#allocation29_spill] sm:$0xff] }
 0x405   : > { %v7159_v34 = vpop.f32.mrf.mxu0  ;;  %v8929_v1 = vadd.f32 %v11849_v27, %v11848_v41  ;;  %v7028_v11 = vadd.f32 %v8926_v43, %v11850_v48  ;;  %v11856_v43 = vld [vmem:[#allocation30_spill] sm:$0xff] }
 0x406   : > { %7304 = vst.msk [vmem:[%s11513_s28 + $0x20] sm:$0xff] %vm7299_vm4, %v7271_v57  ;;  %v7274_v14 = vmax.f32 %v7168_v0, 0.0  ;;  %v7160_v12 = vadd.f32 %v7159_v34, %v6999_v39  ;;  %v8944_v57 = vadd.f32 %v11437_v37, %v11435_v7  ;;  %v11851_v34 = vld [vmem:[#allocation10_spill] sm:$0xff]  ;;  %v11854_v37 = vld [vmem:[#allocation12_spill] sm:$0xff] }
 0x407   : > { %v9374_v55 = vpop.f32.mrf.mxu0  ;;  %v7039_v63 = vadd.f32 %v8935_v50, %v11851_v34 }
 0x408   : > { %7307 = vst.msk [vmem:[%s11513_s28 + $0x38] sm:$0xff] %vm7299_vm4, %v7274_v14  ;;  %v7272_v8 = vmax.f32 %v7160_v12, 0.0  ;;  %v7181_v47 = vadd.f32 %v9374_v55, %v7020_v36  ;;  %v11591_v14 = vpop.f32.mrf.mxu1  ;;  %v11852_v36 = vld [vmem:[#allocation27_spill] sm:$0xff] }
 0x409   : > { %v7172_v30 = vpop.f32.mrf.mxu0  ;;  %v8938_v55 = vadd.f32 %v11852_v36, %v11421_v5  ;;  %v11863_v36 = vld [vmem:[#allocation43_spill] sm:$0xff] }
 0x40a   : > { %7305 = vst.msk [vmem:[%s11513_s28 + $0x28] sm:$0xff] %vm7299_vm4, %v7272_v8  ;;  %v7277_v52 = vmax.f32 %v7181_v47, 0.0  ;;  %v7173_v61 = vadd.f32 %v7172_v30, %v7012_v2  ;;  %v11853_v47 = vld [vmem:[#allocation24_spill] sm:$0xff]  ;;  %v8947_v30 = vadd.f32 %v11444_v13, %v11854_v37  ;;  %v11865_v37 = vld [vmem:[#allocation34_spill] sm:$0xff] }
 0x40b   : > { %v9375_v16 = vpop.f32.mrf.mxu0  ;;  %v7031_v2 = vadd.f32 %v8929_v1, %v11853_v47  ;;  %v7044_v50 = vadd.f32 %v8938_v55, %v11858_v28  ;;  %v11860_v1 = vld [vmem:[#allocation13_spill] sm:$0xff]  ;;  %v8953_v55 = vadd.f32 %v11461_v56, %v11863_v36  ;;  %v11864_v47 = vld [vmem:[#allocation32_spill] sm:$0xff]  ;;  %v8962_v56 = vadd.f32 %v11497_v35, %v11486_v45 }
 0x40c   : > { %7310 = vst.msk [vmem:[%s11513_s28 + $0x50] sm:$0xff] %vm7299_vm4, %v7277_v52  ;;  %v7275_v25 = vmax.f32 %v7173_v61, 0.0  ;;  %v7184_v31 = vadd.f32 %v9375_v16, %v7023_v60  ;;  %v11855_v61 = vld [vmem:[#allocation28_spill] sm:$0xff]  ;;  %v11603_v16 = vpop.f32.mrf.mxu1  ;;  %v8965_v45 = vadd.f32 %v11519_v32, %v11506_v24  ;;  %v8868_v28 = vadd.f32 %v11493_v6, %v11488_v51 }
 0x40d   : > { %v7175_v38 = vpop.f32.mrf.mxu0  ;;  %v7052_v60 = vadd.f32 %v8944_v57, %v11855_v61  ;;  %v8974_v32 = vadd.f32 %v11591_v14, %v11579_v33 }
 0x40e   : > { %7308 = vst.msk [vmem:[%s11513_s28 + $0x40] sm:$0xff] %vm7299_vm4, %v7275_v25  ;;  %v7278_v23 = vmax.f32 %v7184_v31, 0.0  ;;  %v7176_v9 = vadd.f32 %v7175_v38, %v7015_v29  ;;  %v11857_v25 = vld [vmem:[#allocation11_spill] sm:$0xff]  ;;  %v11615_v41 = vpop.f32.mrf.mxu1 }
 0x40f   : > { %v9378_v44 = vpop.f32.mrf.mxu0  ;;  %v8941_v31 = vadd.f32 %v11857_v25, %v11856_v43 }
 0x410   : > { %7311 = vst.msk [vmem:[%s11513_s28 + $0x58] sm:$0xff] %vm7299_vm4, %v7278_v23  ;;  %v7276_v4 = vmax.f32 %v7176_v9, 0.0  ;;  %v7197_v17 = vadd.f32 %v9378_v44, %v7036_v46  ;;  %v8956_v23 = vadd.f32 %v11471_v62, %v11466_v58  ;;  %v11859_v46 = vld [vmem:[#allocation37_spill] sm:$0xff]  ;;  %v8959_v62 = vadd.f32 %v11481_v19, %v11476_v26 }
 0x411   : > { %v7188_v40 = vpop.f32.mrf.mxu0  ;;  %v7055_v44 = vadd.f32 %v8947_v30, %v11859_v46  ;;  %v8968_v19 = vadd.f32 %v11543_v42, %v11531_v53  ;;  %v8971_v53 = vadd.f32 %v11567_v59, %v11555_v10  ;;  %v11867_v10 = vld [vmem:[#allocation14_spill] sm:$0xff]  ;;  %v7079_v46 = vadd.f32 %v8965_v45, %v11469_v3 }
 0x412   : > { %7309 = vst.msk [vmem:[%s11513_s28 + $0x48] sm:$0xff] %vm7299_vm4, %v7276_v4  ;;  %v7281_v0 = vmax.f32 %v7197_v17, 0.0  ;;  %v7189_v39 = vadd.f32 %v7188_v40, %v7028_v11  ;;  %v11861_v4 = vld [vmem:[#allocation41_spill] sm:$0xff]  ;;  %v11862_v40 = vld [vmem:[#allocation35_spill] sm:$0xff]  ;;  %v7068_v34 = vadd.f32 %v8956_v23, %v11454_v21  ;;  %v7071_v30 = vadd.f32 %v8959_v62, %v11865_v37  ;;  %v11871_v62 = vld [vmem:[#allocation8_spill] sm:$0xff] }
 0x413   : > { %v9379_v12 = vpop.f32.mrf.mxu0  ;;  %v8950_v17 = vadd.f32 %v11861_v4, %v11860_v1  ;;  %v7047_v57 = vadd.f32 %v8941_v31, %v11862_v40  ;;  %v7076_v59 = vadd.f32 %v8962_v56, %v11867_v10  ;;  %v7087_v24 = vadd.f32 %v8971_v53, %v11479_v15  ;;  %v11869_v1 = vld [vmem:[#allocation38_spill] sm:$0xff] }
 0x414   : > { %7314 = vst.msk [vmem:[%s11513_s28 + $0x70] sm:$0xff] %vm7299_vm4, %v7281_v0  ;;  %v7279_v22 = vmax.f32 %v7189_v39, 0.0  ;;  %v7200_v8 = vadd.f32 %v9379_v12, %v7039_v63  ;;  %v8978_v63 = vpop.f32.mrf.mxu1  ;;  %v8871_v4 = vadd.f32 %v11869_v1, %v11499_v54  ;;  %v8977_v54 = vadd.f32 %v11615_v41, %v11603_v16 }
 0x415   : > { %v7191_v7 = vpop.f32.mrf.mxu0 }
 0x416   : > { %7312 = vst.msk [vmem:[%s11513_s28 + $0x60] sm:$0xff] %vm7299_vm4, %v7279_v22  ;;  %v7282_v18 = vmax.f32 %v7200_v8, 0.0  ;;  %v7192_v52 = vadd.f32 %v7191_v7, %v7031_v2  ;;  %v7060_v2 = vadd.f32 %v8950_v17, %v11864_v47 }
 0x417   : > { %v9382_v5 = vpop.f32.mrf.mxu0 }
 0x418   : > { %7315 = vst.msk [vmem:[%s11513_s28 + $0x78] sm:$0xff] %vm7299_vm4, %v7282_v18  ;;  %v7280_v29 = vmax.f32 %v7192_v52, 0.0  ;;  %v7213_v38 = vadd.f32 %v9382_v5, %v7052_v60  ;;  %v8979_v18 = vpop.f32.mrf.mxu1  ;;  %v11866_v5 = vld [vmem:[#allocation39_spill] sm:$0xff] }
 0x419   : > { %v7204_v13 = vpop.f32.mrf.mxu0  ;;  %v7063_v43 = vadd.f32 %v8953_v55, %v11866_v5 }
 0x41a   : > { %7313 = vst.msk [vmem:[%s11513_s28 + $0x68] sm:$0xff] %vm7299_vm4, %v7280_v29  ;;  %v7285_v9 = vmax.f32 %v7213_v38, 0.0  ;;  %v7205_v49 = vadd.f32 %v7204_v13, %v7044_v50  ;;  %v7084_v29 = vadd.f32 %v8968_v19, %v11474_v20  ;;  %v8981_v35 = vpop.f32.mrf.mxu1 }
 0x41b   : > { %v9383_v27 = vpop.f32.mrf.mxu0 }
 0x41c   : > { %7318 = vst.msk [vmem:[%s11513_s28 + $0x90] sm:$0xff] %vm7299_vm4, %v7285_v9  ;;  %v7283_v48 = vmax.f32 %v7205_v49, 0.0  ;;  %v7216_v11 = vadd.f32 %v9383_v27, %v7055_v44  ;;  %v8980_v9 = vadd.f32 %v8979_v18, %v8978_v63  ;;  %v8982_v51 = vpop.f32.mrf.mxu1  ;;  %v11868_v44 = vld [vmem:[#allocation23_spill] sm:$0xff] }
 0x41d   : > { %v7207_v58 = vpop.f32.mrf.mxu0  ;;  %v6939_v27 = vadd.f32 %v8868_v28, %v11868_v44  ;;  %v8983_v15 = vadd.f32 %v8982_v51, %v8981_v35 }
 0x41e   : > { %7316 = vst.msk [vmem:[%s11513_s28 + $0x80] sm:$0xff] %vm7299_vm4, %v7283_v48  ;;  %v7286_v0 = vmax.f32 %v7216_v11, 0.0  ;;  %v7208_v39 = vadd.f32 %v7207_v58, %v7047_v57  ;;  %v11870_v57 = vld [vmem:[#allocation45_spill] sm:$0xff] }
 0x41f   : > { %v9386_v12 = vpop.f32.mrf.mxu0  ;;  %v7100_v40 = vadd.f32 %v8980_v9, %v6939_v27  ;;  %v7092_v58 = vadd.f32 %v8974_v32, %v11870_v57 }
 0x420   : > { %7319 = vst.msk [vmem:[%s11513_s28 + $0x98] sm:$0xff] %vm7299_vm4, %v7286_v0  ;;  %v7284_v22 = vmax.f32 %v7208_v39, 0.0  ;;  %v7229_v8 = vadd.f32 %v9386_v12, %v7068_v34  ;;  %v6942_v0 = vadd.f32 %v8871_v4, %v11871_v62 }
 0x421   : > { %v7220_v26 = vpop.f32.mrf.mxu0 }
 0x422   : > { %7317 = vst.msk [vmem:[%s11513_s28 + $0x88] sm:$0xff] %vm7299_vm4, %v7284_v22  ;;  %v7289_v21 = vmax.f32 %v7229_v8, 0.0  ;;  %v7221_v7 = vadd.f32 %v7220_v26, %v7060_v2  ;;  %v7103_v55 = vadd.f32 %v8983_v15, %v6942_v0  ;;  %v11872_v2 = vld [vmem:[#allocation36_spill] sm:$0xff] }
 0x423   : > { %v9387_v52 = vpop.f32.mrf.mxu0  ;;  %v7095_v26 = vadd.f32 %v8977_v54, %v11872_v2 }
 0x424   : > { %7322 = vst.msk [vmem:[%s11513_s28 + $0xb0] sm:$0xff] %vm7299_vm4, %v7289_v21  ;;  %v7287_v61 = vmax.f32 %v7221_v7, 0.0  ;;  %v7232_v60 = vadd.f32 %v9387_v52, %v7071_v30 }
 0x425   : > { %v7223_v25 = vpop.f32.mrf.mxu0 }
 0x426   : > { %7320 = vst.msk [vmem:[%s11513_s28 + $0xa0] sm:$0xff] %vm7299_vm4, %v7287_v61  ;;  %v7290_v42 = vmax.f32 %v7232_v60, 0.0  ;;  %v7224_v31 = vadd.f32 %v7223_v25, %v7063_v43 }
 0x427   : > { %v9390_v38 = vpop.f32.mrf.mxu0 }
 0x428   : > { %7323 = vst.msk [vmem:[%s11513_s28 + $0xb8] sm:$0xff] %vm7299_vm4, %v7290_v42  ;;  %v7288_v50 = vmax.f32 %v7224_v31, 0.0  ;;  %v7245_v13 = vadd.f32 %v9390_v38, %v7084_v29 }
 0x429   : > { %v7236_v23 = vpop.f32.mrf.mxu0 }
 0x42a   : > { %7321 = vst.msk [vmem:[%s11513_s28 + $0xa8] sm:$0xff] %vm7299_vm4, %v7288_v50  ;;  %v7293_v20 = vmax.f32 %v7245_v13, 0.0  ;;  %v7237_v49 = vadd.f32 %v7236_v23, %v7076_v59 }
 0x42b   : > { %v9391_v6 = vpop.f32.mrf.mxu0 }
 0x42c   : > { %7326 = vst.msk [vmem:[%s11513_s28 + $0xd0] sm:$0xff] %vm7299_vm4, %v7293_v20  ;;  %v7291_v17 = vmax.f32 %v7237_v49, 0.0  ;;  %v7248_v48 = vadd.f32 %v9391_v6, %v7087_v24 }
 0x42d   : > { %v7239_v11 = vpop.f32.mrf.mxu0 }
 0x42e   : > { %7324 = vst.msk [vmem:[%s11513_s28 + $0xc0] sm:$0xff] %vm7299_vm4, %v7291_v17  ;;  %v7294_v33 = vmax.f32 %v7248_v48, 0.0  ;;  %v7240_v14 = vadd.f32 %v7239_v11, %v7079_v46 }
 0x42f   : > { %v9394_v3 = vpop.f32.mrf.mxu0 }
 0x430   : > { %7327 = vst.msk [vmem:[%s11513_s28 + $0xd8] sm:$0xff] %vm7299_vm4, %v7294_v33  ;;  %v7292_v39 = vmax.f32 %v7240_v14, 0.0  ;;  %v7261_v34 = vadd.f32 %v9394_v3, %v7100_v40 }
 0x431   : > { %v7252_v63 = vpop.f32.mrf.mxu0 }
 0x432   : > { %7325 = vst.msk [vmem:[%s11513_s28 + $0xc8] sm:$0xff] %vm7299_vm4, %v7292_v39  ;;  %v7297_v12 = vmax.f32 %v7261_v34, 0.0  ;;  %v7253_v36 = vadd.f32 %v7252_v63, %v7092_v58 }
 0x433   : > { %v9395_v22 = vpop.f32.mrf.mxu0 }
 0x434   : > { %7330 = vst.msk [vmem:[%s11513_s28 + $0xf0] sm:$0xff] %vm7299_vm4, %v7297_v12  ;;  %v7295_v8 = vmax.f32 %v7253_v36, 0.0  ;;  %v7264_v47 = vadd.f32 %v9395_v22, %v7103_v55 }
 0x435   : > { %v7255_v16 = vpop.f32.mrf.mxu0 }
 0x436   : > { %7328 = vst.msk [vmem:[%s11513_s28 + $0xe0] sm:$0xff] %vm7299_vm4, %v7295_v8  ;;  %v7298_v41 = vmax.f32 %v7264_v47, 0.0  ;;  %v7256_v19 = vadd.f32 %v7255_v16, %v7095_v26 }
 0x438   : > { %7331 = vst.msk [vmem:[%s11513_s28 + $0xf8] sm:$0xff] %vm7299_vm4, %v7298_v41  ;;  %v7296_v21 = vmax.f32 %v7256_v19, 0.0 }
 0x43a   : > { %7329 = vst.msk [vmem:[%s11513_s28 + $0xe8] sm:$0xff] %vm7299_vm4, %v7296_v21 }
 0x43b PF: > { %s15_s15 = sadd.s32 1, %s9750_s15  }
 0x43c   : > { %p12_p1 = scmp.ge.s32.totalorder %s15_s15, 4  }
 0x43e   :  { %14 = sbr.rel (!%p12_p1) target bundleno = 1 (0x1), region = 77 }
 0x443   :  { %7353 = vsyncpa [#allocation6], 1 }
 0x444   :  { %7355 = vsyncpa [#allocation6 + $0x1], 1 }

</bundles_post_ra>
